<compile_context>
chip_gen: v5e
topology: v5e:2x2
jax: 0.10.0
libtpu: 0.0.40
codegen_flags: <defaults>
</compile_context>

<pallas_src>
import functools

import numpy as np

import jax
import jax.numpy as jnp
from jax.experimental import pallas as pl
from jax.experimental.pallas import tpu as pltpu

LANE = 128


def _round_up(x, m):
    return (x + m - 1) // m * m


def _prep_weight(w_oihw, cp_in, cp_out):
    """(Cout, Cin, 3, 3) -> lane-padded 2-D MXU operand (9*Cp_in, Cp_out)."""
    cout, cin, k1, k2 = w_oihw.shape
    w = jnp.transpose(w_oihw, (2, 3, 1, 0))                       # (3, 3, Cin, Cout)
    w = jnp.pad(w, ((0, 0), (0, 0), (0, cp_in - cin), (0, cp_out - cout)))
    return w.reshape(k1 * k2 * cp_in, cp_out)


def _prep_bias(b, cp_out):
    return jnp.pad(b, (0, cp_out - b.shape[0])).reshape(1, cp_out)


def _pool_selection_matrices(H, W):
    """Four 0/1 matrices (Ho*Wo, H*W) selecting the 4 taps of each 2x2 window.

    ceil_mode=True: out-of-range taps get an all-zero row, which is correct here
    because the pooled operand is post-ReLU (>= 0).
    """
    Ho, Wo = (H + 1) // 2, (W + 1) // 2
    p = np.arange(Ho * Wo)
    i, j = p // Wo, p % Wo
    mats = np.zeros((4, Ho * Wo, H * W), np.float32)
    for t, (dh, dw) in enumerate([(0, 0), (0, 1), (1, 0), (1, 1)]):
        h, w = 2 * i + dh, 2 * j + dw
        valid = (h < H) & (w < W)
        mats[t, p[valid], (h * W + w)[valid]] = 1.0
    return jnp.asarray(mats)


# --------------------------------------------------------------------------- kernels

def _conv_relu_compute(x_ref, w_ref, b_ref, col_ref, H, W):
    """Shared body: im2col -> one MXU matmul -> bias -> ReLU. Returns (H, W, Cp_out)."""
    cp_in = x_ref.shape[3]
    # im2col: pack the 9 shifted (H, W, Cp_in) windows along the lane axis of the
    # VMEM scratch. Every copy is a lane-aligned block store (no sublane shuffles).
    for kh in range(3):
        for kw in range(3):
            t = kh * 3 + kw
            col_ref[:, :, t * cp_in:(t + 1) * cp_in] = x_ref[0, kh:kh + H, kw:kw + W, :]
    # Single contraction with K = 9*Cp_in, f32 accumulation on the MXU.
    acc = jax.lax.dot_general(
        col_ref[...], w_ref[...],
        dimension_numbers=(((2,), (0,)), ((), ())),
        preferred_element_type=jnp.float32)                        # (H, W, Cp_out)
    acc = acc + b_ref[0, :][None, None, :]
    return jnp.maximum(acc, 0.0)


def _conv_relu_kernel(x_ref, w_ref, b_ref, o_ref, col_ref, *, H, W):
    act = _conv_relu_compute(x_ref, w_ref, b_ref, col_ref, H, W)
    o_ref[0] = act.astype(o_ref.dtype)                             # lane-dense (H, W, 128k)


def _conv_relu_pool_kernel(x_ref, w_ref, b_ref, sel_ref, o_ref, col_ref, *, H, W):
    act = _conv_relu_compute(x_ref, w_ref, b_ref, col_ref, H, W)
    cp_out = o_ref.shape[2]
    act2 = act.reshape(H * W, cp_out)                              # lane-dense rows
    # Fused MaxPool2d(2, 2, ceil_mode=True): four selection matmuls + elementwise max.
    pooled = None
    for t in range(4):
        v = jax.lax.dot_general(
            sel_ref[t], act2,
            dimension_numbers=(((1,), (0,)), ((), ())),
            preferred_element_type=jnp.float32)                    # (Ho*Wo, Cp_out)
        pooled = v if pooled is None else jnp.maximum(pooled, v)
    o_ref[0] = pooled.astype(o_ref.dtype)


# --------------------------------------------------------------------------- wrappers

def _conv_relu_layer(x_pad, w2d, b2d, sel4, *, H, W, pool):
    """One ConvRelu layer (optionally with the fused trailing MaxPool).

    x_pad: (N, H+2, W+2, Cp_in)  NHWC, 1-pixel zero halo, lane-padded channels.
    w2d:   (9*Cp_in, Cp_out)     lane-padded 2-D weight.
    b2d:   (1, Cp_out)           lane-padded bias.
    sel4:  (4, Ho*Wo, H*W)       pooling selection matrices (only when pool=True).
    """
    N = x_pad.shape[0]
    cp_in = x_pad.shape[3]
    cp_out = w2d.shape[1]

    common_in_specs = [
        pl.BlockSpec((1, H + 2, W + 2, cp_in), lambda n: (n, 0, 0, 0)),
        pl.BlockSpec((9 * cp_in, cp_out), lambda n: (0, 0)),        # resident weight
        pl.BlockSpec((1, cp_out), lambda n: (0, 0)),                # resident bias
    ]
    scratch = [pltpu.VMEM((H, W, 9 * cp_in), jnp.float32)]          # im2col operand
    cparams = pltpu.CompilerParams(
        dimension_semantics=("parallel",),                          # batch across TCs
        vmem_limit_bytes=32 * 1024 * 1024,                          # explicit, fits all gens
    )

    if pool:
        Ho, Wo = (H + 1) // 2, (W + 1) // 2
        kernel = functools.partial(_conv_relu_pool_kernel, H=H, W=W)
        return pl.pallas_call(
            kernel,
            out_shape=jax.ShapeDtypeStruct((N, Ho * Wo, cp_out), x_pad.dtype),
            grid_spec=pltpu.PrefetchScalarGridSpec(
                num_scalar_prefetch=0,
                grid=(N,),
                in_specs=common_in_specs + [
                    pl.BlockSpec((4, Ho * Wo, H * W), lambda n: (0, 0, 0)),
                ],
                out_specs=pl.BlockSpec((1, Ho * Wo, cp_out), lambda n: (n, 0, 0)),
                scratch_shapes=scratch,
            ),
            compiler_params=cparams,
        )(x_pad, w2d, b2d, sel4)
    else:
        kernel = functools.partial(_conv_relu_kernel, H=H, W=W)
        return pl.pallas_call(
            kernel,
            out_shape=jax.ShapeDtypeStruct((N, H, W, cp_out), x_pad.dtype),
            grid_spec=pltpu.PrefetchScalarGridSpec(
                num_scalar_prefetch=0,
                grid=(N,),
                in_specs=common_in_specs,
                out_specs=pl.BlockSpec((1, H, W, cp_out), lambda n: (n, 0, 0, 0)),
                scratch_shapes=scratch,
            ),
            compiler_params=cparams,
        )(x_pad, w2d, b2d)


def seq_conv_relu_mp(x_nchw, weights, biases):
    """Forward of SeqConvReluMP: L x (3x3 conv pad=1 + ReLU) -> MaxPool2d(2,2,ceil).

    Accepts / returns NCHW to match the PyTorch module; internally NHWC with
    lane-padded channels end-to-end.
    """
    N, Cin, H, W = x_nchw.shape
    Cout = weights[0].shape[0]
    cp_out = _round_up(Cout, LANE)
    Ho, Wo = (H + 1) // 2, (W + 1) // 2

    # One-time boundary conversion: NCHW -> NHWC, lane-pad channels, zero spatial halo.
    cp_in0 = _round_up(Cin, LANE)
    x = jnp.transpose(x_nchw, (0, 2, 3, 1))
    x = jnp.pad(x, ((0, 0), (1, 1), (1, 1), (0, cp_in0 - Cin)))

    sel4 = _pool_selection_matrices(H, W)

    n_layers = len(weights)
    for l, (w, b) in enumerate(zip(weights, biases)):
        cp_l = _round_up(w.shape[1], LANE)
        w2d = _prep_weight(w, cp_l, cp_out)
        b2d = _prep_bias(b, cp_out)
        last = (l == n_layers - 1)
        if last:
            x = _conv_relu_layer(x, w2d, b2d, sel4, H=H, W=W, pool=True)
        else:
            x = _conv_relu_layer(x, w2d, b2d, None, H=H, W=W, pool=False)
            # Re-add the 1-pixel zero halo for the next layer's padding=1.
            # NOTE: could be written by the producing kernel to save this small
            # inter-layer HBM pass; kept in the wrapper for lowering robustness.
            x = jnp.pad(x, ((0, 0), (1, 1), (1, 1), (0, 0)))

    # Pooled output is (N, Ho*Wo, Cp_out): drop lane padding, back to NCHW.
    out = x[:, :, :Cout].reshape(N, Ho, Wo, Cout)
    return jnp.transpose(out, (0, 3, 1, 2))


if __name__ == "__main__":
    # Small shapes consistent with the module.
    N, Cin, Cout, H, W = 2, 4, 8, 16, 16
    layers_count = 2

    key = jax.random.PRNGKey(0)
    keys = jax.random.split(key, 1 + 2 * layers_count)
    x = jax.random.normal(keys[0], (N, Cin, H, W), dtype=jnp.float32)

    # Deterministic synthetic params (mimic Conv2d kaiming-uniform scale).
    weights, biases = [], []
    c_in = Cin
    for l in range(layers_count):
        fan_in = c_in * 3 * 3
        bound = 1.0 / (fan_in ** 0.5)
        weights.append(jax.random.uniform(
            keys[1 + 2 * l], (Cout, c_in, 3, 3), jnp.float32, -bound, bound))
        biases.append(jax.random.uniform(
            keys[2 + 2 * l], (Cout,), jnp.float32, -bound, bound))
        c_in = Cout

    fwd = jax.jit(seq_conv_relu_mp)
    out = fwd(x, weights, biases)
    out = jax.block_until_ready(out)

    # Reference: XLA convs + ReLU + max-pool (same semantics as the PyTorch module).
    ref = x
    for w, b in zip(weights, biases):
        ref = jax.lax.conv_general_dilated(
            ref, w, window_strides=(1, 1), padding=((1, 1), (1, 1)),
            dimension_numbers=("NCHW", "OIHW", "NCHW")) + b[None, :, None, None]
        ref = jnp.maximum(ref, 0.0)
    ref = jax.lax.reduce_window(
        ref, -jnp.inf, jax.lax.max,
        window_dimensions=(1, 1, 2, 2), window_strides=(1, 1, 2, 2),
        padding=((0, 0), (0, 0), (0, H % 2), (0, W % 2)))

    Ho, Wo = (H + 1) // 2, (W + 1) // 2
    assert out.shape == (N, Cout, Ho, Wo), out.shape
    assert jnp.allclose(out, ref, atol=1e-4, rtol=1e-4)

    print("KERNEL_OK")
</pallas_src>

<mosaic_0001>
module attributes {stable_mosaic.version = 11 : i64} {
  func.func @_conv_relu_kernel(%arg0: i32, %arg1: memref<1x18x18x128xf32, #tpu.memory_space<vmem>>, %arg2: memref<1152x128xf32, #tpu.memory_space<vmem>>, %arg3: memref<1x128xf32, #tpu.memory_space<vmem>>, %arg4: memref<1x16x16x128xf32, #tpu.memory_space<vmem>>, %arg5: memref<16x16x1152xf32, #tpu.memory_space<vmem>>) attributes {dimension_semantics = [#tpu.dimension_semantics<parallel>], iteration_bounds = array<i64: 2>, scalar_prefetch = 0 : i64, scratch_operands = 1 : i64, tpu.core_type = #tpu.core_type<tc>, window_params = [{transform_indices = @transform_0, window_bounds = array<i64: 1, 18, 18, 128>}, {pipeline_mode = #tpu.pipeline_mode<synchronous>, transform_indices = @transform_1, window_bounds = array<i64: 1152, 128>}, {pipeline_mode = #tpu.pipeline_mode<synchronous>, transform_indices = @transform_2, window_bounds = array<i64: 1, 128>}, {transform_indices = @transform_3, window_bounds = array<i64: 1, 16, 16, 128>}]} {
    %c0 = arith.constant 0 : index
    %c0_0 = arith.constant 0 : index
    %c0_1 = arith.constant 0 : index
    %c0_2 = arith.constant 0 : index
    %0 = vector.load %arg1[%c0, %c0_0, %c0_1, %c0_2] : memref<1x18x18x128xf32, #tpu.memory_space<vmem>>, vector<1x16x16x128xf32>
    %1 = vector.shape_cast %0 : vector<1x16x16x128xf32> to vector<16x16x128xf32>
    %c0_3 = arith.constant 0 : index
    %c0_4 = arith.constant 0 : index
    %c0_5 = arith.constant 0 : index
    %2 = vector.load %arg5[%c0_3, %c0_4, %c0_5] : memref<16x16x1152xf32, #tpu.memory_space<vmem>>, vector<16x16x128xf32>
    tpu.vector_store %arg5[%c0_3, %c0_4, %c0_5], %1 {strides = array<i32>} : memref<16x16x1152xf32, #tpu.memory_space<vmem>>, vector<16x16x128xf32>,
    %c0_6 = arith.constant 0 : index
    %c0_7 = arith.constant 0 : index
    %c1 = arith.constant 1 : index
    %c0_8 = arith.constant 0 : index
    %3 = vector.load %arg1[%c0_6, %c0_7, %c1, %c0_8] : memref<1x18x18x128xf32, #tpu.memory_space<vmem>>, vector<1x16x16x128xf32>
    %4 = vector.shape_cast %3 : vector<1x16x16x128xf32> to vector<16x16x128xf32>
    %c0_9 = arith.constant 0 : index
    %c0_10 = arith.constant 0 : index
    %c128 = arith.constant 128 : index
    %5 = vector.load %arg5[%c0_9, %c0_10, %c128] : memref<16x16x1152xf32, #tpu.memory_space<vmem>>, vector<16x16x128xf32>
    tpu.vector_store %arg5[%c0_9, %c0_10, %c128], %4 {strides = array<i32>} : memref<16x16x1152xf32, #tpu.memory_space<vmem>>, vector<16x16x128xf32>,
    %c0_11 = arith.constant 0 : index
    %c0_12 = arith.constant 0 : index
    %c2 = arith.constant 2 : index
    %c0_13 = arith.constant 0 : index
    %6 = vector.load %arg1[%c0_11, %c0_12, %c2, %c0_13] : memref<1x18x18x128xf32, #tpu.memory_space<vmem>>, vector<1x16x16x128xf32>
    %7 = vector.shape_cast %6 : vector<1x16x16x128xf32> to vector<16x16x128xf32>
    %c0_14 = arith.constant 0 : index
    %c0_15 = arith.constant 0 : index
    %c256 = arith.constant 256 : index
    %8 = vector.load %arg5[%c0_14, %c0_15, %c256] : memref<16x16x1152xf32, #tpu.memory_space<vmem>>, vector<16x16x128xf32>
    tpu.vector_store %arg5[%c0_14, %c0_15, %c256], %7 {strides = array<i32>} : memref<16x16x1152xf32, #tpu.memory_space<vmem>>, vector<16x16x128xf32>,
    %c0_16 = arith.constant 0 : index
    %c1_17 = arith.constant 1 : index
    %c0_18 = arith.constant 0 : index
    %c0_19 = arith.constant 0 : index
    %9 = vector.load %arg1[%c0_16, %c1_17, %c0_18, %c0_19] : memref<1x18x18x128xf32, #tpu.memory_space<vmem>>, vector<1x16x16x128xf32>
    %10 = vector.shape_cast %9 : vector<1x16x16x128xf32> to vector<16x16x128xf32>
    %c0_20 = arith.constant 0 : index
    %c0_21 = arith.constant 0 : index
    %c384 = arith.constant 384 : index
    %11 = vector.load %arg5[%c0_20, %c0_21, %c384] : memref<16x16x1152xf32, #tpu.memory_space<vmem>>, vector<16x16x128xf32>
    tpu.vector_store %arg5[%c0_20, %c0_21, %c384], %10 {strides = array<i32>} : memref<16x16x1152xf32, #tpu.memory_space<vmem>>, vector<16x16x128xf32>,
    %c0_22 = arith.constant 0 : index
    %c1_23 = arith.constant 1 : index
    %c1_24 = arith.constant 1 : index
    %c0_25 = arith.constant 0 : index
    %12 = vector.load %arg1[%c0_22, %c1_23, %c1_24, %c0_25] : memref<1x18x18x128xf32, #tpu.memory_space<vmem>>, vector<1x16x16x128xf32>
    %13 = vector.shape_cast %12 : vector<1x16x16x128xf32> to vector<16x16x128xf32>
    %c0_26 = arith.constant 0 : index
    %c0_27 = arith.constant 0 : index
    %c512 = arith.constant 512 : index
    %14 = vector.load %arg5[%c0_26, %c0_27, %c512] : memref<16x16x1152xf32, #tpu.memory_space<vmem>>, vector<16x16x128xf32>
    tpu.vector_store %arg5[%c0_26, %c0_27, %c512], %13 {strides = array<i32>} : memref<16x16x1152xf32, #tpu.memory_space<vmem>>, vector<16x16x128xf32>,
    %c0_28 = arith.constant 0 : index
    %c1_29 = arith.constant 1 : index
    %c2_30 = arith.constant 2 : index
    %c0_31 = arith.constant 0 : index
    %15 = vector.load %arg1[%c0_28, %c1_29, %c2_30, %c0_31] : memref<1x18x18x128xf32, #tpu.memory_space<vmem>>, vector<1x16x16x128xf32>
    %16 = vector.shape_cast %15 : vector<1x16x16x128xf32> to vector<16x16x128xf32>
    %c0_32 = arith.constant 0 : index
    %c0_33 = arith.constant 0 : index
    %c640 = arith.constant 640 : index
    %17 = vector.load %arg5[%c0_32, %c0_33, %c640] : memref<16x16x1152xf32, #tpu.memory_space<vmem>>, vector<16x16x128xf32>
    tpu.vector_store %arg5[%c0_32, %c0_33, %c640], %16 {strides = array<i32>} : memref<16x16x1152xf32, #tpu.memory_space<vmem>>, vector<16x16x128xf32>,
    %c0_34 = arith.constant 0 : index
    %c2_35 = arith.constant 2 : index
    %c0_36 = arith.constant 0 : index
    %c0_37 = arith.constant 0 : index
    %18 = vector.load %arg1[%c0_34, %c2_35, %c0_36, %c0_37] : memref<1x18x18x128xf32, #tpu.memory_space<vmem>>, vector<1x16x16x128xf32>
    %19 = vector.shape_cast %18 : vector<1x16x16x128xf32> to vector<16x16x128xf32>
    %c0_38 = arith.constant 0 : index
    %c0_39 = arith.constant 0 : index
    %c768 = arith.constant 768 : index
    %20 = vector.load %arg5[%c0_38, %c0_39, %c768] : memref<16x16x1152xf32, #tpu.memory_space<vmem>>, vector<16x16x128xf32>
    tpu.vector_store %arg5[%c0_38, %c0_39, %c768], %19 {strides = array<i32>} : memref<16x16x1152xf32, #tpu.memory_space<vmem>>, vector<16x16x128xf32>,
    %c0_40 = arith.constant 0 : index
    %c2_41 = arith.constant 2 : index
    %c1_42 = arith.constant 1 : index
    %c0_43 = arith.constant 0 : index
    %21 = vector.load %arg1[%c0_40, %c2_41, %c1_42, %c0_43] : memref<1x18x18x128xf32, #tpu.memory_space<vmem>>, vector<1x16x16x128xf32>
    %22 = vector.shape_cast %21 : vector<1x16x16x128xf32> to vector<16x16x128xf32>
    %c0_44 = arith.constant 0 : index
    %c0_45 = arith.constant 0 : index
    %c896 = arith.constant 896 : index
    %23 = vector.load %arg5[%c0_44, %c0_45, %c896] : memref<16x16x1152xf32, #tpu.memory_space<vmem>>, vector<16x16x128xf32>
    tpu.vector_store %arg5[%c0_44, %c0_45, %c896], %22 {strides = array<i32>} : memref<16x16x1152xf32, #tpu.memory_space<vmem>>, vector<16x16x128xf32>,
    %c0_46 = arith.constant 0 : index
    %c2_47 = arith.constant 2 : index
    %c2_48 = arith.constant 2 : index
    %c0_49 = arith.constant 0 : index
    %24 = vector.load %arg1[%c0_46, %c2_47, %c2_48, %c0_49] : memref<1x18x18x128xf32, #tpu.memory_space<vmem>>, vector<1x16x16x128xf32>
    %25 = vector.shape_cast %24 : vector<1x16x16x128xf32> to vector<16x16x128xf32>
    %c0_50 = arith.constant 0 : index
    %c0_51 = arith.constant 0 : index
    %c1024 = arith.constant 1024 : index
    %26 = vector.load %arg5[%c0_50, %c0_51, %c1024] : memref<16x16x1152xf32, #tpu.memory_space<vmem>>, vector<16x16x128xf32>
    tpu.vector_store %arg5[%c0_50, %c0_51, %c1024], %25 {strides = array<i32>} : memref<16x16x1152xf32, #tpu.memory_space<vmem>>, vector<16x16x128xf32>,
    %c0_52 = arith.constant 0 : index
    %c0_53 = arith.constant 0 : index
    %c0_54 = arith.constant 0 : index
    %27 = vector.load %arg5[%c0_52, %c0_53, %c0_54] : memref<16x16x1152xf32, #tpu.memory_space<vmem>>, vector<16x16x1152xf32>
    %c0_55 = arith.constant 0 : index
    %c0_56 = arith.constant 0 : index
    %28 = vector.load %arg2[%c0_55, %c0_56] : memref<1152x128xf32, #tpu.memory_space<vmem>>, vector<1152x128xf32>
    %cst = arith.constant dense<0.000000e+00> : vector<16x16x128xf32>
    %29 = tpu.matmul %27, %28, %cst {dimension_numbers = #tpu.dot_dimension_numbers<[2], [0], [0, 1], [1], [0, 0, 0, 1, 1, 1], [], []>} : vector<16x16x1152xf32>, vector<1152x128xf32>, vector<16x16x128xf32> -> vector<16x16x128xf32>
    %c0_57 = arith.constant 0 : index
    %c0_58 = arith.constant 0 : index
    %30 = vector.load %arg3[%c0_57, %c0_58] : memref<1x128xf32, #tpu.memory_space<vmem>>, vector<1x128xf32>
    %31 = vector.shape_cast %30 : vector<1x128xf32> to vector<128xf32>
    %32 = vector.shape_cast %31 : vector<128xf32> to vector<1x1x128xf32>
    %33 = vector.broadcast %32 : vector<1x1x128xf32> to vector<16x16x128xf32>
    %34 = arith.addf %29, %33 : vector<16x16x128xf32>
    %cst_59 = arith.constant 0.000000e+00 : f32
    %35 = vector.broadcast %cst_59 : f32 to vector<16x16x128xf32>
    %36 = arith.maximumf %34, %35 : vector<16x16x128xf32>
    %c0_60 = arith.constant 0 : index
    %c0_61 = arith.constant 0 : index
    %c0_62 = arith.constant 0 : index
    %c0_63 = arith.constant 0 : index
    %37 = vector.load %arg4[%c0_60, %c0_61, %c0_62, %c0_63] : memref<1x16x16x128xf32, #tpu.memory_space<vmem>>, vector<1x16x16x128xf32>
    %38 = vector.shape_cast %37 : vector<1x16x16x128xf32> to vector<16x16x128xf32>
    %39 = vector.shape_cast %36 : vector<16x16x128xf32> to vector<1x16x16x128xf32>
    tpu.vector_store %arg4[%c0_60, %c0_61, %c0_62, %c0_63], %39 {strides = array<i32>} : memref<1x16x16x128xf32, #tpu.memory_space<vmem>>, vector<1x16x16x128xf32>,
    return
  }
  func.func @transform_0(%arg0: i32) -> (i32, i32, i32, i32) {
    %c0_i32 = arith.constant 0 : i32
    %c0_i32_0 = arith.constant 0 : i32
    %c0_i32_1 = arith.constant 0 : i32
    %c0_i32_2 = arith.constant 0 : i32
    return %arg0, %c0_i32, %c0_i32_0, %c0_i32_1 : i32, i32, i32, i32
  }
  func.func @transform_1(%arg0: i32) -> (i32, i32) {
    %c0_i32 = arith.constant 0 : i32
    %c0_i32_0 = arith.constant 0 : i32
    %c0_i32_1 = arith.constant 0 : i32
    return %c0_i32, %c0_i32_0 : i32, i32
  }
  func.func @transform_2(%arg0: i32) -> (i32, i32) {
    %c0_i32 = arith.constant 0 : i32
    %c0_i32_0 = arith.constant 0 : i32
    %c0_i32_1 = arith.constant 0 : i32
    return %c0_i32, %c0_i32_0 : i32, i32
  }
  func.func @transform_3(%arg0: i32) -> (i32, i32, i32, i32) {
    %c0_i32 = arith.constant 0 : i32
    %c0_i32_0 = arith.constant 0 : i32
    %c0_i32_1 = arith.constant 0 : i32
    %c0_i32_2 = arith.constant 0 : i32
    return %arg0, %c0_i32, %c0_i32_0, %c0_i32_1 : i32, i32, i32, i32
  }
}

module attributes {stable_mosaic.version = 11 : i64} {
  func.func @_conv_relu_pool_kernel(%arg0: i32, %arg1: memref<1x18x18x128xf32, #tpu.memory_space<vmem>>, %arg2: memref<1152x128xf32, #tpu.memory_space<vmem>>, %arg3: memref<1x128xf32, #tpu.memory_space<vmem>>, %arg4: memref<4x64x256xf32, #tpu.memory_space<vmem>>, %arg5: memref<1x64x128xf32, #tpu.memory_space<vmem>>, %arg6: memref<16x16x1152xf32, #tpu.memory_space<vmem>>) attributes {dimension_semantics = [#tpu.dimension_semantics<parallel>], iteration_bounds = array<i64: 2>, scalar_prefetch = 0 : i64, scratch_operands = 1 : i64, tpu.core_type = #tpu.core_type<tc>, window_params = [{transform_indices = @transform_0, window_bounds = array<i64: 1, 18, 18, 128>}, {pipeline_mode = #tpu.pipeline_mode<synchronous>, transform_indices = @transform_1, window_bounds = array<i64: 1152, 128>}, {pipeline_mode = #tpu.pipeline_mode<synchronous>, transform_indices = @transform_2, window_bounds = array<i64: 1, 128>}, {pipeline_mode = #tpu.pipeline_mode<synchronous>, transform_indices = @transform_3, window_bounds = array<i64: 4, 64, 256>}, {transform_indices = @transform_4, window_bounds = array<i64: 1, 64, 128>}]} {
    %c0 = arith.constant 0 : index
    %c0_0 = arith.constant 0 : index
    %c0_1 = arith.constant 0 : index
    %c0_2 = arith.constant 0 : index
    %0 = vector.load %arg1[%c0, %c0_0, %c0_1, %c0_2] : memref<1x18x18x128xf32, #tpu.memory_space<vmem>>, vector<1x16x16x128xf32>
    %1 = vector.shape_cast %0 : vector<1x16x16x128xf32> to vector<16x16x128xf32>
    %c0_3 = arith.constant 0 : index
    %c0_4 = arith.constant 0 : index
    %c0_5 = arith.constant 0 : index
    %2 = vector.load %arg6[%c0_3, %c0_4, %c0_5] : memref<16x16x1152xf32, #tpu.memory_space<vmem>>, vector<16x16x128xf32>
    tpu.vector_store %arg6[%c0_3, %c0_4, %c0_5], %1 {strides = array<i32>} : memref<16x16x1152xf32, #tpu.memory_space<vmem>>, vector<16x16x128xf32>,
    %c0_6 = arith.constant 0 : index
    %c0_7 = arith.constant 0 : index
    %c1 = arith.constant 1 : index
    %c0_8 = arith.constant 0 : index
    %3 = vector.load %arg1[%c0_6, %c0_7, %c1, %c0_8] : memref<1x18x18x128xf32, #tpu.memory_space<vmem>>, vector<1x16x16x128xf32>
    %4 = vector.shape_cast %3 : vector<1x16x16x128xf32> to vector<16x16x128xf32>
    %c0_9 = arith.constant 0 : index
    %c0_10 = arith.constant 0 : index
    %c128 = arith.constant 128 : index
    %5 = vector.load %arg6[%c0_9, %c0_10, %c128] : memref<16x16x1152xf32, #tpu.memory_space<vmem>>, vector<16x16x128xf32>
    tpu.vector_store %arg6[%c0_9, %c0_10, %c128], %4 {strides = array<i32>} : memref<16x16x1152xf32, #tpu.memory_space<vmem>>, vector<16x16x128xf32>,
    %c0_11 = arith.constant 0 : index
    %c0_12 = arith.constant 0 : index
    %c2 = arith.constant 2 : index
    %c0_13 = arith.constant 0 : index
    %6 = vector.load %arg1[%c0_11, %c0_12, %c2, %c0_13] : memref<1x18x18x128xf32, #tpu.memory_space<vmem>>, vector<1x16x16x128xf32>
    %7 = vector.shape_cast %6 : vector<1x16x16x128xf32> to vector<16x16x128xf32>
    %c0_14 = arith.constant 0 : index
    %c0_15 = arith.constant 0 : index
    %c256 = arith.constant 256 : index
    %8 = vector.load %arg6[%c0_14, %c0_15, %c256] : memref<16x16x1152xf32, #tpu.memory_space<vmem>>, vector<16x16x128xf32>
    tpu.vector_store %arg6[%c0_14, %c0_15, %c256], %7 {strides = array<i32>} : memref<16x16x1152xf32, #tpu.memory_space<vmem>>, vector<16x16x128xf32>,
    %c0_16 = arith.constant 0 : index
    %c1_17 = arith.constant 1 : index
    %c0_18 = arith.constant 0 : index
    %c0_19 = arith.constant 0 : index
    %9 = vector.load %arg1[%c0_16, %c1_17, %c0_18, %c0_19] : memref<1x18x18x128xf32, #tpu.memory_space<vmem>>, vector<1x16x16x128xf32>
    %10 = vector.shape_cast %9 : vector<1x16x16x128xf32> to vector<16x16x128xf32>
    %c0_20 = arith.constant 0 : index
    %c0_21 = arith.constant 0 : index
    %c384 = arith.constant 384 : index
    %11 = vector.load %arg6[%c0_20, %c0_21, %c384] : memref<16x16x1152xf32, #tpu.memory_space<vmem>>, vector<16x16x128xf32>
    tpu.vector_store %arg6[%c0_20, %c0_21, %c384], %10 {strides = array<i32>} : memref<16x16x1152xf32, #tpu.memory_space<vmem>>, vector<16x16x128xf32>,
    %c0_22 = arith.constant 0 : index
    %c1_23 = arith.constant 1 : index
    %c1_24 = arith.constant 1 : index
    %c0_25 = arith.constant 0 : index
    %12 = vector.load %arg1[%c0_22, %c1_23, %c1_24, %c0_25] : memref<1x18x18x128xf32, #tpu.memory_space<vmem>>, vector<1x16x16x128xf32>
    %13 = vector.shape_cast %12 : vector<1x16x16x128xf32> to vector<16x16x128xf32>
    %c0_26 = arith.constant 0 : index
    %c0_27 = arith.constant 0 : index
    %c512 = arith.constant 512 : index
    %14 = vector.load %arg6[%c0_26, %c0_27, %c512] : memref<16x16x1152xf32, #tpu.memory_space<vmem>>, vector<16x16x128xf32>
    tpu.vector_store %arg6[%c0_26, %c0_27, %c512], %13 {strides = array<i32>} : memref<16x16x1152xf32, #tpu.memory_space<vmem>>, vector<16x16x128xf32>,
    %c0_28 = arith.constant 0 : index
    %c1_29 = arith.constant 1 : index
    %c2_30 = arith.constant 2 : index
    %c0_31 = arith.constant 0 : index
    %15 = vector.load %arg1[%c0_28, %c1_29, %c2_30, %c0_31] : memref<1x18x18x128xf32, #tpu.memory_space<vmem>>, vector<1x16x16x128xf32>
    %16 = vector.shape_cast %15 : vector<1x16x16x128xf32> to vector<16x16x128xf32>
    %c0_32 = arith.constant 0 : index
    %c0_33 = arith.constant 0 : index
    %c640 = arith.constant 640 : index
    %17 = vector.load %arg6[%c0_32, %c0_33, %c640] : memref<16x16x1152xf32, #tpu.memory_space<vmem>>, vector<16x16x128xf32>
    tpu.vector_store %arg6[%c0_32, %c0_33, %c640], %16 {strides = array<i32>} : memref<16x16x1152xf32, #tpu.memory_space<vmem>>, vector<16x16x128xf32>,
    %c0_34 = arith.constant 0 : index
    %c2_35 = arith.constant 2 : index
    %c0_36 = arith.constant 0 : index
    %c0_37 = arith.constant 0 : index
    %18 = vector.load %arg1[%c0_34, %c2_35, %c0_36, %c0_37] : memref<1x18x18x128xf32, #tpu.memory_space<vmem>>, vector<1x16x16x128xf32>
    %19 = vector.shape_cast %18 : vector<1x16x16x128xf32> to vector<16x16x128xf32>
    %c0_38 = arith.constant 0 : index
    %c0_39 = arith.constant 0 : index
    %c768 = arith.constant 768 : index
    %20 = vector.load %arg6[%c0_38, %c0_39, %c768] : memref<16x16x1152xf32, #tpu.memory_space<vmem>>, vector<16x16x128xf32>
    tpu.vector_store %arg6[%c0_38, %c0_39, %c768], %19 {strides = array<i32>} : memref<16x16x1152xf32, #tpu.memory_space<vmem>>, vector<16x16x128xf32>,
    %c0_40 = arith.constant 0 : index
    %c2_41 = arith.constant 2 : index
    %c1_42 = arith.constant 1 : index
    %c0_43 = arith.constant 0 : index
    %21 = vector.load %arg1[%c0_40, %c2_41, %c1_42, %c0_43] : memref<1x18x18x128xf32, #tpu.memory_space<vmem>>, vector<1x16x16x128xf32>
    %22 = vector.shape_cast %21 : vector<1x16x16x128xf32> to vector<16x16x128xf32>
    %c0_44 = arith.constant 0 : index
    %c0_45 = arith.constant 0 : index
    %c896 = arith.constant 896 : index
    %23 = vector.load %arg6[%c0_44, %c0_45, %c896] : memref<16x16x1152xf32, #tpu.memory_space<vmem>>, vector<16x16x128xf32>
    tpu.vector_store %arg6[%c0_44, %c0_45, %c896], %22 {strides = array<i32>} : memref<16x16x1152xf32, #tpu.memory_space<vmem>>, vector<16x16x128xf32>,
    %c0_46 = arith.constant 0 : index
    %c2_47 = arith.constant 2 : index
    %c2_48 = arith.constant 2 : index
    %c0_49 = arith.constant 0 : index
    %24 = vector.load %arg1[%c0_46, %c2_47, %c2_48, %c0_49] : memref<1x18x18x128xf32, #tpu.memory_space<vmem>>, vector<1x16x16x128xf32>
    %25 = vector.shape_cast %24 : vector<1x16x16x128xf32> to vector<16x16x128xf32>
    %c0_50 = arith.constant 0 : index
    %c0_51 = arith.constant 0 : index
    %c1024 = arith.constant 1024 : index
    %26 = vector.load %arg6[%c0_50, %c0_51, %c1024] : memref<16x16x1152xf32, #tpu.memory_space<vmem>>, vector<16x16x128xf32>
    tpu.vector_store %arg6[%c0_50, %c0_51, %c1024], %25 {strides = array<i32>} : memref<16x16x1152xf32, #tpu.memory_space<vmem>>, vector<16x16x128xf32>,
    %c0_52 = arith.constant 0 : index
    %c0_53 = arith.constant 0 : index
    %c0_54 = arith.constant 0 : index
    %27 = vector.load %arg6[%c0_52, %c0_53, %c0_54] : memref<16x16x1152xf32, #tpu.memory_space<vmem>>, vector<16x16x1152xf32>
    %c0_55 = arith.constant 0 : index
    %c0_56 = arith.constant 0 : index
    %28 = vector.load %arg2[%c0_55, %c0_56] : memref<1152x128xf32, #tpu.memory_space<vmem>>, vector<1152x128xf32>
    %cst = arith.constant dense<0.000000e+00> : vector<16x16x128xf32>
    %29 = tpu.matmul %27, %28, %cst {dimension_numbers = #tpu.dot_dimension_numbers<[2], [0], [0, 1], [1], [0, 0, 0, 1, 1, 1], [], []>} : vector<16x16x1152xf32>, vector<1152x128xf32>, vector<16x16x128xf32> -> vector<16x16x128xf32>
    %c0_57 = arith.constant 0 : index
    %c0_58 = arith.constant 0 : index
    %30 = vector.load %arg3[%c0_57, %c0_58] : memref<1x128xf32, #tpu.memory_space<vmem>>, vector<1x128xf32>
    %31 = vector.shape_cast %30 : vector<1x128xf32> to vector<128xf32>
    %32 = vector.shape_cast %31 : vector<128xf32> to vector<1x1x128xf32>
    %33 = vector.broadcast %32 : vector<1x1x128xf32> to vector<16x16x128xf32>
    %34 = arith.addf %29, %33 : vector<16x16x128xf32>
    %cst_59 = arith.constant 0.000000e+00 : f32
    %35 = vector.broadcast %cst_59 : f32 to vector<16x16x128xf32>
    %36 = arith.maximumf %34, %35 : vector<16x16x128xf32>
    %37 = vector.shape_cast %36 : vector<16x16x128xf32> to vector<256x128xf32>
    %c0_60 = arith.constant 0 : index
    %c0_61 = arith.constant 0 : index
    %c0_62 = arith.constant 0 : index
    %38 = vector.load %arg4[%c0_60, %c0_61, %c0_62] : memref<4x64x256xf32, #tpu.memory_space<vmem>>, vector<1x64x256xf32>
    %39 = vector.shape_cast %38 : vector<1x64x256xf32> to vector<64x256xf32>
    %cst_63 = arith.constant dense<0.000000e+00> : vector<64x128xf32>
    %40 = tpu.matmul %39, %37, %cst_63 {dimension_numbers = #tpu.dot_dimension_numbers<[1], [0], [0], [1], [0, 0, 1, 1], [], []>} : vector<64x256xf32>, vector<256x128xf32>, vector<64x128xf32> -> vector<64x128xf32>
    %c1_64 = arith.constant 1 : index
    %c0_65 = arith.constant 0 : index
    %c0_66 = arith.constant 0 : index
    %41 = vector.load %arg4[%c1_64, %c0_65, %c0_66] : memref<4x64x256xf32, #tpu.memory_space<vmem>>, vector<1x64x256xf32>
    %42 = vector.shape_cast %41 : vector<1x64x256xf32> to vector<64x256xf32>
    %cst_67 = arith.constant dense<0.000000e+00> : vector<64x128xf32>
    %43 = tpu.matmul %42, %37, %cst_67 {dimension_numbers = #tpu.dot_dimension_numbers<[1], [0], [0], [1], [0, 0, 1, 1], [], []>} : vector<64x256xf32>, vector<256x128xf32>, vector<64x128xf32> -> vector<64x128xf32>
    %44 = arith.maximumf %40, %43 : vector<64x128xf32>
    %c2_68 = arith.constant 2 : index
    %c0_69 = arith.constant 0 : index
    %c0_70 = arith.constant 0 : index
    %45 = vector.load %arg4[%c2_68, %c0_69, %c0_70] : memref<4x64x256xf32, #tpu.memory_space<vmem>>, vector<1x64x256xf32>
    %46 = vector.shape_cast %45 : vector<1x64x256xf32> to vector<64x256xf32>
    %cst_71 = arith.constant dense<0.000000e+00> : vector<64x128xf32>
    %47 = tpu.matmul %46, %37, %cst_71 {dimension_numbers = #tpu.dot_dimension_numbers<[1], [0], [0], [1], [0, 0, 1, 1], [], []>} : vector<64x256xf32>, vector<256x128xf32>, vector<64x128xf32> -> vector<64x128xf32>
    %48 = arith.maximumf %44, %47 : vector<64x128xf32>
    %c3 = arith.constant 3 : index
    %c0_72 = arith.constant 0 : index
    %c0_73 = arith.constant 0 : index
    %49 = vector.load %arg4[%c3, %c0_72, %c0_73] : memref<4x64x256xf32, #tpu.memory_space<vmem>>, vector<1x64x256xf32>
    %50 = vector.shape_cast %49 : vector<1x64x256xf32> to vector<64x256xf32>
    %cst_74 = arith.constant dense<0.000000e+00> : vector<64x128xf32>
    %51 = tpu.matmul %50, %37, %cst_74 {dimension_numbers = #tpu.dot_dimension_numbers<[1], [0], [0], [1], [0, 0, 1, 1], [], []>} : vector<64x256xf32>, vector<256x128xf32>, vector<64x128xf32> -> vector<64x128xf32>
    %52 = arith.maximumf %48, %51 : vector<64x128xf32>
    %c0_75 = arith.constant 0 : index
    %c0_76 = arith.constant 0 : index
    %c0_77 = arith.constant 0 : index
    %53 = vector.load %arg5[%c0_75, %c0_76, %c0_77] : memref<1x64x128xf32, #tpu.memory_space<vmem>>, vector<1x64x128xf32>
    %54 = vector.shape_cast %53 : vector<1x64x128xf32> to vector<64x128xf32>
    %55 = vector.shape_cast %52 : vector<64x128xf32> to vector<1x64x128xf32>
    tpu.vector_store %arg5[%c0_75, %c0_76, %c0_77], %55 {strides = array<i32>} : memref<1x64x128xf32, #tpu.memory_space<vmem>>, vector<1x64x128xf32>,
    return
  }
  func.func @transform_0(%arg0: i32) -> (i32, i32, i32, i32) {
    %c0_i32 = arith.constant 0 : i32
    %c0_i32_0 = arith.constant 0 : i32
    %c0_i32_1 = arith.constant 0 : i32
    %c0_i32_2 = arith.constant 0 : i32
    return %arg0, %c0_i32, %c0_i32_0, %c0_i32_1 : i32, i32, i32, i32
  }
  func.func @transform_1(%arg0: i32) -> (i32, i32) {
    %c0_i32 = arith.constant 0 : i32
    %c0_i32_0 = arith.constant 0 : i32
    %c0_i32_1 = arith.constant 0 : i32
    return %c0_i32, %c0_i32_0 : i32, i32
  }
  func.func @transform_2(%arg0: i32) -> (i32, i32) {
    %c0_i32 = arith.constant 0 : i32
    %c0_i32_0 = arith.constant 0 : i32
    %c0_i32_1 = arith.constant 0 : i32
    return %c0_i32, %c0_i32_0 : i32, i32
  }
  func.func @transform_3(%arg0: i32) -> (i32, i32, i32) {
    %c0_i32 = arith.constant 0 : i32
    %c0_i32_0 = arith.constant 0 : i32
    %c0_i32_1 = arith.constant 0 : i32
    %c0_i32_2 = arith.constant 0 : i32
    return %c0_i32, %c0_i32_0, %c0_i32_1 : i32, i32, i32
  }
  func.func @transform_4(%arg0: i32) -> (i32, i32, i32) {
    %c0_i32 = arith.constant 0 : i32
    %c0_i32_0 = arith.constant 0 : i32
    %c0_i32_1 = arith.constant 0 : i32
    return %arg0, %c0_i32, %c0_i32_0 : i32, i32, i32
  }
}

</mosaic_0001>

<bundles_post_ra>
// kernel: seq_conv_relu_mp.2
= control target key start
LH: loop header
LB: loop body
LE: loop exit
PB: predicated region body
PF: predicated region fallthrough
CT: control target
= control target key end

     0   :  { %s2610_s12 = smov 0   ;;  %s3717_s0 = inlined_call_operand.vmem [shape: f32[2,18,18,128], index: 0, kind: input, shape index: {}]   ;;  %s3718_s1 = inlined_call_operand.vmem [shape: f32[1152,128], index: 1, kind: input, shape index: {}]   ;;  %s3719_s2 = inlined_call_operand.vmem [shape: f32[1,128], index: 2, kind: input, shape index: {}]   ;;  %s3720_s3 = inlined_call_operand.vmem [shape: f32[2,16,16,128], index: 3, kind: output, shape index: {}]  }
   0x1 LB: > { %s2321_s13 = sadd.s32 4294967295, %s2588_s12   ;;  %p2325_p0 = scmp.ge.s32.totalorder %s2588_s12, 1  ;;  %s2588_s12 = sphi %s2610_s12, %s13_s12  }
   0x2   : > { %p137_p1 = scmp.lt.s32.totalorder %s2588_s12, 3 }
   0x4   : > { %p138_p2 = pnand %p2325_p0, %p137_p1 }
   0x6   : > { %141 = sbr.rel (%p138_p2) target bundleno = 752 (0x2f0), region = 32 }
   0xb   : > { %v1052_v0 = vld [vmem:[%s3718_s1 + $0x78] sm:$0xff]  ;;  %v1051_v1 = vld [vmem:[%s3718_s1 + $0x70] sm:$0xff]  ;;  %v1050_v2 = vld [vmem:[%s3718_s1 + $0x68] sm:$0xff]  ;;  %p161_p3 = scmp.lt.s32.totalorder %s2321_s13, 1 }
   0xc   : > { %2524 = vmatpush.msra.mxu1 %v1052_v0  ;;  %2525 = vmatpush.msra.mxu2 %v1052_v0  ;;  %v1049_v3 = vld [vmem:[%s3718_s1 + $0x60] sm:$0xff]  ;;  %v1048_v4 = vld [vmem:[%s3718_s1 + $0x58] sm:$0xff]  ;;  %v1047_v5 = vld [vmem:[%s3718_s1 + $0x50] sm:$0xff] }
   0xd   : > { %2526 = vmatpush.msra.mxu3 %v1052_v0  ;;  %1185 = vmatpush.msra.mxu0 %v1052_v0  ;;  %v1046_v6 = vld [vmem:[%s3718_s1 + $0x48] sm:$0xff]  ;;  %v1045_v7 = vld [vmem:[%s3718_s1 + $0x40] sm:$0xff]  ;;  %v1044_v8 = vld [vmem:[%s3718_s1 + $0x38] sm:$0xff]  ;;  %s3753_s13 = smov (!%p161_p3, %s2321_s13), 1 }
   0xe   : > { %2527 = vmatpush.msra.mxu1 %v1051_v1  ;;  %2528 = vmatpush.msra.mxu2 %v1051_v1  ;;  %v1043_v9 = vld [vmem:[%s3718_s1 + $0x30] sm:$0xff]  ;;  %v1042_v10 = vld [vmem:[%s3718_s1 + $0x28] sm:$0xff]  ;;  %v1041_v11 = vld [vmem:[%s3718_s1 + $0x20] sm:$0xff]  ;;  %s2572_s15 = smul.u32 432, %s3753_s13  ;;  %s2523_s18 = sshll.u32 %s3753_s13, 8 }
   0xf   : > { %2529 = vmatpush.msra.mxu3 %v1051_v1  ;;  %1186 = vmatpush.msra.mxu0 %v1051_v1  ;;  %v1040_v12 = vld [vmem:[%s3718_s1 + $0x18] sm:$0xff]  ;;  %v1039_v13 = vld [vmem:[%s3718_s1 + $0x10] sm:$0xff]  ;;  %v1038_v14 = vld [vmem:[%s3718_s1 + $0x8] sm:$0xff]  ;;  %s3596_s21 = scalar_lea.vmem %s3720_s3, %s2523_s18 }
  0x10   : > { %2530 = vmatpush.msra.mxu1 %v1050_v2  ;;  %2531 = vmatpush.msra.mxu2 %v1050_v2  ;;  %s2673_s22 = scalar_lea.vmem %s3717_s0, %s2572_s15  ;;  %v1037_v15 = vld [vmem:[%s3718_s1] sm:$0xff]  ;;  %v1084_v18 = vld [vmem:[%s3718_s1 + $0x178] sm:$0xff]  ;;  %v1083_v22 = vld [vmem:[%s3718_s1 + $0x170] sm:$0xff] }
  0x11   : > { %2532 = vmatpush.msra.mxu3 %v1050_v2  ;;  %1187 = vmatpush.msra.mxu0 %v1050_v2  ;;  %v2679_v16 = vld [vmem:[%s2673_s22 + $0x60] sm:$0xff]  ;;  %v1068_v20 = vld [vmem:[%s3718_s1 + $0xf8] sm:$0xff]  ;;  %v1067_v23 = vld [vmem:[%s3718_s1 + $0xf0] sm:$0xff] }
  0x12   : > { %2533 = vmatpush.msra.mxu1 %v1049_v3  ;;  %2534 = vmatpush.msra.mxu2 %v1049_v3  ;;  %v2682_v17 = vld [vmem:[%s2673_s22 + $0xc0] sm:$0xff]  ;;  %v1100_v21 = vld [vmem:[%s3718_s1 + $0x1f8] sm:$0xff]  ;;  %v1099_v24 = vld [vmem:[%s3718_s1 + $0x1f0] sm:$0xff] }
  0x13   : > { %2535 = vmatpush.msra.mxu3 %v1049_v3  ;;  %1188 = vmatpush.msra.mxu0 %v1049_v3  ;;  %v195_v19 = vld [vmem:[%s2673_s22 + $0x120] sm:$0xff]  ;;  %v1082_v25 = vld [vmem:[%s3718_s1 + $0x168] sm:$0xff]  ;;  %v1116_v29 = vld [vmem:[%s3718_s1 + $0x278] sm:$0xff] }
  0x14   : > { %2536 = vmatpush.msra.mxu1 %v1048_v4  ;;  %2537 = vmatpush.msra.mxu2 %v1048_v4  ;;  %v171_v26 = vld [vmem:[%s2673_s22] sm:$0xff]  ;;  %v1066_v27 = vld [vmem:[%s3718_s1 + $0xe8] sm:$0xff]  ;;  %v1115_v35 = vld [vmem:[%s3718_s1 + $0x270] sm:$0xff] }
  0x15   : > { %2538 = vmatpush.msra.mxu3 %v1048_v4  ;;  %1189 = vmatpush.msra.mxu0 %v1048_v4  ;;  %v1098_v28 = vld [vmem:[%s3718_s1 + $0x1e8] sm:$0xff]  ;;  %v1081_v32 = vld [vmem:[%s3718_s1 + $0x160] sm:$0xff]  ;;  %v1080_v37 = vld [vmem:[%s3718_s1 + $0x158] sm:$0xff] }
  0x16   : > { %2539 = vmatpush.msra.mxu1 %v1047_v5  ;;  %2540 = vmatpush.msra.mxu2 %v1047_v5  ;;  %v2719_v30 = vld [vmem:[%s2673_s22 + $0x68] sm:$0xff]  ;;  %v1097_v33 = vld [vmem:[%s3718_s1 + $0x1e0] sm:$0xff]  ;;  %v1096_v38 = vld [vmem:[%s3718_s1 + $0x1d8] sm:$0xff] }
  0x17   : > { %2541 = vmatpush.msra.mxu3 %v1047_v5  ;;  %1190 = vmatpush.msra.mxu0 %v1047_v5  ;;  %v2722_v31 = vld [vmem:[%s2673_s22 + $0xc8] sm:$0xff]  ;;  %v1065_v36 = vld [vmem:[%s3718_s1 + $0xe0] sm:$0xff]  ;;  %v1064_v40 = vld [vmem:[%s3718_s1 + $0xd8] sm:$0xff] }
  0x18   : > { %2542 = vmatpush.msra.mxu1 %v1046_v6  ;;  %2543 = vmatpush.msra.mxu2 %v1046_v6  ;;  %v196_v34 = vld [vmem:[%s2673_s22 + $0x128] sm:$0xff]  ;;  %v1079_v41 = vld [vmem:[%s3718_s1 + $0x150] sm:$0xff]  ;;  %v1113_v44 = vld [vmem:[%s3718_s1 + $0x260] sm:$0xff] }
  0x19   : > { %2544 = vmatpush.msra.mxu3 %v1046_v6  ;;  %1191 = vmatpush.msra.mxu0 %v1046_v6  ;;  %v1114_v39 = vld [vmem:[%s3718_s1 + $0x268] sm:$0xff]  ;;  %v1095_v43 = vld [vmem:[%s3718_s1 + $0x1d0] sm:$0xff]  ;;  %v2765_v46 = vld [vmem:[%s2673_s22 + $0x78] sm:$0xff] }
  0x1a   : > { %2545 = vmatpush.msra.mxu1 %v1045_v7  ;;  %2546 = vmatpush.msra.mxu2 %v1045_v7  ;;  %v172_v42 = vld [vmem:[%s2673_s22 + $0x8] sm:$0xff]  ;;  %v1063_v45 = vld [vmem:[%s3718_s1 + $0xd0] sm:$0xff]  ;;  %v2768_v47 = vld [vmem:[%s2673_s22 + $0xd8] sm:$0xff] }
  0x1b   : > { %2547 = vmatpush.msra.mxu3 %v1045_v7  ;;  %1192 = vmatpush.msra.mxu0 %v1045_v7  ;;  %v1078_v48 = vld [vmem:[%s3718_s1 + $0x148] sm:$0xff]  ;;  %v197_v50 = vld [vmem:[%s2673_s22 + $0x138] sm:$0xff]  ;;  %v1077_v53 = vld [vmem:[%s3718_s1 + $0x140] sm:$0xff] }
  0x1c   : > { %2548 = vmatpush.msra.mxu1 %v1044_v8  ;;  %2549 = vmatpush.msra.mxu2 %v1044_v8  ;;  %v1094_v49 = vld [vmem:[%s3718_s1 + $0x1c8] sm:$0xff]  ;;  %v1112_v51 = vld [vmem:[%s3718_s1 + $0x258] sm:$0xff]  ;;  %v1093_v54 = vld [vmem:[%s3718_s1 + $0x1c0] sm:$0xff] }
  0x1d   : > { %2550 = vmatpush.msra.mxu3 %v1044_v8  ;;  %1193 = vmatpush.msra.mxu0 %v1044_v8  ;;  %v1062_v52 = vld [vmem:[%s3718_s1 + $0xc8] sm:$0xff]  ;;  %v1111_v55 = vld [vmem:[%s3718_s1 + $0x250] sm:$0xff]  ;;  %v1061_v56 = vld [vmem:[%s3718_s1 + $0xc0] sm:$0xff] }
  0x1e   : > { %2551 = vmatpush.msra.mxu1 %v1043_v9  ;;  %2552 = vmatpush.msra.mxu2 %v1043_v9  ;;  %v1076_v57 = vld [vmem:[%s3718_s1 + $0x138] sm:$0xff]  ;;  %v1110_v60 = vld [vmem:[%s3718_s1 + $0x248] sm:$0xff]  ;;  %v2813_v62 = vld [vmem:[%s2673_s22 + $0x80] sm:$0xff] }
  0x1f   : > { %2553 = vmatpush.msra.mxu3 %v1043_v9  ;;  %1194 = vmatpush.msra.mxu0 %v1043_v9  ;;  %v2801_v58 = vld [vmem:[%s2673_s22 + $0x18] sm:$0xff]  ;;  %v2816_v63 = vld [vmem:[%s2673_s22 + $0xe0] sm:$0xff]  ;;  %v1075_v0 = vld [vmem:[%s3718_s1 + $0x130] sm:$0xff] }
  0x20   : > { %2554 = vmatpush.msra.mxu1 %v1042_v10  ;;  %2555 = vmatpush.msra.mxu2 %v1042_v10  ;;  %v1092_v59 = vld [vmem:[%s3718_s1 + $0x1b8] sm:$0xff]  ;;  %v1091_v1 = vld [vmem:[%s3718_s1 + $0x1b0] sm:$0xff]  ;;  %v198_v2 = vld [vmem:[%s2673_s22 + $0x140] sm:$0xff] }
  0x21   : > { %2556 = vmatpush.msra.mxu3 %v1042_v10  ;;  %1195 = vmatpush.msra.mxu0 %v1042_v10  ;;  %v1060_v61 = vld [vmem:[%s3718_s1 + $0xb8] sm:$0xff]  ;;  %v1109_v3 = vld [vmem:[%s3718_s1 + $0x240] sm:$0xff]  ;;  %v1059_v4 = vld [vmem:[%s3718_s1 + $0xb0] sm:$0xff] }
  0x22   : > { %2557 = vmatpush.msra.mxu1 %v1041_v11  ;;  %2558 = vmatpush.msra.mxu2 %v1041_v11  ;;  %v1074_v5 = vld [vmem:[%s3718_s1 + $0x128] sm:$0xff]  ;;  %v1108_v7 = vld [vmem:[%s3718_s1 + $0x238] sm:$0xff]  ;;  %v1073_v9 = vld [vmem:[%s3718_s1 + $0x120] sm:$0xff] }
  0x23   : > { %2559 = vmatpush.msra.mxu3 %v1041_v11  ;;  %1196 = vmatpush.msra.mxu0 %v1041_v11  ;;  %v1090_v6 = vld [vmem:[%s3718_s1 + $0x1a8] sm:$0xff]  ;;  %v2850_v10 = vld [vmem:[%s2673_s22 + $0x20] sm:$0xff] }
  0x24   : > { %2560 = vmatpush.msra.mxu1 %v1040_v12  ;;  %2561 = vmatpush.msra.mxu2 %v1040_v12  ;;  %v1058_v8 = vld [vmem:[%s3718_s1 + $0xa8] sm:$0xff]  ;;  %v1089_v11 = vld [vmem:[%s3718_s1 + $0x1a0] sm:$0xff] }
  0x25   : > { %2562 = vmatpush.msra.mxu3 %v1040_v12  ;;  %1197 = vmatpush.msra.mxu0 %v1040_v12  ;;  %v1107_v12 = vld [vmem:[%s3718_s1 + $0x230] sm:$0xff] }
  0x26   : > { %2563 = vmatpush.msra.mxu1 %v1039_v13  ;;  %2564 = vmatpush.msra.mxu2 %v1039_v13 }
  0x27   : > { %2565 = vmatpush.msra.mxu3 %v1039_v13  ;;  %1198 = vmatpush.msra.mxu0 %v1039_v13  ;;  %v1057_v13 = vld [vmem:[%s3718_s1 + $0xa0] sm:$0xff] }
  0x28   : > { %2566 = vmatpush.msra.mxu1 %v1038_v14  ;;  %2567 = vmatpush.msra.mxu2 %v1038_v14 }
  0x29   : > { %2568 = vmatpush.msra.mxu3 %v1038_v14  ;;  %1199 = vmatpush.msra.mxu0 %v1038_v14  ;;  %v2862_v14 = vld [vmem:[%s2673_s22 + $0x90] sm:$0xff] }
  0x2a   : > { %2569 = vmatpush.msra.mxu1 %v1037_v15  ;;  %2570 = vmatpush.msra.mxu2 %v1037_v15 }
  0x2b   : > { %1225 = vmatmul.f32.vlgmr.msra.gmra.mxu1 %v2679_v16  ;;  %1249 = vmatmul.f32.vlgmr.msra.gmra.mxu2 %v2682_v17 }
  0x2c   : > { %1411 = vmatpush.msrb.mxu2 %v1084_v18  ;;  %2571 = vmatpush.msra.mxu3 %v1037_v15  ;;  %v1072_v18 = vld [vmem:[%s3718_s1 + $0x118] sm:$0xff] }
  0x2d   : > { %1273 = vmatmul.f32.vlgmr.msra.gmra.mxu3 %v195_v19  ;;  %1298 = vmatpush.msrb.mxu1 %v1068_v20  ;;  %v1088_v19 = vld [vmem:[%s3718_s1 + $0x198] sm:$0xff]  ;;  %v199_v20 = vld [vmem:[%s2673_s22 + $0x150] sm:$0xff] }
  0x2e   : > { %1524 = vmatpush.msrb.mxu3 %v1100_v21  ;;  %1412 = vmatpush.msrb.mxu2 %v1083_v22  ;;  %v1106_v21 = vld [vmem:[%s3718_s1 + $0x228] sm:$0xff]  ;;  %v1056_v22 = vld [vmem:[%s3718_s1 + $0x98] sm:$0xff] }
  0x2f   : > { %1299 = vmatpush.msrb.mxu1 %v1067_v23  ;;  %1200 = vmatpush.msra.mxu0 %v1037_v15  ;;  %v2865_v15 = vld [vmem:[%s2673_s22 + $0xf0] sm:$0xff] }
  0x30   : > { %1525 = vmatpush.msrb.mxu3 %v1099_v24  ;;  %1413 = vmatpush.msrb.mxu2 %v1082_v25  ;;  %v1071_v23 = vld [vmem:[%s3718_s1 + $0x110] sm:$0xff]  ;;  %v1105_v25 = vld [vmem:[%s3718_s1 + $0x220] sm:$0xff] }
  0x31   : > { %1201 = vmatmul.f32.vlgmr.msra.gmra.mxu0 %v171_v26  ;;  %1300 = vmatpush.msrb.mxu1 %v1066_v27  ;;  %v1087_v24 = vld [vmem:[%s3718_s1 + $0x190] sm:$0xff]  ;;  %v1070_v27 = vld [vmem:[%s3718_s1 + $0x108] sm:$0xff] }
  0x32   : > { %1526 = vmatpush.msrb.mxu3 %v1098_v28  ;;  %1637 = vmatpush.msrb.mxu0 %v1116_v29  ;;  %v1055_v26 = vld [vmem:[%s3718_s1 + $0x90] sm:$0xff]  ;;  %v1086_v29 = vld [vmem:[%s3718_s1 + $0x188] sm:$0xff] }
  0x33   : > { %1228 = vmatmul.f32.gmra.mxu1 %v2719_v30  ;;  %1252 = vmatmul.f32.gmra.mxu2 %v2722_v31  ;;  %v2899_v28 = vld [vmem:[%s2673_s22 + $0x30] sm:$0xff] }
  0x34   : > { %1414 = vmatpush.msrb.mxu2 %v1081_v32  ;;  %1527 = vmatpush.msrb.mxu3 %v1097_v33  ;;  %v1104_v32 = vld [vmem:[%s3718_s1 + $0x218] sm:$0xff]  ;;  %v1054_v33 = vld [vmem:[%s3718_s1 + $0x88] sm:$0xff] }
  0x35   : > { %1276 = vmatmul.f32.gmra.mxu3 %v196_v34  ;;  %1638 = vmatpush.msrb.mxu0 %v1115_v35  ;;  %v2911_v34 = vld [vmem:[%s2673_s22 + $0x98] sm:$0xff] }
  0x36   : > { %1301 = vmatpush.msrb.mxu1 %v1065_v36  ;;  %1415 = vmatpush.msrb.mxu2 %v1080_v37  ;;  %v2914_v35 = vld [vmem:[%s2673_s22 + $0xf8] sm:$0xff]  ;;  %v1069_v36 = vld [vmem:[%s3718_s1 + $0x100] sm:$0xff] }
  0x37   : > { %1528 = vmatpush.msrb.mxu3 %v1096_v38  ;;  %1639 = vmatpush.msrb.mxu0 %v1114_v39  ;;  %v1085_v37 = vld [vmem:[%s3718_s1 + $0x180] sm:$0xff]  ;;  %v200_v38 = vld [vmem:[%s2673_s22 + $0x158] sm:$0xff]  ;;  %v1103_v39 = vld [vmem:[%s3718_s1 + $0x210] sm:$0xff] }
  0x38   : > { %1302 = vmatpush.msrb.mxu1 %v1064_v40  ;;  %1416 = vmatpush.msrb.mxu2 %v1079_v41  ;;  %v1053_v40 = vld [vmem:[%s3718_s1 + $0x80] sm:$0xff]  ;;  %v1148_v41 = vld [vmem:[%s3718_s1 + $0x378] sm:$0xff] }
  0x39   : > { %1204 = vmatmul.f32.gmra.mxu0 %v172_v42  ;;  %1529 = vmatpush.msrb.mxu3 %v1095_v43  ;;  %v1102_v42 = vld [vmem:[%s3718_s1 + $0x208] sm:$0xff]  ;;  %v1164_v43 = vld [vmem:[%s3718_s1 + $0x3f8] sm:$0xff] }
  0x3a   : > { %1640 = vmatpush.msrb.mxu0 %v1113_v44  ;;  %1303 = vmatpush.msrb.mxu1 %v1063_v45  ;;  %v1132_v44 = vld [vmem:[%s3718_s1 + $0x2f8] sm:$0xff] }
  0x3b   : > { %1231 = vmatmul.f32.gmra.mxu1 %v2765_v46  ;;  %1255 = vmatmul.f32.gmra.mxu2 %v2768_v47  ;;  %v2945_v45 = vld [vmem:[%s2673_s22 + $0x38] sm:$0xff] }
  0x3c   : > { %1417 = vmatpush.msrb.mxu2 %v1078_v48  ;;  %1530 = vmatpush.msrb.mxu3 %v1094_v49  ;;  %v1101_v48 = vld [vmem:[%s3718_s1 + $0x200] sm:$0xff]  ;;  %v2951_v49 = vld [vmem:[%s2673_s22 + $0xa8] sm:$0xff] }
  0x3d   : > { %1279 = vmatmul.f32.gmra.mxu3 %v197_v50  ;;  %1641 = vmatpush.msrb.mxu0 %v1112_v51  ;;  %v2954_v50 = vld [vmem:[%s2673_s22 + $0x108] sm:$0xff]  ;;  %v1180_v51 = vld [vmem:[%s3718_s1 + $0x478] sm:$0xff] }
  0x3e   : > { %1304 = vmatpush.msrb.mxu1 %v1062_v52  ;;  %1418 = vmatpush.msrb.mxu2 %v1077_v53  ;;  %v201_v52 = vld [vmem:[%s2673_s22 + $0x168] sm:$0xff]  ;;  %v1147_v53 = vld [vmem:[%s3718_s1 + $0x370] sm:$0xff] }
  0x3f   : > { %1531 = vmatpush.msrb.mxu3 %v1093_v54  ;;  %1642 = vmatpush.msrb.mxu0 %v1111_v55  ;;  %v1163_v54 = vld [vmem:[%s3718_s1 + $0x3f0] sm:$0xff] }
  0x40   : > { %1305 = vmatpush.msrb.mxu1 %v1061_v56  ;;  %1419 = vmatpush.msrb.mxu2 %v1076_v57  ;;  %v1131_v55 = vld [vmem:[%s3718_s1 + $0x2f0] sm:$0xff]  ;;  %v177_v56 = vld [vmem:[%s2673_s22 + $0x48] sm:$0xff] }
  0x41   : > { %1207 = vmatmul.f32.gmra.mxu0 %v2801_v58  ;;  %1532 = vmatpush.msrb.mxu3 %v1092_v59  ;;  %v2974_v57 = vld [vmem:[%s2673_s22 + $0xb0] sm:$0xff] }
  0x42   : > { %1643 = vmatpush.msrb.mxu0 %v1110_v60  ;;  %1306 = vmatpush.msrb.mxu1 %v1060_v61  ;;  %v2977_v59 = vld [vmem:[%s2673_s22 + $0x110] sm:$0xff] }
  0x43   : > { %1234 = vmatmul.f32.gmra.mxu1 %v2813_v62  ;;  %1258 = vmatmul.f32.gmra.mxu2 %v2816_v63  ;;  %v202_v60 = vld [vmem:[%s2673_s22 + $0x170] sm:$0xff] }
  0x44   : > { %1420 = vmatpush.msrb.mxu2 %v1075_v0  ;;  %1533 = vmatpush.msrb.mxu3 %v1091_v1  ;;  %v1179_v61 = vld [vmem:[%s3718_s1 + $0x470] sm:$0xff]  ;;  %v235_v1 = vld [vmem:[%s2673_s22 + $0x1] sm:$0xff] }
  0x45   : > { %1282 = vmatmul.f32.gmra.mxu3 %v198_v2  ;;  %1644 = vmatpush.msrb.mxu0 %v1109_v3  ;;  %v178_v0 = vld [vmem:[%s2673_s22 + $0x50] sm:$0xff]  ;;  %v299_v2 = vld [vmem:[%s2673_s22 + $0x2] sm:$0xff] }
  0x46   : > { %1307 = vmatpush.msrb.mxu1 %v1059_v4  ;;  %1421 = vmatpush.msrb.mxu2 %v1074_v5  ;;  %v1146_v3 = vld [vmem:[%s3718_s1 + $0x368] sm:$0xff] }
  0x47   : > { %1534 = vmatpush.msrb.mxu3 %v1090_v6  ;;  %1645 = vmatpush.msrb.mxu0 %v1108_v7  ;;  %v1162_v4 = vld [vmem:[%s3718_s1 + $0x3e8] sm:$0xff]  ;;  %v2361_v6 = vld [vmem:[%s2673_s22 + $0x19] sm:$0xff] }
  0x48   : > { %1308 = vmatpush.msrb.mxu1 %v1058_v8  ;;  %1422 = vmatpush.msrb.mxu2 %v1073_v9  ;;  %v1130_v5 = vld [vmem:[%s3718_s1 + $0x2e8] sm:$0xff] }
  0x49   : > { %1210 = vmatmul.f32.gmra.mxu0 %v2850_v10  ;;  %1535 = vmatpush.msrb.mxu3 %v1089_v11  ;;  %v236_v7 = vld [vmem:[%s2673_s22 + $0x9] sm:$0xff]  ;;  %v2362_v9 = vld [vmem:[%s2673_s22 + $0x21] sm:$0xff] }
  0x4a   : > { %1646 = vmatpush.msrb.mxu0 %v1107_v12  ;;  %1309 = vmatpush.msrb.mxu1 %v1057_v13  ;;  %v300_v8 = vld [vmem:[%s2673_s22 + $0xa] sm:$0xff]  ;;  %v301_v11 = vld [vmem:[%s2673_s22 + $0x1a] sm:$0xff] }
  0x4b   : > { %1237 = vmatmul.f32.gmra.mxu1 %v2862_v14  ;;  %1261 = vmatmul.f32.gmra.mxu2 %v2865_v15  ;;  %v1145_v12 = vld [vmem:[%s3718_s1 + $0x360] sm:$0xff] }
  0x4c   : > { %1423 = vmatpush.msrb.mxu2 %v1072_v18  ;;  %1536 = vmatpush.msrb.mxu3 %v1088_v19  ;;  %v1129_v13 = vld [vmem:[%s3718_s1 + $0x2e0] sm:$0xff]  ;;  %v2363_v18 = vld [vmem:[%s2673_s22 + $0x31] sm:$0xff] }
  0x4d   : > { %1285 = vmatmul.f32.gmra.mxu3 %v199_v20  ;;  %1647 = vmatpush.msrb.mxu0 %v1106_v21  ;;  %v302_v19 = vld [vmem:[%s2673_s22 + $0x22] sm:$0xff]  ;;  %v2364_v21 = vld [vmem:[%s2673_s22 + $0x39] sm:$0xff] }
  0x4e   : > { %1310 = vmatpush.msrb.mxu1 %v1056_v22  ;;  %1424 = vmatpush.msrb.mxu2 %v1071_v23  ;;  %v1177_v20 = vld [vmem:[%s3718_s1 + $0x460] sm:$0xff]  ;;  %v303_v22 = vld [vmem:[%s2673_s22 + $0x32] sm:$0xff] }
  0x4f   : > { %1537 = vmatpush.msrb.mxu3 %v1087_v24  ;;  %1648 = vmatpush.msrb.mxu0 %v1105_v25  ;;  %v1144_v23 = vld [vmem:[%s3718_s1 + $0x358] sm:$0xff]  ;;  %v2365_v25 = vld [vmem:[%s2673_s22 + $0x49] sm:$0xff] }
  0x50   : > { %1311 = vmatpush.msrb.mxu1 %v1055_v26  ;;  %1425 = vmatpush.msrb.mxu2 %v1070_v27  ;;  %v1160_v24 = vld [vmem:[%s3718_s1 + $0x3d8] sm:$0xff] }
  0x51   : > { %1213 = vmatmul.f32.gmra.mxu0 %v2899_v28  ;;  %1538 = vmatpush.msrb.mxu3 %v1086_v29  ;;  %v1128_v26 = vld [vmem:[%s3718_s1 + $0x2d8] sm:$0xff] }
  0x52   : > { %1649 = vmatpush.msrb.mxu0 %v1104_v32  ;;  %1312 = vmatpush.msrb.mxu1 %v1054_v33  ;;  %v304_v27 = vld [vmem:[%s2673_s22 + $0x3a] sm:$0xff]  ;;  %v2366_v29 = vld [vmem:[%s2673_s22 + $0x51] sm:$0xff] }
  0x53   : > { %1240 = vmatmul.f32.gmra.mxu1 %v2911_v34  ;;  %1264 = vmatmul.f32.gmra.mxu2 %v2914_v35  ;;  %v305_v32 = vld [vmem:[%s2673_s22 + $0x4a] sm:$0xff] }
  0x54   : > { %1426 = vmatpush.msrb.mxu2 %v1069_v36  ;;  %1539 = vmatpush.msrb.mxu3 %v1085_v37  ;;  %v1143_v33 = vld [vmem:[%s3718_s1 + $0x350] sm:$0xff]  ;;  %v2367_v37 = vld [vmem:[%s2673_s22 + $0x61] sm:$0xff] }
  0x55   : > { %1288 = vmatmul.f32.gmra.mxu3 %v200_v38  ;;  %1650 = vmatpush.msrb.mxu0 %v1103_v39  ;;  %v1159_v36 = vld [vmem:[%s3718_s1 + $0x3d0] sm:$0xff] }
  0x56   : > { %1313 = vmatpush.msrb.mxu1 %v1053_v40  ;;  %1863 = vmatpush.msra.mxu2 %v1148_v41  ;;  %v1127_v38 = vld [vmem:[%s3718_s1 + $0x2d0] sm:$0xff] }
  0x57   : > { %1651 = vmatpush.msrb.mxu0 %v1102_v42  ;;  %1976 = vmatpush.msra.mxu3 %v1164_v43  ;;  %v306_v39 = vld [vmem:[%s2673_s22 + $0x52] sm:$0xff]  ;;  %v2368_v40 = vld [vmem:[%s2673_s22 + $0x69] sm:$0xff] }
  0x58   : > { %1750 = vmatpush.msra.mxu1 %v1132_v44  ;;  %1864 = vmatpush.msra.mxu2 %v1147_v53  ;;  %v307_v42 = vld [vmem:[%s2673_s22 + $0x62] sm:$0xff] }
  0x59   : > { %1216 = vmatmul.f32.gmra.mxu0 %v2945_v45  ;;  %1977 = vmatpush.msra.mxu3 %v1163_v54  ;;  %v1142_v43 = vld [vmem:[%s3718_s1 + $0x348] sm:$0xff] }
  0x5a   : > { %1652 = vmatpush.msrb.mxu0 %v1101_v48  ;;  %1751 = vmatpush.msra.mxu1 %v1131_v55  ;;  %v1158_v44 = vld [vmem:[%s3718_s1 + $0x3c8] sm:$0xff] }
  0x5b   : > { %1243 = vmatmul.f32.gmra.mxu1 %v2951_v49  ;;  %1267 = vmatmul.f32.gmra.mxu2 %v2954_v50  ;;  %v1126_v53 = vld [vmem:[%s3718_s1 + $0x2c8] sm:$0xff] }
  0x5c   : > { %2089 = vmatpush.msra.mxu0 %v1180_v51  ;;  %1865 = vmatpush.msra.mxu2 %v1146_v3  ;;  %v2369_v51 = vld [vmem:[%s2673_s22 + $0x79] sm:$0xff]  ;;  %v308_v55 = vld [vmem:[%s2673_s22 + $0x6a] sm:$0xff] }
  0x5d   : > { %1291 = vmatmul.f32.gmra.mxu3 %v201_v52  ;;  %1752 = vmatpush.msra.mxu1 %v1130_v5  ;;  %v309_v5 = vld [vmem:[%s2673_s22 + $0x7a] sm:$0xff] }
  0x5e   : > { %2090 = vmatpush.msra.mxu0 %v1179_v61  ;;  %1978 = vmatpush.msra.mxu3 %v1162_v4 }
  0x5f   : > { %1866 = vmatpush.msra.mxu2 %v1145_v12  ;;  %1753 = vmatpush.msra.mxu1 %v1129_v13  ;;  %v1125_v12 = vld [vmem:[%s3718_s1 + $0x2c0] sm:$0xff] }
  0x60   : > { %v310_v13 = vld [vmem:[%s2673_s22 + $0x82] sm:$0xff] }
  0x61   : > { %1219 = vmatmul.f32.gmra.mxu0 %v177_v56  ;;  %1867 = vmatpush.msra.mxu2 %v1144_v23 }
  0x62   : > { %1754 = vmatpush.msra.mxu1 %v1128_v26  ;;  %v311_v26 = vld [vmem:[%s2673_s22 + $0x92] sm:$0xff] }
  0x63   : > { %1246 = vmatmul.f32.gmra.mxu1 %v2974_v57  ;;  %1270 = vmatmul.f32.gmra.mxu2 %v2977_v59 }
  0x64   : > { %1868 = vmatpush.msra.mxu2 %v1143_v33  ;;  %1755 = vmatpush.msra.mxu1 %v1127_v38  ;;  %v2373_v33 = vld [vmem:[%s2673_s22 + $0xa9] sm:$0xff] }
  0x65   : > { %1294 = vmatmul.f32.gmra.mxu3 %v202_v60  ;;  %v1174_v60 = vld [vmem:[%s3718_s1 + $0x448] sm:$0xff] }
  0x66   : > { %1869 = vmatpush.msra.mxu2 %v1142_v43  ;;  %1756 = vmatpush.msra.mxu1 %v1126_v53 }
  0x68   : > { %1757 = vmatpush.msra.mxu1 %v1125_v12  ;;  %v1171_v12 = vld [vmem:[%s3718_s1 + $0x430] sm:$0xff] }
  0x69   : > { %1222 = vmatmul.f32.gmra.mxu0 %v178_v0 }
  0x6b   : > { %1314 = vmatmul.f32.vlgmr.msrb.gmra.mxu1 %v235_v1  ;;  %1427 = vmatmul.f32.vlgmr.msrb.gmra.mxu2 %v299_v2  ;;  %v2370_v1 = vld [vmem:[%s2673_s22 + $0x81] sm:$0xff] }
  0x6d   : > { %1540 = vmatmul.f32.vlgmr.msrb.gmra.mxu3 %v2801_v58  ;;  %v1178_v58 = vld [vmem:[%s3718_s1 + $0x468] sm:$0xff] }
  0x6e   : > { %2091 = vmatpush.msra.mxu0 %v1178_v58 }
  0x70   : > { %2092 = vmatpush.msra.mxu0 %v1177_v20 }
  0x71   : > { %1653 = vmatmul.f32.vlgmr.msrb.gmra.mxu0 %v2361_v6 }
  0x73   : > { %1317 = vmatmul.f32.gmra.mxu1 %v236_v7  ;;  %1430 = vmatmul.f32.gmra.mxu2 %v300_v8  ;;  %v1157_v7 = vld [vmem:[%s3718_s1 + $0x3c0] sm:$0xff] }
  0x75   : > { %1543 = vmatmul.f32.gmra.mxu3 %v2850_v10  ;;  %v1161_v10 = vld [vmem:[%s3718_s1 + $0x3e0] sm:$0xff] }
  0x76   : > { %1979 = vmatpush.msra.mxu3 %v1161_v10 }
  0x78   : > { %1980 = vmatpush.msra.mxu3 %v1160_v24 }
  0x79   : > { %1656 = vmatmul.f32.gmra.mxu0 %v2362_v9 }
  0x7a   : > { %1981 = vmatpush.msra.mxu3 %v1159_v36 }
  0x7b   : > { %1320 = vmatmul.f32.gmra.mxu1 %v2361_v6  ;;  %1433 = vmatmul.f32.gmra.mxu2 %v301_v11 }
  0x7c   : > { %1982 = vmatpush.msra.mxu3 %v1158_v44  ;;  %v2374_v44 = vld [vmem:[%s2673_s22 + $0xb1] sm:$0xff] }
  0x7d   : > { %1546 = vmatmul.f32.gmra.mxu3 %v2899_v28  ;;  %v1176_v28 = vld [vmem:[%s3718_s1 + $0x458] sm:$0xff] }
  0x7e   : > { %2093 = vmatpush.msra.mxu0 %v1176_v28  ;;  %1983 = vmatpush.msra.mxu3 %v1157_v7  ;;  %v1156_v28 = vld [vmem:[%s3718_s1 + $0x3b8] sm:$0xff] }
  0x80   : > { %1984 = vmatpush.msra.mxu3 %v1156_v28  ;;  %v1138_v28 = vld [vmem:[%s3718_s1 + $0x328] sm:$0xff] }
  0x81   : > { %1659 = vmatmul.f32.gmra.mxu0 %v2363_v18 }
  0x83   : > { %1323 = vmatmul.f32.gmra.mxu1 %v2362_v9  ;;  %1436 = vmatmul.f32.gmra.mxu2 %v302_v19  ;;  %v2371_v9 = vld [vmem:[%s2673_s22 + $0x91] sm:$0xff]  ;;  %v1173_v19 = vld [vmem:[%s3718_s1 + $0x440] sm:$0xff] }
  0x85   : > { %1549 = vmatmul.f32.gmra.mxu3 %v2945_v45 }
  0x89   : > { %1662 = vmatmul.f32.gmra.mxu0 %v2364_v21 }
  0x8b   : > { %1326 = vmatmul.f32.gmra.mxu1 %v2363_v18  ;;  %1439 = vmatmul.f32.gmra.mxu2 %v303_v22  ;;  %v2372_v22 = vld [vmem:[%s2673_s22 + $0x99] sm:$0xff] }
  0x8d   : > { %1552 = vmatmul.f32.gmra.mxu3 %v177_v56 }
  0x91   : > { %1665 = vmatmul.f32.gmra.mxu0 %v2365_v25 }
  0x93   : > { %1329 = vmatmul.f32.gmra.mxu1 %v2364_v21  ;;  %1442 = vmatmul.f32.gmra.mxu2 %v304_v27 }
  0x95   : > { %1555 = vmatmul.f32.gmra.mxu3 %v178_v0 }
  0x99   : > { %1668 = vmatmul.f32.gmra.mxu0 %v2366_v29 }
  0x9b   : > { %1332 = vmatmul.f32.gmra.mxu1 %v2365_v25  ;;  %1445 = vmatmul.f32.gmra.mxu2 %v305_v32 }
  0x9d   : > { %1558 = vmatmul.f32.gmra.mxu3 %v2679_v16  ;;  %v1175_v16 = vld [vmem:[%s3718_s1 + $0x450] sm:$0xff] }
  0x9e   : > { %2094 = vmatpush.msra.mxu0 %v1175_v16 }
  0xa0   : > { %2095 = vmatpush.msra.mxu0 %v1174_v60  ;;  %v1155_v60 = vld [vmem:[%s3718_s1 + $0x3b0] sm:$0xff] }
  0xa1   : > { %1671 = vmatmul.f32.gmra.mxu0 %v2367_v37  ;;  %1985 = vmatpush.msra.mxu3 %v1155_v60 }
  0xa2   : > { %2096 = vmatpush.msra.mxu0 %v1173_v19  ;;  %v2376_v19 = vld [vmem:[%s2673_s22 + $0xc9] sm:$0xff] }
  0xa3   : > { %1335 = vmatmul.f32.gmra.mxu1 %v2366_v29  ;;  %1448 = vmatmul.f32.gmra.mxu2 %v306_v39  ;;  %v312_v39 = vld [vmem:[%s2673_s22 + $0x9a] sm:$0xff] }
  0xa5   : > { %1561 = vmatmul.f32.gmra.mxu3 %v2719_v30  ;;  %v3067_v30 = vld [vmem:[%s3719_s2] ss:$0 sm:$0xff] }
  0xa8   : > { %v3058_v41 = vpop.f32.mrf.mxu1 }
  0xa9   : > { %1674 = vmatmul.f32.gmra.mxu0 %v2368_v40 }
  0xab   : > { %1338 = vmatmul.f32.gmra.mxu1 %v2367_v37  ;;  %1451 = vmatmul.f32.gmra.mxu2 %v307_v42  ;;  %v1124_v37 = vld [vmem:[%s3718_s1 + $0x2b8] sm:$0xff] }
  0xac   : > { %1758 = vmatpush.msra.mxu1 %v1124_v37 }
  0xad   : > { %1564 = vmatmul.f32.gmra.mxu3 %v2765_v46 }
  0xae   : > { %v1250_v45 = vpop.f32.mrf.mxu2  ;;  %v3073_v48 = vpop.f32.mrf.mxu0 }
  0xaf   : > { %v3077_v52 = vadd.f32 %v3067_v30, %v1250_v45 }
  0xb0   : > { %v3082_v54 = vpop.f32.mrf.mxu1  ;;  %v1274_v46 = vpop.f32.mrf.mxu3 }
  0xb1   : > { %v3086_v56 = vadd.f32 %v3067_v30, %v1274_v46  ;;  %1677 = vmatmul.f32.gmra.mxu0 %v2369_v51  ;;  %v313_v46 = vld [vmem:[%s2673_s22 + $0xaa] sm:$0xff] }
  0xb3   : > { %1341 = vmatmul.f32.gmra.mxu1 %v2368_v40  ;;  %1454 = vmatmul.f32.gmra.mxu2 %v308_v55  ;;  %v1172_v40 = vld [vmem:[%s3718_s1 + $0x438] sm:$0xff] }
  0xb4   : > { %2097 = vmatpush.msra.mxu0 %v1172_v40  ;;  %v1122_v40 = vld [vmem:[%s3718_s1 + $0x2a8] sm:$0xff] }
  0xb5   : > { %1567 = vmatmul.f32.gmra.mxu3 %v2813_v62  ;;  %v1141_v62 = vld [vmem:[%s3718_s1 + $0x340] sm:$0xff] }
  0xb6   : > { %v1253_v61 = vpop.f32.mrf.mxu2  ;;  %v3092_v0 = vpop.f32.mrf.mxu0  ;;  %1870 = vmatpush.msra.mxu2 %v1141_v62  ;;  %v1123_v62 = vld [vmem:[%s3718_s1 + $0x2b0] sm:$0xff]  ;;  %2098 = vmatpush.msra.mxu0 %v1171_v12 }
  0xb7   : > { %v3096_v2 = vadd.f32 %v3067_v30, %v1253_v61  ;;  %1759 = vmatpush.msra.mxu1 %v1123_v62 }
  0xb8   : > { %v3098_v3 = vpop.f32.mrf.mxu1  ;;  %v1277_v4 = vpop.f32.mrf.mxu3 }
  0xb9   : > { %v3102_v6 = vadd.f32 %v3067_v30, %v1277_v4  ;;  %1680 = vmatmul.f32.gmra.mxu0 %v2370_v1  ;;  %v2375_v4 = vld [vmem:[%s2673_s22 + $0xc1] sm:$0xff]  ;;  %1760 = vmatpush.msra.mxu1 %v1122_v40 }
  0xbb   : > { %1344 = vmatmul.f32.gmra.mxu1 %v2369_v51  ;;  %1457 = vmatmul.f32.gmra.mxu2 %v309_v5 }
  0xbd   : > { %1570 = vmatmul.f32.gmra.mxu3 %v2862_v14 }
  0xbe   : > { %v1256_v8 = vpop.f32.mrf.mxu2  ;;  %v3111_v58 = vpop.f32.mrf.mxu0 }
  0xbf   : > { %v3115_v11 = vadd.f32 %v3067_v30, %v1256_v8  ;;  %v314_v8 = vld [vmem:[%s2673_s22 + $0xb2] sm:$0xff] }
  0xc0   : > { %v3120_v10 = vpop.f32.mrf.mxu1  ;;  %v1280_v14 = vpop.f32.mrf.mxu3 }
  0xc1   : > { %v3124_v18 = vadd.f32 %v3067_v30, %v1280_v14  ;;  %1683 = vmatmul.f32.gmra.mxu0 %v2371_v9 }
  0xc3   : > { %1347 = vmatmul.f32.gmra.mxu1 %v2370_v1  ;;  %1460 = vmatmul.f32.gmra.mxu2 %v310_v13 }
  0xc5   : > { %1573 = vmatmul.f32.gmra.mxu3 %v2911_v34  ;;  %v1140_v34 = vld [vmem:[%s3718_s1 + $0x338] sm:$0xff] }
  0xc6   : > { %v1259_v20 = vpop.f32.mrf.mxu2  ;;  %v3130_v21 = vpop.f32.mrf.mxu0  ;;  %1871 = vmatpush.msra.mxu2 %v1140_v34 }
  0xc7   : > { %v3134_v23 = vadd.f32 %v3067_v30, %v1259_v20  ;;  %v1212_v40 = vadd.f32 %v3067_v30, %v3130_v21 }
  0xc8   : > { %v3136_v24 = vpop.f32.mrf.mxu1  ;;  %v1283_v25 = vpop.f32.mrf.mxu3 }
  0xc9   : > { %v3140_v27 = vadd.f32 %v3067_v30, %v1283_v25  ;;  %1686 = vmatmul.f32.gmra.mxu0 %v2372_v22 }
  0xcb   : > { %1350 = vmatmul.f32.gmra.mxu1 %v2371_v9  ;;  %1463 = vmatmul.f32.gmra.mxu2 %v311_v26  ;;  %v315_v26 = vld [vmem:[%s2673_s22 + $0xc2] sm:$0xff] }
  0xcd   : > { %1576 = vmatmul.f32.gmra.mxu3 %v2951_v49 }
  0xce   : > { %v1262_v29 = vpop.f32.mrf.mxu2  ;;  %v3149_v32 = vpop.f32.mrf.mxu0 }
  0xcf   : > { %v3153_v36 = vadd.f32 %v3067_v30, %v1262_v29 }
  0xd0   : > { %v3158_v38 = vpop.f32.mrf.mxu1  ;;  %v1286_v49 = vpop.f32.mrf.mxu3 }
  0xd1   : > { %v3162_v16 = vadd.f32 %v3067_v30, %v1286_v49  ;;  %1689 = vmatmul.f32.gmra.mxu0 %v2373_v33 }
  0xd3   : > { %1353 = vmatmul.f32.gmra.mxu1 %v2372_v22  ;;  %1466 = vmatmul.f32.gmra.mxu2 %v312_v39  ;;  %v2377_v39 = vld [vmem:[%s2673_s22 + $0xd9] sm:$0xff] }
  0xd5   : > { %1579 = vmatmul.f32.gmra.mxu3 %v2974_v57  ;;  %v1139_v57 = vld [vmem:[%s3718_s1 + $0x330] sm:$0xff] }
  0xd6   : > { %v1265_v42 = vpop.f32.mrf.mxu2  ;;  %v3168_v43 = vpop.f32.mrf.mxu0  ;;  %1872 = vmatpush.msra.mxu2 %v1139_v57 }
  0xd7   : > { %v3172_v45 = vadd.f32 %v3067_v30, %v1265_v42 }
  0xd8   : > { %v3174_v51 = vpop.f32.mrf.mxu1  ;;  %v1289_v53 = vpop.f32.mrf.mxu3  ;;  %1873 = vmatpush.msra.mxu2 %v1138_v28 }
  0xd9   : > { %v3178_v55 = vadd.f32 %v3067_v30, %v1289_v53  ;;  %1692 = vmatmul.f32.gmra.mxu0 %v2374_v44  ;;  %v316_v53 = vld [vmem:[%s2673_s22 + $0xca] sm:$0xff] }
  0xdb   : > { %1356 = vmatmul.f32.gmra.mxu1 %v2373_v33  ;;  %1469 = vmatmul.f32.gmra.mxu2 %v313_v46  ;;  %v1154_v33 = vld [vmem:[%s3718_s1 + $0x3a8] sm:$0xff] }
  0xdc   : > { %1986 = vmatpush.msra.mxu3 %v1154_v33 }
  0xdd   : > { %1582 = vmatmul.f32.gmra.mxu3 %v2682_v17 }
  0xde   : > { %v1268_v61 = vpop.f32.mrf.mxu2  ;;  %v3187_v1 = vpop.f32.mrf.mxu0 }
  0xdf   : > { %v3191_v5 = vadd.f32 %v3067_v30, %v1268_v61  ;;  %v1170_v61 = vld [vmem:[%s3718_s1 + $0x428] sm:$0xff] }
  0xe0   : > { %v3196_v7 = vpop.f32.mrf.mxu1  ;;  %v1292_v17 = vpop.f32.mrf.mxu3  ;;  %2099 = vmatpush.msra.mxu0 %v1170_v61 }
  0xe1   : > { %v3200_v9 = vadd.f32 %v3067_v30, %v1292_v17  ;;  %1695 = vmatmul.f32.gmra.mxu0 %v2375_v4  ;;  %v2378_v17 = vld [vmem:[%s2673_s22 + $0xe1] sm:$0xff] }
  0xe3   : > { %1359 = vmatmul.f32.gmra.mxu1 %v2374_v44  ;;  %1472 = vmatmul.f32.gmra.mxu2 %v314_v8 }
  0xe5   : > { %1585 = vmatmul.f32.gmra.mxu3 %v2722_v31  ;;  %v1203_v31 = vadd.f32 %v3067_v30, %v3073_v48 }
  0xe6   : > { %v1271_v14 = vpop.f32.mrf.mxu2  ;;  %v3206_v13 = vpop.f32.mrf.mxu0 }
  0xe7   : > { %v3210_v20 = vadd.f32 %v3067_v30, %v1271_v14 }
  0xe8   : > { %v1295_v22 = vpop.f32.mrf.mxu3  ;;  %v1315_v25 = vpop.f32.mrf.mxu1 }
  0xe9   : > { %v3214_v34 = vadd.f32 %v3067_v30, %v1295_v22  ;;  %1698 = vmatmul.f32.gmra.mxu0 %v2376_v19  ;;  %v1316_v29 = vadd.f32 %v1315_v25, %v1203_v31  ;;  %v1153_v31 = vld [vmem:[%s3718_s1 + $0x3a0] sm:$0xff] }
  0xea   : > { %1987 = vmatpush.msra.mxu3 %v1153_v31 }
  0xeb   : > { %1362 = vmatmul.f32.gmra.mxu1 %v2375_v4  ;;  %1475 = vmatmul.f32.gmra.mxu2 %v315_v26 }
  0xed   : > { %1588 = vmatmul.f32.gmra.mxu3 %v2768_v47  ;;  %v1206_v47 = vadd.f32 %v3067_v30, %v3092_v0  ;;  %v317_v0 = vld [vmem:[%s2673_s22 + $0xda] sm:$0xff] }
  0xee   : > { %v1428_v37 = vpop.f32.mrf.mxu2  ;;  %v1654_v49 = vpop.f32.mrf.mxu0 }
  0xef   : > { %v1429_v48 = vadd.f32 %v1428_v37, %v1316_v29  ;;  %v1121_v37 = vld [vmem:[%s3718_s1 + $0x2a0] sm:$0xff] }
  0xf0   : > { %v1318_v42 = vpop.f32.mrf.mxu1  ;;  %v1541_v44 = vpop.f32.mrf.mxu3  ;;  %1761 = vmatpush.msra.mxu1 %v1121_v37 }
  0xf1   : > { %v1542_v46 = vadd.f32 %v1541_v44, %v1429_v48  ;;  %1701 = vmatmul.f32.gmra.mxu0 %v2377_v39  ;;  %v1319_v60 = vadd.f32 %v1318_v42, %v1206_v47  ;;  %v318_v48 = vld [vmem:[%s2673_s22 + $0xe2] sm:$0xff] }
  0xf3   : > { %v3232_v57 = vadd.f32 %v1654_v49, %v1542_v46  ;;  %1365 = vmatmul.f32.gmra.mxu1 %v2376_v19  ;;  %1478 = vmatmul.f32.gmra.mxu2 %v316_v53  ;;  %v1209_v19 = vadd.f32 %v3067_v30, %v3111_v58  ;;  %v3252_v58 = vld [vmem:[%s2673_s22 + $0xf1] sm:$0xff]  ;;  %v1169_v53 = vld [vmem:[%s3718_s1 + $0x420] sm:$0xff] }
  0xf4   : > { %2100 = vmatpush.msra.mxu0 %v1169_v53 }
  0xf5   : > { %1591 = vmatmul.f32.gmra.mxu3 %v2816_v63  ;;  %v1137_v63 = vld [vmem:[%s3718_s1 + $0x320] sm:$0xff] }
  0xf6   : > { %v1431_v4 = vpop.f32.mrf.mxu2  ;;  %v1657_v62 = vpop.f32.mrf.mxu0  ;;  %1874 = vmatpush.msra.mxu2 %v1137_v63 }
  0xf7   : > { %v1432_v8 = vadd.f32 %v1431_v4, %v1319_v60  ;;  %v3268_v60 = vld [vmem:[%s2673_s22 + $0xf9] sm:$0xff] }
  0xf8   : > { %v1321_v12 = vpop.f32.mrf.mxu1  ;;  %v1544_v14 = vpop.f32.mrf.mxu3 }
  0xf9   : > { %v1545_v22 = vadd.f32 %v1544_v14, %v1432_v8  ;;  %1704 = vmatmul.f32.gmra.mxu0 %v2378_v17  ;;  %v1322_v26 = vadd.f32 %v1321_v12, %v1209_v19  ;;  %v1136_v12 = vld [vmem:[%s3718_s1 + $0x318] sm:$0xff]  ;;  %v3285_v19 = vld [vmem:[%s2673_s22 + $0x109] sm:$0xff] }
  0xfa   : > { %1875 = vmatpush.msra.mxu2 %v1136_v12  ;;  %v3319_v12 = vld [vmem:[%s2673_s22 + $0x121] sm:$0xff] }
  0xfb   : > { %v3242_v25 = vadd.f32 %v1657_v62, %v1545_v22  ;;  %1368 = vmatmul.f32.gmra.mxu1 %v2377_v39  ;;  %1481 = vmatmul.f32.gmra.mxu2 %v317_v0  ;;  %v319_v62 = vld [vmem:[%s2673_s22 + $0xf2] sm:$0xff] }
  0xfc   : > { %v1152_v0 = vld [vmem:[%s3718_s1 + $0x398] sm:$0xff] }
  0xfd   : > { %1594 = vmatmul.f32.gmra.mxu3 %v2865_v15 }
  0xfe   : > { %v1434_v28 = vpop.f32.mrf.mxu2  ;;  %v1660_v29 = vpop.f32.mrf.mxu0  ;;  %1988 = vmatpush.msra.mxu3 %v1152_v0  ;;  %v1119_v0 = vld [vmem:[%s3718_s1 + $0x290] sm:$0xff] }
  0xff   : > { %v1435_v33 = vadd.f32 %v1434_v28, %v1322_v26  ;;  %v1120_v26 = vld [vmem:[%s3718_s1 + $0x298] sm:$0xff] }
 0x100   : > { %v1324_v49 = vpop.f32.mrf.mxu1  ;;  %v1547_v39 = vpop.f32.mrf.mxu3  ;;  %1762 = vmatpush.msra.mxu1 %v1120_v26 }
 0x101   : > { %v1548_v15 = vadd.f32 %v1547_v39, %v1435_v33  ;;  %1707 = vmatmul.f32.gmra.mxu0 %v3252_v58  ;;  %v1325_v44 = vadd.f32 %v1324_v49, %v1212_v40  ;;  %v1218_v33 = vadd.f32 %v3067_v30, %v3168_v43  ;;  %v1168_v39 = vld [vmem:[%s3718_s1 + $0x418] sm:$0xff] }
 0x102   : > { %v3302_v40 = vld [vmem:[%s2673_s22 + $0x111] sm:$0xff]  ;;  %2101 = vmatpush.msra.mxu0 %v1168_v39  ;;  %1763 = vmatpush.msra.mxu1 %v1119_v0 }
 0x103   : > { %v3261_v42 = vadd.f32 %v1660_v29, %v1548_v15  ;;  %1371 = vmatmul.f32.gmra.mxu1 %v2378_v17  ;;  %1484 = vmatmul.f32.gmra.mxu2 %v318_v48  ;;  %v320_v29 = vld [vmem:[%s2673_s22 + $0xfa] sm:$0xff] }
 0x105   : > { %1597 = vmatmul.f32.gmra.mxu3 %v2914_v35  ;;  %v1215_v35 = vadd.f32 %v3067_v30, %v3149_v32 }
 0x106   : > { %v1437_v46 = vpop.f32.mrf.mxu2  ;;  %v1663_v47 = vpop.f32.mrf.mxu0 }
 0x107   : > { %v1438_v61 = vadd.f32 %v1437_v46, %v1325_v44  ;;  %v321_v46 = vld [vmem:[%s2673_s22 + $0x10a] sm:$0xff] }
 0x108   : > { %v1327_v4 = vpop.f32.mrf.mxu1  ;;  %v1550_v21 = vpop.f32.mrf.mxu3 }
 0x109   : > { %v1551_v8 = vadd.f32 %v1550_v21, %v1438_v61  ;;  %1710 = vmatmul.f32.gmra.mxu0 %v3268_v60  ;;  %v1328_v14 = vadd.f32 %v1327_v4, %v1215_v35  ;;  %v2351_v61 = vld [vmem:[%s2673_s22 + $0x120] sm:$0xff]  ;;  %v1135_v21 = vld [vmem:[%s3718_s1 + $0x310] sm:$0xff] }
 0x10a   : > { %1876 = vmatpush.msra.mxu2 %v1135_v21 }
 0x10b   : > { %v3274_v17 = vadd.f32 %v1663_v47, %v1551_v8  ;;  %1374 = vmatmul.f32.gmra.mxu1 %v3252_v58  ;;  %1487 = vmatmul.f32.gmra.mxu2 %v319_v62  ;;  %v1151_v8 = vld [vmem:[%s3718_s1 + $0x390] sm:$0xff] }
 0x10c   : > { %1989 = vmatpush.msra.mxu3 %v1151_v8 }
 0x10d   : > { %1600 = vmatmul.f32.gmra.mxu3 %v2954_v50 }
 0x10e   : > { %v1440_v22 = vpop.f32.mrf.mxu2  ;;  %v1666_v32 = vpop.f32.mrf.mxu0 }
 0x10f   : > { %v1441_v63 = vadd.f32 %v1440_v22, %v1328_v14 }
 0x110   : > { %v1330_v31 = vpop.f32.mrf.mxu1  ;;  %v1553_v28 = vpop.f32.mrf.mxu3 }
 0x111   : > { %v1554_v50 = vadd.f32 %v1553_v28, %v1441_v63  ;;  %1713 = vmatmul.f32.gmra.mxu0 %v3285_v19  ;;  %v1331_v49 = vadd.f32 %v1330_v31, %v1218_v33  ;;  %v3325_v63 = vld [vmem:[%s2673_s22 + $0x112] sm:$0xff]  ;;  %v2352_v31 = vld [vmem:[%s2673_s22 + $0x128] sm:$0xff]  ;;  %v1224_v28 = vadd.f32 %v3067_v30, %v3206_v13 }
 0x112   : > { %v1167_v33 = vld [vmem:[%s3718_s1 + $0x410] sm:$0xff] }
 0x113   : > { %v3294_v37 = vadd.f32 %v1666_v32, %v1554_v50  ;;  %1377 = vmatmul.f32.gmra.mxu1 %v3268_v60  ;;  %1490 = vmatmul.f32.gmra.mxu2 %v320_v29 }
 0x114   : > { %2102 = vmatpush.msra.mxu0 %v1167_v33 }
 0x115   : > { %1603 = vmatmul.f32.gmra.mxu3 %v2977_v59  ;;  %v1221_v59 = vadd.f32 %v3067_v30, %v3187_v1 }
 0x116   : > { %v1443_v48 = vpop.f32.mrf.mxu2  ;;  %v1669_v15 = vpop.f32.mrf.mxu0 }
 0x117   : > { %v1444_v44 = vadd.f32 %v1443_v48, %v1331_v49  ;;  %v3339_v48 = vld [vmem:[%s2673_s22 + $0x129] sm:$0xff] }
 0x118   : > { %v1333_v43 = vpop.f32.mrf.mxu1  ;;  %v1556_v53 = vpop.f32.mrf.mxu3 }
 0x119   : > { %v1557_v47 = vadd.f32 %v1556_v53, %v1444_v44  ;;  %1716 = vmatmul.f32.gmra.mxu0 %v3302_v40  ;;  %v1334_v62 = vadd.f32 %v1333_v43, %v1221_v59  ;;  %v3342_v43 = vld [vmem:[%s2673_s22 + $0x122] sm:$0xff] }
 0x11a   : > { %v1134_v59 = vld [vmem:[%s3718_s1 + $0x308] sm:$0xff] }
 0x11b   : > { %v3309_v4 = vadd.f32 %v1669_v15, %v1557_v47  ;;  %1380 = vmatmul.f32.gmra.mxu1 %v3285_v19  ;;  %1493 = vmatmul.f32.gmra.mxu2 %v321_v46  ;;  %v2353_v46 = vld [vmem:[%s2673_s22 + $0x138] sm:$0xff]  ;;  %v1227_v47 = vadd.f32 %v3067_v30, %v3058_v41 }
 0x11c   : > { %1877 = vmatpush.msra.mxu2 %v1134_v59  ;;  %v2355_v59 = vld [vmem:[%s2673_s22 + $0x150] sm:$0xff] }
 0x11d   : > { %1606 = vmatmul.f32.gmra.mxu3 %v2351_v61 }
 0x11e   : > { %v1446_v35 = vpop.f32.mrf.mxu2  ;;  %v1672_v1 = vpop.f32.mrf.mxu0 }
 0x11f   : > { %v1447_v14 = vadd.f32 %v1446_v35, %v1334_v62  ;;  %v1150_v62 = vld [vmem:[%s3718_s1 + $0x388] sm:$0xff]  ;;  %v3359_v35 = vld [vmem:[%s2673_s22 + $0x139] sm:$0xff] }
 0x120   : > { %v1336_v22 = vpop.f32.mrf.mxu1  ;;  %v1559_v32 = vpop.f32.mrf.mxu3  ;;  %1990 = vmatpush.msra.mxu3 %v1150_v62 }
 0x121   : > { %v1560_v26 = vadd.f32 %v1559_v32, %v1447_v14  ;;  %1719 = vmatmul.f32.gmra.mxu0 %v3319_v12  ;;  %v1337_v50 = vadd.f32 %v1336_v22, %v1224_v28  ;;  %v1118_v14 = vld [vmem:[%s3718_s1 + $0x288] sm:$0xff]  ;;  %v1230_v28 = vadd.f32 %v3067_v30, %v3082_v54 }
 0x122   : > { %v3365_v32 = vld [vmem:[%s2673_s22 + $0x12a] sm:$0xff]  ;;  %1764 = vmatpush.msra.mxu1 %v1118_v14 }
 0x123   : > { %v3331_v29 = vadd.f32 %v1672_v1, %v1560_v26  ;;  %1383 = vmatmul.f32.gmra.mxu1 %v3302_v40  ;;  %1496 = vmatmul.f32.gmra.mxu2 %v3325_v63 }
 0x125   : > { %1609 = vmatmul.f32.gmra.mxu3 %v2352_v31  ;;  %v2354_v31 = vld [vmem:[%s2673_s22 + $0x140] sm:$0xff] }
 0x126   : > { %v1449_v49 = vpop.f32.mrf.mxu2  ;;  %v1675_v39 = vpop.f32.mrf.mxu0 }
 0x127   : > { %v1450_v15 = vadd.f32 %v1449_v49, %v1337_v50  ;;  %v1166_v49 = vld [vmem:[%s3718_s1 + $0x408] sm:$0xff] }
 0x128   : > { %v1339_v13 = vpop.f32.mrf.mxu1  ;;  %v1562_v44 = vpop.f32.mrf.mxu3  ;;  %2103 = vmatpush.msra.mxu0 %v1166_v49 }
 0x129   : > { %v1563_v53 = vadd.f32 %v1562_v44, %v1450_v15  ;;  %1722 = vmatmul.f32.gmra.mxu0 %v3339_v48  ;;  %v1340_v21 = vadd.f32 %v1339_v13, %v1227_v47  ;;  %v3379_v13 = vld [vmem:[%s2673_s22 + $0x141] sm:$0xff] }
 0x12b   : > { %v3348_v61 = vadd.f32 %v1675_v39, %v1563_v53  ;;  %1386 = vmatmul.f32.gmra.mxu1 %v3319_v12  ;;  %1499 = vmatmul.f32.gmra.mxu2 %v3342_v43 }
 0x12d   : > { %1612 = vmatmul.f32.gmra.mxu3 %v2353_v46  ;;  %v3382_v46 = vld [vmem:[%s2673_s22 + $0x13a] sm:$0xff] }
 0x12e   : > { %v1452_v41 = vpop.f32.mrf.mxu2  ;;  %v1678_v8 = vpop.f32.mrf.mxu0 }
 0x12f   : > { %v1453_v1 = vadd.f32 %v1452_v41, %v1340_v21  ;;  %v1233_v21 = vadd.f32 %v3067_v30, %v3098_v3  ;;  %v1133_v41 = vld [vmem:[%s3718_s1 + $0x300] sm:$0xff] }
 0x130   : > { %v1342_v0 = vpop.f32.mrf.mxu1  ;;  %v1565_v22 = vpop.f32.mrf.mxu3  ;;  %1878 = vmatpush.msra.mxu2 %v1133_v41 }
 0x131   : > { %v1566_v26 = vadd.f32 %v1565_v22, %v1453_v1  ;;  %1725 = vmatmul.f32.gmra.mxu0 %v3359_v35  ;;  %v1343_v33 = vadd.f32 %v1342_v0, %v1230_v28  ;;  %v1149_v1 = vld [vmem:[%s3718_s1 + $0x380] sm:$0xff]  ;;  %v3399_v0 = vld [vmem:[%s2673_s22 + $0x151] sm:$0xff] }
 0x132   : > { %1991 = vmatpush.msra.mxu3 %v1149_v1  ;;  %v3422_v1 = vld [vmem:[%s2673_s22 + $0x152] sm:$0xff] }
 0x133   : > { %v3371_v50 = vadd.f32 %v1678_v8, %v1566_v26  ;;  %1389 = vmatmul.f32.gmra.mxu1 %v3339_v48  ;;  %1502 = vmatmul.f32.gmra.mxu2 %v3365_v32  ;;  %v1117_v26 = vld [vmem:[%s3718_s1 + $0x280] sm:$0xff] }
 0x134   : > { %1765 = vmatpush.msra.mxu1 %v1117_v26 }
 0x135   : > { %1615 = vmatmul.f32.gmra.mxu3 %v2354_v31 }
 0x136   : > { %v1455_v39 = vpop.f32.mrf.mxu2  ;;  %v1681_v15 = vpop.f32.mrf.mxu0 }
 0x137   : > { %v1456_v44 = vadd.f32 %v1455_v39, %v1343_v33  ;;  %v3405_v33 = vld [vmem:[%s2673_s22 + $0x142] sm:$0xff]  ;;  %v2356_v39 = vld [vmem:[%s2673_s22 + $0x158] sm:$0xff] }
 0x138   : > { %v1345_v54 = vpop.f32.mrf.mxu1  ;;  %v1568_v53 = vpop.f32.mrf.mxu3 }
 0x139   : > { %v1569_v47 = vadd.f32 %v1568_v53, %v1456_v44  ;;  %1728 = vmatmul.f32.gmra.mxu0 %v3379_v13  ;;  %v1346_v8 = vadd.f32 %v1345_v54, %v1233_v21  ;;  %v1165_v53 = vld [vmem:[%s3718_s1 + $0x400] sm:$0xff] }
 0x13a   : > { %v3419_v21 = vld [vmem:[%s2673_s22 + $0x159] sm:$0xff]  ;;  %2104 = vmatpush.msra.mxu0 %v1165_v53 }
 0x13b   : > { %v3388_v62 = vadd.f32 %v1681_v15, %v1569_v47  ;;  %1392 = vmatmul.f32.gmra.mxu1 %v3359_v35  ;;  %1505 = vmatmul.f32.gmra.mxu2 %v3382_v46  ;;  %v1236_v15 = vadd.f32 %v3067_v30, %v3120_v10 }
 0x13d   : > { %1618 = vmatmul.f32.gmra.mxu3 %v2355_v59 }
 0x13e   : > { %v1458_v3 = vpop.f32.mrf.mxu2  ;;  %v1684_v14 = vpop.f32.mrf.mxu0 }
 0x13f   : > { %v1459_v22 = vadd.f32 %v1458_v3, %v1346_v8 }
 0x140   : > { %v1348_v31 = vpop.f32.mrf.mxu1  ;;  %v1571_v28 = vpop.f32.mrf.mxu3 }
 0x141   : > { %v1572_v49 = vadd.f32 %v1571_v28, %v1459_v22  ;;  %1731 = vmatmul.f32.gmra.mxu0 %v3399_v0  ;;  %v1349_v54 = vadd.f32 %v1348_v31, %v1236_v15  ;;  %v1239_v22 = vadd.f32 %v3067_v30, %v3136_v24 }
 0x143   : > { %v3411_v44 = vadd.f32 %v1684_v14, %v1572_v49  ;;  %1395 = vmatmul.f32.gmra.mxu1 %v3379_v13  ;;  %1508 = vmatmul.f32.gmra.mxu2 %v3405_v33  ;;  %v2357_v14 = vld [vmem:[%s2673_s22 + $0x168] sm:$0xff] }
 0x145   : > { %1621 = vmatmul.f32.gmra.mxu3 %v2356_v39  ;;  %v3433_v39 = vld [vmem:[%s2673_s22 + $0x169] sm:$0xff] }
 0x146   : > { %v1461_v47 = vpop.f32.mrf.mxu2  ;;  %v1687_v59 = vpop.f32.mrf.mxu0 }
 0x147   : > { %v1462_v10 = vadd.f32 %v1461_v47, %v1349_v54  ;;  %v3436_v47 = vld [vmem:[%s2673_s22 + $0x15a] sm:$0xff] }
 0x148   : > { %v1351_v41 = vpop.f32.mrf.mxu1  ;;  %v1574_v8 = vpop.f32.mrf.mxu3 }
 0x149   : > { %v1575_v3 = vadd.f32 %v1574_v8, %v1462_v10  ;;  %1734 = vmatmul.f32.gmra.mxu0 %v3419_v21  ;;  %v1352_v31 = vadd.f32 %v1351_v41, %v1239_v22  ;;  %v1242_v10 = vadd.f32 %v3067_v30, %v3158_v38  ;;  %v3450_v22 = vld [vmem:[%s2673_s22 + $0x171] sm:$0xff] }
 0x14a   : > { %3731 = vst [vmem:[#allocation6_spill] sm:$0xff] %v3450_v22 }
 0x14b   : > { %v3428_v26 = vadd.f32 %v1687_v59, %v1575_v3  ;;  %1398 = vmatmul.f32.gmra.mxu1 %v3399_v0  ;;  %1511 = vmatmul.f32.gmra.mxu2 %v3422_v1  ;;  %v3440_v59 = vld [vmem:[%s2673_s22 + $0x170] sm:$0xff] }
 0x14c   : > { %3729 = vst [vmem:[#allocation4_spill] sm:$0xff] %v3440_v59 }
 0x14d   : > { %3728 = vst [vmem:[#allocation3_spill] sm:$0xff] %v3428_v26  ;;  %1624 = vmatmul.f32.gmra.mxu3 %v2357_v14 }
 0x14e   : > { %v1464_v28 = vpop.f32.mrf.mxu2  ;;  %v1690_v49 = vpop.f32.mrf.mxu0 }
 0x14f   : > { %v1465_v15 = vadd.f32 %v1464_v28, %v1352_v31 }
 0x150   : > { %v1354_v54 = vpop.f32.mrf.mxu1  ;;  %v1577_v53 = vpop.f32.mrf.mxu3 }
 0x151   : > { %v1578_v24 = vadd.f32 %v1577_v53, %v1465_v15  ;;  %1737 = vmatmul.f32.gmra.mxu0 %v3433_v39  ;;  %v1355_v8 = vadd.f32 %v1354_v54, %v1242_v10  ;;  %v3453_v53 = vld [vmem:[%s2673_s22 + $0x16a] sm:$0xff]  ;;  %v1245_v54 = vadd.f32 %v3067_v30, %v3174_v51 }
 0x153   : > { %v3444_v41 = vadd.f32 %v1690_v49, %v1578_v24  ;;  %1401 = vmatmul.f32.gmra.mxu1 %v3419_v21  ;;  %1514 = vmatmul.f32.gmra.mxu2 %v3436_v47  ;;  %v3457_v49 = vld [vmem:[%s2673_s22 + $0x180] sm:$0xff] }
 0x154   : > { %3732 = vst [vmem:[#allocation7_spill] sm:$0xff] %v3457_v49 }
 0x155   : > { %3730 = vst [vmem:[#allocation5_spill] sm:$0xff] %v3444_v41  ;;  %1627 = vmatmul.f32.gmra.mxu3 %v3440_v59  ;;  %v3470_v59 = vld [vmem:[%s2673_s22 + $0x172] sm:$0xff] }
 0x156   : > { %v1467_v3 = vpop.f32.mrf.mxu2  ;;  %v1693_v14 = vpop.f32.mrf.mxu0  ;;  %3735 = vst [vmem:[#allocation10_spill] sm:$0xff] %v3470_v59 }
 0x157   : > { %v1468_v31 = vadd.f32 %v1467_v3, %v1355_v8 }
 0x158   : > { %v1357_v28 = vpop.f32.mrf.mxu1  ;;  %v1580_v15 = vpop.f32.mrf.mxu3 }
 0x159   : > { %v1581_v38 = vadd.f32 %v1580_v15, %v1468_v31  ;;  %1740 = vmatmul.f32.gmra.mxu0 %v3450_v22  ;;  %v1358_v10 = vadd.f32 %v1357_v28, %v1245_v54  ;;  %v3467_v31 = vld [vmem:[%s2673_s22 + $0x181] sm:$0xff]  ;;  %v1248_v28 = vadd.f32 %v3067_v30, %v3196_v7  ;;  %v2425_v30 = vld [vmem:[%s2673_s22 + $0x30] sm:$0xff] }
 0x15a   : > { %3734 = vst [vmem:[#allocation9_spill] sm:$0xff] %v3467_v31 }
 0x15b   : > { %v3461_v24 = vadd.f32 %v1693_v14, %v1581_v38  ;;  %1404 = vmatmul.f32.gmra.mxu1 %v3433_v39  ;;  %1517 = vmatmul.f32.gmra.mxu2 %v3453_v53  ;;  %v3474_v14 = vld [vmem:[%s2673_s22 + $0x188] sm:$0xff] }
 0x15c   : > { %3736 = vst [vmem:[#allocation11_spill] sm:$0xff] %v3474_v14 }
 0x15d   : > { %3733 = vst [vmem:[#allocation8_spill] sm:$0xff] %v3461_v24  ;;  %1630 = vmatmul.f32.gmra.mxu3 %v3457_v49  ;;  %v2393_v49 = vld [vmem:[%s2673_s22 + $0x1a] sm:$0xff] }
 0x15e   : > { %v1470_v8 = vpop.f32.mrf.mxu2  ;;  %v1696_v3 = vpop.f32.mrf.mxu0 }
 0x15f   : > { %v1471_v15 = vadd.f32 %v1470_v8, %v1358_v10  ;;  %v3484_v8 = vld [vmem:[%s2673_s22 + $0x189] sm:$0xff] }
 0x160   : > { %v1360_v41 = vpop.f32.mrf.mxu1  ;;  %v1583_v26 = vpop.f32.mrf.mxu3 }
 0x161   : > { %v1584_v51 = vadd.f32 %v1583_v26, %v1471_v15  ;;  %1743 = vmatmul.f32.gmra.mxu0 %v3467_v31  ;;  %v1361_v54 = vadd.f32 %v1360_v41, %v1248_v28 }
 0x163   : > { %v3478_v38 = vadd.f32 %v1696_v3, %v1584_v51  ;;  %1407 = vmatmul.f32.gmra.mxu1 %v3450_v22  ;;  %1520 = vmatmul.f32.gmra.mxu2 %v3470_v59  ;;  %v2457_v3 = vld [vmem:[%s2673_s22 + $0x31] sm:$0xff]  ;;  %v2394_v22 = vld [vmem:[%s2673_s22 + $0x22] sm:$0xff] }
 0x165   : > { %3737 = vst [vmem:[#allocation12_spill] sm:$0xff] %v3478_v38  ;;  %1633 = vmatmul.f32.gmra.mxu3 %v3474_v14 }
 0x166   : > { %v1473_v10 = vpop.f32.mrf.mxu2  ;;  %v1699_v26 = vpop.f32.mrf.mxu0 }
 0x167   : > { %v1474_v15 = vadd.f32 %v1473_v10, %v1361_v54  ;;  %v2489_v10 = vld [vmem:[%s2673_s22 + $0x32] sm:$0xff] }
 0x168   : > { %v1363_v24 = vpop.f32.mrf.mxu1  ;;  %v1586_v31 = vpop.f32.mrf.mxu3 }
 0x169   : > { %v1587_v7 = vadd.f32 %v1586_v31, %v1474_v15  ;;  %1746 = vmatmul.f32.gmra.mxu0 %v3484_v8  ;;  %v1364_v51 = vadd.f32 %v1363_v24, %v3077_v52  ;;  %v2426_v31 = vld [vmem:[%s2673_s22 + $0x38] sm:$0xff] }
 0x16b   : > { %v3490_v41 = vadd.f32 %v1699_v26, %v1587_v7  ;;  %1766 = vmatmul.f32.vlgmr.msra.gmra.mxu1 %v2393_v49  ;;  %1879 = vmatmul.f32.vlgmr.msra.gmra.mxu2 %v2425_v30  ;;  %v2458_v26 = vld [vmem:[%s2673_s22 + $0x39] sm:$0xff] }
 0x16c   : > { %v2490_v30 = vld [vmem:[%s2673_s22 + $0x3a] sm:$0xff] }
 0x16d   : > { %3738 = vst [vmem:[#allocation13_spill] sm:$0xff] %v3490_v41  ;;  %1992 = vmatmul.f32.vlgmr.msra.gmra.mxu3 %v2457_v3  ;;  %v2427_v41 = vld [vmem:[%s2673_s22 + $0x48] sm:$0xff] }
 0x16e   : > { %v1476_v28 = vpop.f32.mrf.mxu2  ;;  %v1702_v54 = vpop.f32.mrf.mxu0 }
 0x16f   : > { %v1477_v38 = vadd.f32 %v1476_v28, %v1364_v51 }
 0x170   : > { %v1366_v14 = vpop.f32.mrf.mxu1  ;;  %v1589_v59 = vpop.f32.mrf.mxu3 }
 0x171   : > { %v1590_v15 = vadd.f32 %v1589_v59, %v1477_v38  ;;  %2105 = vmatmul.f32.vlgmr.msra.gmra.mxu0 %v2489_v10  ;;  %v1367_v52 = vadd.f32 %v1366_v14, %v3096_v2  ;;  %v2459_v38 = vld [vmem:[%s2673_s22 + $0x49] sm:$0xff] }
 0x173   : > { %v3497_v7 = vadd.f32 %v1702_v54, %v1590_v15  ;;  %1769 = vmatmul.f32.gmra.mxu1 %v2394_v22  ;;  %1882 = vmatmul.f32.gmra.mxu2 %v2426_v31  ;;  %v2491_v31 = vld [vmem:[%s2673_s22 + $0x4a] sm:$0xff] }
 0x175   : > { %1995 = vmatmul.f32.gmra.mxu3 %v2458_v26 }
 0x176   : > { %v1479_v49 = vpop.f32.mrf.mxu2  ;;  %v1705_v24 = vpop.f32.mrf.mxu0 }
 0x177   : > { %v1480_v3 = vadd.f32 %v1479_v49, %v1367_v52  ;;  %v2428_v49 = vld [vmem:[%s2673_s22 + $0x50] sm:$0xff] }
 0x178   : > { %v1369_v51 = vpop.f32.mrf.mxu1  ;;  %v1592_v28 = vpop.f32.mrf.mxu3 }
 0x179   : > { %v1593_v59 = vadd.f32 %v1592_v28, %v1480_v3  ;;  %2108 = vmatmul.f32.gmra.mxu0 %v2490_v30  ;;  %v1370_v2 = vadd.f32 %v1369_v51, %v3115_v11  ;;  %v2460_v28 = vld [vmem:[%s2673_s22 + $0x51] sm:$0xff] }
 0x17a   : > { %v2492_v51 = vld [vmem:[%s2673_s22 + $0x52] sm:$0xff] }
 0x17b   : > { %v3503_v54 = vadd.f32 %v1705_v24, %v1593_v59  ;;  %1772 = vmatmul.f32.gmra.mxu1 %v2489_v10  ;;  %1885 = vmatmul.f32.gmra.mxu2 %v2427_v41 }
 0x17d   : > { %1998 = vmatmul.f32.gmra.mxu3 %v2459_v38 }
 0x17e   : > { %v1482_v22 = vpop.f32.mrf.mxu2  ;;  %v1708_v14 = vpop.f32.mrf.mxu0 }
 0x17f   : > { %v1483_v15 = vadd.f32 %v1482_v22, %v1370_v2  ;;  %v2429_v22 = vld [vmem:[%s2673_s22 + $0x60] sm:$0xff] }
 0x180   : > { %v1372_v26 = vpop.f32.mrf.mxu1  ;;  %v1595_v52 = vpop.f32.mrf.mxu3 }
 0x181   : > { %v1596_v3 = vadd.f32 %v1595_v52, %v1483_v15  ;;  %2111 = vmatmul.f32.gmra.mxu0 %v2491_v31  ;;  %v1373_v11 = vadd.f32 %v1372_v26, %v3134_v23  ;;  %v2461_v52 = vld [vmem:[%s2673_s22 + $0x61] sm:$0xff] }
 0x183   : > { %v3509_v24 = vadd.f32 %v1708_v14, %v1596_v3  ;;  %1775 = vmatmul.f32.gmra.mxu1 %v2490_v30  ;;  %1888 = vmatmul.f32.gmra.mxu2 %v2428_v49  ;;  %v2493_v49 = vld [vmem:[%s2673_s22 + $0x62] sm:$0xff] }
 0x185   : > { %2001 = vmatmul.f32.gmra.mxu3 %v2460_v28 }
 0x186   : > { %v1485_v41 = vpop.f32.mrf.mxu2  ;;  %v1711_v10 = vpop.f32.mrf.mxu0 }
 0x187   : > { %v1486_v59 = vadd.f32 %v1485_v41, %v1373_v11  ;;  %v2430_v41 = vld [vmem:[%s2673_s22 + $0x68] sm:$0xff] }
 0x188   : > { %v1375_v38 = vpop.f32.mrf.mxu1  ;;  %v1598_v2 = vpop.f32.mrf.mxu3 }
 0x189   : > { %v1599_v15 = vadd.f32 %v1598_v2, %v1486_v59  ;;  %2114 = vmatmul.f32.gmra.mxu0 %v2492_v51  ;;  %v1376_v23 = vadd.f32 %v1375_v38, %v3153_v36  ;;  %v2462_v2 = vld [vmem:[%s2673_s22 + $0x69] sm:$0xff] }
 0x18b   : > { %v3515_v14 = vadd.f32 %v1711_v10, %v1599_v15  ;;  %1778 = vmatmul.f32.gmra.mxu1 %v2491_v31  ;;  %1891 = vmatmul.f32.gmra.mxu2 %v2429_v22  ;;  %v2494_v22 = vld [vmem:[%s2673_s22 + $0x6a] sm:$0xff] }
 0x18d   : > { %2004 = vmatmul.f32.gmra.mxu3 %v2461_v52 }
 0x18e   : > { %v1488_v30 = vpop.f32.mrf.mxu2  ;;  %v1714_v26 = vpop.f32.mrf.mxu0 }
 0x18f   : > { %v1489_v3 = vadd.f32 %v1488_v30, %v1376_v23  ;;  %v2431_v30 = vld [vmem:[%s2673_s22 + $0x78] sm:$0xff] }
 0x190   : > { %v1378_v28 = vpop.f32.mrf.mxu1  ;;  %v1601_v11 = vpop.f32.mrf.mxu3 }
 0x191   : > { %v1602_v59 = vadd.f32 %v1601_v11, %v1489_v3  ;;  %2117 = vmatmul.f32.gmra.mxu0 %v2493_v49  ;;  %v1379_v36 = vadd.f32 %v1378_v28, %v3172_v45  ;;  %v2463_v11 = vld [vmem:[%s2673_s22 + $0x79] sm:$0xff] }
 0x193   : > { %v3521_v10 = vadd.f32 %v1714_v26, %v1602_v59  ;;  %1781 = vmatmul.f32.gmra.mxu1 %v2492_v51  ;;  %1894 = vmatmul.f32.gmra.mxu2 %v2430_v41  ;;  %v2495_v41 = vld [vmem:[%s2673_s22 + $0x7a] sm:$0xff] }
 0x195   : > { %2007 = vmatmul.f32.gmra.mxu3 %v2462_v2 }
 0x196   : > { %v1491_v31 = vpop.f32.mrf.mxu2  ;;  %v1717_v38 = vpop.f32.mrf.mxu0 }
 0x197   : > { %v1492_v15 = vadd.f32 %v1491_v31, %v1379_v36  ;;  %v2432_v31 = vld [vmem:[%s2673_s22 + $0x80] sm:$0xff] }
 0x198   : > { %v1381_v52 = vpop.f32.mrf.mxu1  ;;  %v1604_v23 = vpop.f32.mrf.mxu3 }
 0x199   : > { %v1605_v3 = vadd.f32 %v1604_v23, %v1492_v15  ;;  %2120 = vmatmul.f32.gmra.mxu0 %v2494_v22  ;;  %v1382_v45 = vadd.f32 %v1381_v52, %v3191_v5  ;;  %v2464_v23 = vld [vmem:[%s2673_s22 + $0x81] sm:$0xff] }
 0x19b   : > { %v3527_v26 = vadd.f32 %v1717_v38, %v1605_v3  ;;  %1784 = vmatmul.f32.gmra.mxu1 %v2493_v49  ;;  %1897 = vmatmul.f32.gmra.mxu2 %v2431_v30  ;;  %v2496_v30 = vld [vmem:[%s2673_s22 + $0x82] sm:$0xff] }
 0x19d   : > { %2010 = vmatmul.f32.gmra.mxu3 %v2463_v11 }
 0x19e   : > { %v1494_v51 = vpop.f32.mrf.mxu2  ;;  %v1720_v28 = vpop.f32.mrf.mxu0 }
 0x19f   : > { %v1495_v59 = vadd.f32 %v1494_v51, %v1382_v45  ;;  %v2433_v51 = vld [vmem:[%s2673_s22 + $0x90] sm:$0xff] }
 0x1a0   : > { %v1384_v2 = vpop.f32.mrf.mxu1  ;;  %v1607_v36 = vpop.f32.mrf.mxu3 }
 0x1a1   : > { %v1608_v15 = vadd.f32 %v1607_v36, %v1495_v59  ;;  %2123 = vmatmul.f32.gmra.mxu0 %v2495_v41  ;;  %v1385_v5 = vadd.f32 %v1384_v2, %v3210_v20  ;;  %v2465_v36 = vld [vmem:[%s2673_s22 + $0x91] sm:$0xff] }
 0x1a3   : > { %v3533_v38 = vadd.f32 %v1720_v28, %v1608_v15  ;;  %1787 = vmatmul.f32.gmra.mxu1 %v2494_v22  ;;  %1900 = vmatmul.f32.gmra.mxu2 %v2432_v31  ;;  %v2497_v31 = vld [vmem:[%s2673_s22 + $0x92] sm:$0xff] }
 0x1a5   : > { %2013 = vmatmul.f32.gmra.mxu3 %v2464_v23 }
 0x1a6   : > { %v1497_v49 = vpop.f32.mrf.mxu2  ;;  %v1723_v52 = vpop.f32.mrf.mxu0 }
 0x1a7   : > { %v1498_v3 = vadd.f32 %v1497_v49, %v1385_v5  ;;  %v2434_v49 = vld [vmem:[%s2673_s22 + $0x98] sm:$0xff] }
 0x1a8   : > { %v1387_v11 = vpop.f32.mrf.mxu1  ;;  %v1610_v45 = vpop.f32.mrf.mxu3 }
 0x1a9   : > { %v1611_v59 = vadd.f32 %v1610_v45, %v1498_v3  ;;  %2126 = vmatmul.f32.gmra.mxu0 %v2496_v30  ;;  %v1388_v20 = vadd.f32 %v1387_v11, %v3086_v56  ;;  %v2466_v45 = vld [vmem:[%s2673_s22 + $0x99] sm:$0xff] }
 0x1ab   : > { %v3539_v28 = vadd.f32 %v1723_v52, %v1611_v59  ;;  %1790 = vmatmul.f32.gmra.mxu1 %v2495_v41  ;;  %1903 = vmatmul.f32.gmra.mxu2 %v2433_v51  ;;  %v2498_v51 = vld [vmem:[%s2673_s22 + $0x9a] sm:$0xff] }
 0x1ad   : > { %2016 = vmatmul.f32.gmra.mxu3 %v2465_v36 }
 0x1ae   : > { %v1500_v22 = vpop.f32.mrf.mxu2  ;;  %v1726_v2 = vpop.f32.mrf.mxu0 }
 0x1af   : > { %v1501_v15 = vadd.f32 %v1500_v22, %v1388_v20  ;;  %v2435_v22 = vld [vmem:[%s2673_s22 + $0xa8] sm:$0xff] }
 0x1b0   : > { %v1390_v23 = vpop.f32.mrf.mxu1  ;;  %v1613_v5 = vpop.f32.mrf.mxu3 }
 0x1b1   : > { %v1614_v3 = vadd.f32 %v1613_v5, %v1501_v15  ;;  %2129 = vmatmul.f32.gmra.mxu0 %v2497_v31  ;;  %v1391_v56 = vadd.f32 %v1390_v23, %v3102_v6  ;;  %v2467_v5 = vld [vmem:[%s2673_s22 + $0xa9] sm:$0xff] }
 0x1b3   : > { %v3545_v52 = vadd.f32 %v1726_v2, %v1614_v3  ;;  %1793 = vmatmul.f32.gmra.mxu1 %v2496_v30  ;;  %1906 = vmatmul.f32.gmra.mxu2 %v2434_v49  ;;  %v2499_v49 = vld [vmem:[%s2673_s22 + $0xaa] sm:$0xff] }
 0x1b5   : > { %2019 = vmatmul.f32.gmra.mxu3 %v2466_v45 }
 0x1b6   : > { %v1503_v41 = vpop.f32.mrf.mxu2  ;;  %v1729_v11 = vpop.f32.mrf.mxu0 }
 0x1b7   : > { %v1504_v59 = vadd.f32 %v1503_v41, %v1391_v56  ;;  %v2436_v41 = vld [vmem:[%s2673_s22 + $0xb0] sm:$0xff] }
 0x1b8   : > { %v1393_v36 = vpop.f32.mrf.mxu1  ;;  %v1616_v20 = vpop.f32.mrf.mxu3 }
 0x1b9   : > { %v1617_v15 = vadd.f32 %v1616_v20, %v1504_v59  ;;  %2132 = vmatmul.f32.gmra.mxu0 %v2498_v51  ;;  %v1394_v6 = vadd.f32 %v1393_v36, %v3124_v18  ;;  %v2468_v20 = vld [vmem:[%s2673_s22 + $0xb1] sm:$0xff] }
 0x1bb   : > { %v3551_v2 = vadd.f32 %v1729_v11, %v1617_v15  ;;  %1796 = vmatmul.f32.gmra.mxu1 %v2497_v31  ;;  %1909 = vmatmul.f32.gmra.mxu2 %v2435_v22  ;;  %v2500_v22 = vld [vmem:[%s2673_s22 + $0xb2] sm:$0xff] }
 0x1bd   : > { %2022 = vmatmul.f32.gmra.mxu3 %v2467_v5 }
 0x1be   : > { %v1506_v30 = vpop.f32.mrf.mxu2  ;;  %v1732_v23 = vpop.f32.mrf.mxu0 }
 0x1bf   : > { %v1507_v3 = vadd.f32 %v1506_v30, %v1394_v6  ;;  %v2437_v30 = vld [vmem:[%s2673_s22 + $0xc0] sm:$0xff] }
 0x1c0   : > { %v1396_v45 = vpop.f32.mrf.mxu1  ;;  %v1619_v56 = vpop.f32.mrf.mxu3 }
 0x1c1   : > { %v1620_v59 = vadd.f32 %v1619_v56, %v1507_v3  ;;  %2135 = vmatmul.f32.gmra.mxu0 %v2499_v49  ;;  %v1397_v18 = vadd.f32 %v1396_v45, %v3140_v27  ;;  %v2469_v56 = vld [vmem:[%s2673_s22 + $0xc1] sm:$0xff] }
 0x1c3   : > { %v3557_v11 = vadd.f32 %v1732_v23, %v1620_v59  ;;  %1799 = vmatmul.f32.gmra.mxu1 %v2498_v51  ;;  %1912 = vmatmul.f32.gmra.mxu2 %v2436_v41  ;;  %v2501_v41 = vld [vmem:[%s2673_s22 + $0xc2] sm:$0xff] }
 0x1c5   : > { %2025 = vmatmul.f32.gmra.mxu3 %v2468_v20 }
 0x1c6   : > { %v1509_v31 = vpop.f32.mrf.mxu2  ;;  %v1735_v36 = vpop.f32.mrf.mxu0 }
 0x1c7   : > { %v1510_v15 = vadd.f32 %v1509_v31, %v1397_v18  ;;  %v2438_v31 = vld [vmem:[%s2673_s22 + $0xc8] sm:$0xff] }
 0x1c8   : > { %v1399_v5 = vpop.f32.mrf.mxu1  ;;  %v1622_v6 = vpop.f32.mrf.mxu3 }
 0x1c9   : > { %v1623_v3 = vadd.f32 %v1622_v6, %v1510_v15  ;;  %2138 = vmatmul.f32.gmra.mxu0 %v2500_v22  ;;  %v1400_v27 = vadd.f32 %v1399_v5, %v3162_v16  ;;  %v2470_v6 = vld [vmem:[%s2673_s22 + $0xc9] sm:$0xff] }
 0x1cb   : > { %v3563_v23 = vadd.f32 %v1735_v36, %v1623_v3  ;;  %1802 = vmatmul.f32.gmra.mxu1 %v2499_v49  ;;  %1915 = vmatmul.f32.gmra.mxu2 %v2437_v30  ;;  %v2502_v30 = vld [vmem:[%s2673_s22 + $0xca] sm:$0xff] }
 0x1cd   : > { %2028 = vmatmul.f32.gmra.mxu3 %v2469_v56 }
 0x1ce   : > { %v1512_v51 = vpop.f32.mrf.mxu2  ;;  %v1738_v45 = vpop.f32.mrf.mxu0 }
 0x1cf   : > { %v1513_v59 = vadd.f32 %v1512_v51, %v1400_v27  ;;  %v2439_v51 = vld [vmem:[%s2673_s22 + $0xd8] sm:$0xff] }
 0x1d0   : > { %v1402_v20 = vpop.f32.mrf.mxu1  ;;  %v1625_v18 = vpop.f32.mrf.mxu3 }
 0x1d1   : > { %v1626_v15 = vadd.f32 %v1625_v18, %v1513_v59  ;;  %2141 = vmatmul.f32.gmra.mxu0 %v2501_v41  ;;  %v1403_v16 = vadd.f32 %v1402_v20, %v3178_v55  ;;  %v2471_v18 = vld [vmem:[%s2673_s22 + $0xd9] sm:$0xff] }
 0x1d3   : > { %v3569_v36 = vadd.f32 %v1738_v45, %v1626_v15  ;;  %1805 = vmatmul.f32.gmra.mxu1 %v2500_v22  ;;  %1918 = vmatmul.f32.gmra.mxu2 %v2438_v31  ;;  %v2503_v31 = vld [vmem:[%s2673_s22 + $0xda] sm:$0xff] }
 0x1d5   : > { %3739 = vst [vmem:[#allocation14_spill] sm:$0xff] %v3569_v36  ;;  %2031 = vmatmul.f32.gmra.mxu3 %v2470_v6 }
 0x1d6   : > { %v1515_v49 = vpop.f32.mrf.mxu2  ;;  %v1741_v5 = vpop.f32.mrf.mxu0 }
 0x1d7   : > { %v1516_v3 = vadd.f32 %v1515_v49, %v1403_v16  ;;  %v2440_v49 = vld [vmem:[%s2673_s22 + $0xe0] sm:$0xff] }
 0x1d8   : > { %v1405_v56 = vpop.f32.mrf.mxu1  ;;  %v1628_v27 = vpop.f32.mrf.mxu3 }
 0x1d9   : > { %v1629_v59 = vadd.f32 %v1628_v27, %v1516_v3  ;;  %2144 = vmatmul.f32.gmra.mxu0 %v2502_v30  ;;  %v1406_v55 = vadd.f32 %v1405_v56, %v3200_v9  ;;  %v2472_v27 = vld [vmem:[%s2673_s22 + $0xe1] sm:$0xff] }
 0x1da   : > { %v2504_v56 = vld [vmem:[%s2673_s22 + $0xe2] sm:$0xff] }
 0x1db   : > { %v3575_v45 = vadd.f32 %v1741_v5, %v1629_v59  ;;  %1808 = vmatmul.f32.gmra.mxu1 %v2501_v41  ;;  %1921 = vmatmul.f32.gmra.mxu2 %v2439_v51 }
 0x1dd   : > { %2034 = vmatmul.f32.gmra.mxu3 %v2471_v18 }
 0x1de   : > { %v1518_v22 = vpop.f32.mrf.mxu2  ;;  %v1744_v20 = vpop.f32.mrf.mxu0 }
 0x1df   : > { %v1519_v15 = vadd.f32 %v1518_v22, %v1406_v55  ;;  %v2441_v55 = vld [vmem:[%s2673_s22 + $0xf0] sm:$0xff] }
 0x1e0   : > { %v1408_v6 = vpop.f32.mrf.mxu1  ;;  %v1631_v16 = vpop.f32.mrf.mxu3 }
 0x1e1   : > { %v1632_v3 = vadd.f32 %v1631_v16, %v1519_v15  ;;  %2147 = vmatmul.f32.gmra.mxu0 %v2503_v31  ;;  %v1409_v41 = vadd.f32 %v1408_v6, %v3214_v34  ;;  %v2505_v6 = vld [vmem:[%s2673_s22 + $0xf2] sm:$0xff] }
 0x1e3   : > { %v3581_v36 = vadd.f32 %v1744_v20, %v1632_v3  ;;  %1811 = vmatmul.f32.gmra.mxu1 %v2502_v30  ;;  %1924 = vmatmul.f32.gmra.mxu2 %v2440_v49 }
 0x1e5   : > { %2037 = vmatmul.f32.gmra.mxu3 %v2472_v27  ;;  %v2442_v27 = vld [vmem:[%s2673_s22 + $0xf8] sm:$0xff] }
 0x1e6   : > { %v1521_v9 = vpop.f32.mrf.mxu2  ;;  %v1747_v5 = vpop.f32.mrf.mxu0 }
 0x1e7   : > { %v1522_v51 = vadd.f32 %v1521_v9, %v1409_v41 }
 0x1e8   : > { %v1634_v59 = vpop.f32.mrf.mxu3  ;;  %v1767_v18 = vpop.f32.mrf.mxu1 }
 0x1e9   : > { %v1635_v22 = vadd.f32 %v1634_v59, %v1522_v51  ;;  %2150 = vmatmul.f32.gmra.mxu0 %v2504_v56  ;;  %v1768_v30 = vadd.f32 %v1767_v18, %v3232_v57  ;;  %v2506_v51 = vld [vmem:[%s2673_s22 + $0xfa] sm:$0xff] }
 0x1eb   : > { %v3586_v15 = vadd.f32 %v1747_v5, %v1635_v22  ;;  %1814 = vmatmul.f32.gmra.mxu1 %v2503_v31  ;;  %1927 = vmatmul.f32.gmra.mxu2 %v2441_v55  ;;  %v2443_v55 = vld [vmem:[%s2673_s22 + $0x108] sm:$0xff] }
 0x1ed   : > { %2040 = vmatmul.f32.gmra.mxu3 %v3252_v58 }
 0x1ee   : > { %v1880_v34 = vpop.f32.mrf.mxu2  ;;  %v2106_v20 = vpop.f32.mrf.mxu0 }
 0x1ef   : > { %v1881_v16 = vadd.f32 %v1880_v34, %v1768_v30 }
 0x1f0   : > { %v1770_v49 = vpop.f32.mrf.mxu1  ;;  %v1993_v3 = vpop.f32.mrf.mxu3 }
 0x1f1   : > { %v1994_v41 = vadd.f32 %v1993_v3, %v1881_v16  ;;  %2153 = vmatmul.f32.gmra.mxu0 %v2505_v6  ;;  %v1771_v57 = vadd.f32 %v1770_v49, %v3242_v25  ;;  %v2507_v16 = vld [vmem:[%s2673_s22 + $0x10a] sm:$0xff] }
 0x1f3   : > { %v2107_v9 = vadd.f32 %v2106_v20, %v1994_v41  ;;  %1817 = vmatmul.f32.gmra.mxu1 %v2504_v56  ;;  %1930 = vmatmul.f32.gmra.mxu2 %v2442_v27  ;;  %v2444_v41 = vld [vmem:[%s2673_s22 + $0x110] sm:$0xff] }
 0x1f5   : > { %v2202_v58 = vmax.f32 %v2107_v9, 0.0  ;;  %2043 = vmatmul.f32.gmra.mxu3 %v3268_v60 }
 0x1f6   : > { %v1883_v31 = vpop.f32.mrf.mxu2  ;;  %v2109_v5 = vpop.f32.mrf.mxu0 }
 0x1f7   : > { %2234 = vst [vmem:[%s3596_s21] sm:$0xff] %v2202_v58  ;;  %v1884_v59 = vadd.f32 %v1883_v31, %v1771_v57 }
 0x1f8   : > { %v1773_v56 = vpop.f32.mrf.mxu1  ;;  %v1996_v18 = vpop.f32.mrf.mxu3 }
 0x1f9   : > { %v1997_v22 = vadd.f32 %v1996_v18, %v1884_v59  ;;  %2156 = vmatmul.f32.gmra.mxu0 %v2506_v51  ;;  %v1774_v25 = vadd.f32 %v1773_v56, %v3261_v42  ;;  %v2445_v56 = vld [vmem:[%s2673_s22 + $0x120] sm:$0xff] }
 0x1fb   : > { %v2110_v30 = vadd.f32 %v2109_v5, %v1997_v22  ;;  %1820 = vmatmul.f32.gmra.mxu1 %v2505_v6  ;;  %1933 = vmatmul.f32.gmra.mxu2 %v2443_v55 }
 0x1fd   : > { %v2203_v34 = vmax.f32 %v2110_v30, 0.0  ;;  %2046 = vmatmul.f32.gmra.mxu3 %v3285_v19 }
 0x1fe   : > { %v1886_v60 = vpop.f32.mrf.mxu2  ;;  %v2112_v20 = vpop.f32.mrf.mxu0 }
 0x1ff   : > { %2235 = vst [vmem:[%s3596_s21 + $0x8] sm:$0xff] %v2203_v34  ;;  %v1887_v49 = vadd.f32 %v1886_v60, %v1774_v25  ;;  %v2414_v60 = vld [vmem:[%s2673_s22 + $0x112] sm:$0xff] }
 0x200   : > { %v1776_v3 = vpop.f32.mrf.mxu1  ;;  %v1999_v27 = vpop.f32.mrf.mxu3 }
 0x201   : > { %v2000_v9 = vadd.f32 %v1999_v27, %v1887_v49  ;;  %2159 = vmatmul.f32.gmra.mxu0 %v2507_v16  ;;  %v1777_v42 = vadd.f32 %v1776_v3, %v3274_v17 }
 0x203   : > { %v2113_v57 = vadd.f32 %v2112_v20, %v2000_v9  ;;  %1823 = vmatmul.f32.gmra.mxu1 %v2506_v51  ;;  %1936 = vmatmul.f32.gmra.mxu2 %v2444_v41  ;;  %v2446_v20 = vld [vmem:[%s2673_s22 + $0x128] sm:$0xff] }
 0x205   : > { %v2204_v6 = vmax.f32 %v2113_v57, 0.0  ;;  %2049 = vmatmul.f32.gmra.mxu3 %v3302_v40  ;;  %v2415_v57 = vld [vmem:[%s2673_s22 + $0x122] sm:$0xff] }
 0x206   : > { %v1889_v19 = vpop.f32.mrf.mxu2  ;;  %v2115_v58 = vpop.f32.mrf.mxu0 }
 0x207   : > { %2236 = vst [vmem:[%s3596_s21 + $0x10] sm:$0xff] %v2204_v6  ;;  %v1890_v31 = vadd.f32 %v1889_v19, %v1777_v42  ;;  %v2447_v42 = vld [vmem:[%s2673_s22 + $0x138] sm:$0xff] }
 0x208   : > { %v1779_v5 = vpop.f32.mrf.mxu1  ;;  %v2002_v59 = vpop.f32.mrf.mxu3 }
 0x209   : > { %v2003_v18 = vadd.f32 %v2002_v59, %v1890_v31  ;;  %2162 = vmatmul.f32.gmra.mxu0 %v3325_v63  ;;  %v1780_v17 = vadd.f32 %v1779_v5, %v3294_v37 }
 0x20b   : > { %v2116_v51 = vadd.f32 %v2115_v58, %v2003_v18  ;;  %1826 = vmatmul.f32.gmra.mxu1 %v2507_v16  ;;  %1939 = vmatmul.f32.gmra.mxu2 %v2445_v56  ;;  %v2416_v56 = vld [vmem:[%s2673_s22 + $0x12a] sm:$0xff]  ;;  %v2448_v18 = vld [vmem:[%s2673_s22 + $0x140] sm:$0xff] }
 0x20d   : > { %v2205_v55 = vmax.f32 %v2116_v51, 0.0  ;;  %2052 = vmatmul.f32.gmra.mxu3 %v3319_v12 }
 0x20e   : > { %v1892_v40 = vpop.f32.mrf.mxu2  ;;  %v2118_v22 = vpop.f32.mrf.mxu0 }
 0x20f   : > { %2237 = vst [vmem:[%s3596_s21 + $0x18] sm:$0xff] %v2205_v55  ;;  %v1893_v30 = vadd.f32 %v1892_v40, %v1780_v17 }
 0x210   : > { %v1782_v25 = vpop.f32.mrf.mxu1  ;;  %v2005_v34 = vpop.f32.mrf.mxu3 }
 0x211   : > { %v2006_v63 = vadd.f32 %v2005_v34, %v1893_v30  ;;  %2165 = vmatmul.f32.gmra.mxu0 %v3342_v43  ;;  %v1783_v37 = vadd.f32 %v1782_v25, %v3309_v4  ;;  %v2417_v25 = vld [vmem:[%s2673_s22 + $0x13a] sm:$0xff]  ;;  %v2449_v34 = vld [vmem:[%s2673_s22 + $0x150] sm:$0xff] }
 0x213   : > { %v2119_v16 = vadd.f32 %v2118_v22, %v2006_v63  ;;  %1829 = vmatmul.f32.gmra.mxu1 %v2414_v60  ;;  %1942 = vmatmul.f32.gmra.mxu2 %v2446_v20 }
 0x215   : > { %v2206_v12 = vmax.f32 %v2119_v16, 0.0  ;;  %2055 = vmatmul.f32.gmra.mxu3 %v3339_v48 }
 0x216   : > { %v1895_v49 = vpop.f32.mrf.mxu2  ;;  %v2121_v3 = vpop.f32.mrf.mxu0 }
 0x217   : > { %2238 = vst [vmem:[%s3596_s21 + $0x20] sm:$0xff] %v2206_v12  ;;  %v1896_v27 = vadd.f32 %v1895_v49, %v1783_v37  ;;  %v2418_v49 = vld [vmem:[%s2673_s22 + $0x142] sm:$0xff] }
 0x218   : > { %v1785_v41 = vpop.f32.mrf.mxu1  ;;  %v2008_v9 = vpop.f32.mrf.mxu3 }
 0x219   : > { %v2009_v43 = vadd.f32 %v2008_v9, %v1896_v27  ;;  %2168 = vmatmul.f32.gmra.mxu0 %v3365_v32  ;;  %v1786_v4 = vadd.f32 %v1785_v41, %v3331_v29 }
 0x21b   : > { %v2122_v6 = vadd.f32 %v2121_v3, %v2009_v43  ;;  %1832 = vmatmul.f32.gmra.mxu1 %v2415_v57  ;;  %1945 = vmatmul.f32.gmra.mxu2 %v2447_v42  ;;  %v2450_v3 = vld [vmem:[%s2673_s22 + $0x158] sm:$0xff] }
 0x21d   : > { %v2207_v48 = vmax.f32 %v2122_v6, 0.0  ;;  %2058 = vmatmul.f32.gmra.mxu3 %v3359_v35  ;;  %v2419_v6 = vld [vmem:[%s2673_s22 + $0x152] sm:$0xff] }
 0x21e   : > { %v1898_v19 = vpop.f32.mrf.mxu2  ;;  %v2124_v58 = vpop.f32.mrf.mxu0 }
 0x21f   : > { %2239 = vst [vmem:[%s3596_s21 + $0x28] sm:$0xff] %v2207_v48  ;;  %v1899_v31 = vadd.f32 %v1898_v19, %v1786_v4  ;;  %v2451_v4 = vld [vmem:[%s2673_s22 + $0x168] sm:$0xff] }
 0x220   : > { %v1788_v5 = vpop.f32.mrf.mxu1  ;;  %v2011_v59 = vpop.f32.mrf.mxu3 }
 0x221   : > { %v2012_v32 = vadd.f32 %v2011_v59, %v1899_v31  ;;  %2171 = vmatmul.f32.gmra.mxu0 %v3382_v46  ;;  %v1789_v29 = vadd.f32 %v1788_v5, %v3348_v61 }
 0x223   : > { %v2125_v51 = vadd.f32 %v2124_v58, %v2012_v32  ;;  %1835 = vmatmul.f32.gmra.mxu1 %v2416_v56  ;;  %1948 = vmatmul.f32.gmra.mxu2 %v2448_v18  ;;  %v3740_v32 = vld [vmem:[#allocation4_spill] sm:$0xff] }
 0x225   : > { %v2208_v35 = vmax.f32 %v2125_v51, 0.0  ;;  %2061 = vmatmul.f32.gmra.mxu3 %v3379_v13  ;;  %v3741_v51 = vld [vmem:[#allocation3_spill] sm:$0xff] }
 0x226   : > { %v1901_v17 = vpop.f32.mrf.mxu2  ;;  %v2127_v55 = vpop.f32.mrf.mxu0 }
 0x227   : > { %2240 = vst [vmem:[%s3596_s21 + $0x30] sm:$0xff] %v2208_v35  ;;  %v1902_v40 = vadd.f32 %v1901_v17, %v1789_v29  ;;  %v3742_v35 = vld [vmem:[#allocation6_spill] sm:$0xff] }
 0x228   : > { %v1791_v22 = vpop.f32.mrf.mxu1  ;;  %v2014_v30 = vpop.f32.mrf.mxu3 }
 0x229   : > { %v2015_v46 = vadd.f32 %v2014_v30, %v1902_v40  ;;  %2174 = vmatmul.f32.gmra.mxu0 %v3405_v33  ;;  %v1792_v61 = vadd.f32 %v1791_v22, %v3371_v50 }
 0x22b   : > { %v2128_v60 = vadd.f32 %v2127_v55, %v2015_v46  ;;  %1838 = vmatmul.f32.gmra.mxu1 %v2417_v25  ;;  %1951 = vmatmul.f32.gmra.mxu2 %v2449_v34  ;;  %v3743_v25 = vld [vmem:[#allocation10_spill] sm:$0xff]  ;;  %v3745_v46 = vld [vmem:[#allocation5_spill] sm:$0xff] }
 0x22d   : > { %v2209_v13 = vmax.f32 %v2128_v60, 0.0  ;;  %2064 = vmatmul.f32.gmra.mxu3 %v3399_v0 }
 0x22e   : > { %v1904_v20 = vpop.f32.mrf.mxu2  ;;  %v2130_v63 = vpop.f32.mrf.mxu0 }
 0x22f   : > { %2241 = vst [vmem:[%s3596_s21 + $0x38] sm:$0xff] %v2209_v13  ;;  %v1905_v16 = vadd.f32 %v1904_v20, %v1792_v61  ;;  %v3746_v13 = vld [vmem:[#allocation9_spill] sm:$0xff] }
 0x230   : > { %v1794_v37 = vpop.f32.mrf.mxu1  ;;  %v2017_v12 = vpop.f32.mrf.mxu3 }
 0x231   : > { %v2018_v33 = vadd.f32 %v2017_v12, %v1905_v16  ;;  %2177 = vmatmul.f32.gmra.mxu0 %v3422_v1  ;;  %v1795_v50 = vadd.f32 %v1794_v37, %v3388_v62  ;;  %v2517_v16 = vld [vmem:[%s2673_s22 + $0x182] sm:$0xff] }
 0x233   : > { %v2131_v27 = vadd.f32 %v2130_v63, %v2018_v33  ;;  %1841 = vmatmul.f32.gmra.mxu1 %v2418_v49  ;;  %1954 = vmatmul.f32.gmra.mxu2 %v2450_v3  ;;  %v3747_v33 = vld [vmem:[#allocation11_spill] sm:$0xff] }
 0x235   : > { %v2210_v0 = vmax.f32 %v2131_v27, 0.0  ;;  %2067 = vmatmul.f32.gmra.mxu3 %v3419_v21  ;;  %v3748_v27 = vld [vmem:[#allocation8_spill] sm:$0xff] }
 0x236   : > { %v1907_v41 = vpop.f32.mrf.mxu2  ;;  %v2133_v9 = vpop.f32.mrf.mxu0 }
 0x237   : > { %2242 = vst [vmem:[%s3596_s21 + $0x40] sm:$0xff] %v2210_v0  ;;  %v1908_v57 = vadd.f32 %v1907_v41, %v1795_v50 }
 0x238   : > { %v1797_v42 = vpop.f32.mrf.mxu1  ;;  %v2020_v43 = vpop.f32.mrf.mxu3 }
 0x239   : > { %v2021_v48 = vadd.f32 %v2020_v43, %v1908_v57  ;;  %2180 = vmatmul.f32.gmra.mxu0 %v3436_v47  ;;  %v1798_v62 = vadd.f32 %v1797_v42, %v3411_v44  ;;  %v2518_v57 = vld [vmem:[%s2673_s22 + $0x18a] sm:$0xff] }
 0x23b   : > { %v2134_v1 = vadd.f32 %v2133_v9, %v2021_v48  ;;  %1844 = vmatmul.f32.gmra.mxu1 %v2419_v6  ;;  %1957 = vmatmul.f32.gmra.mxu2 %v2451_v4  ;;  %v2455_v4 = vld [vmem:[%s2673_s22 + $0x198] sm:$0xff] }
 0x23d   : > { %v2211_v19 = vmax.f32 %v2134_v1, 0.0  ;;  %2070 = vmatmul.f32.gmra.mxu3 %v3433_v39  ;;  %v2487_v1 = vld [vmem:[%s2673_s22 + $0x199] sm:$0xff] }
 0x23e   : > { %v1910_v21 = vpop.f32.mrf.mxu2  ;;  %v2136_v58 = vpop.f32.mrf.mxu0 }
 0x23f   : > { %2243 = vst [vmem:[%s3596_s21 + $0x48] sm:$0xff] %v2211_v19  ;;  %v1911_v31 = vadd.f32 %v1910_v21, %v1798_v62  ;;  %v3749_v19 = vld [vmem:[#allocation12_spill] sm:$0xff] }
 0x240   : > { %v1800_v5 = vpop.f32.mrf.mxu1  ;;  %v2023_v59 = vpop.f32.mrf.mxu3 }
 0x241   : > { %v2024_v56 = vadd.f32 %v2023_v59, %v1911_v31  ;;  %2183 = vmatmul.f32.gmra.mxu0 %v3453_v53  ;;  %v1801_v44 = vadd.f32 %v1800_v5, %v3741_v51  ;;  %v2519_v5 = vld [vmem:[%s2673_s22 + $0x19a] sm:$0xff] }
 0x243   : > { %v2137_v18 = vadd.f32 %v2136_v58, %v2024_v56  ;;  %1847 = vmatmul.f32.gmra.mxu1 %v3436_v47  ;;  %1960 = vmatmul.f32.gmra.mxu2 %v3740_v32  ;;  %v3744_v47 = vld [vmem:[#allocation7_spill] sm:$0xff] }
 0x244   : > { %v2456_v32 = vld [vmem:[%s2673_s22 + $0x1a0] sm:$0xff] }
 0x245   : > { %v2212_v29 = vmax.f32 %v2137_v18, 0.0  ;;  %2073 = vmatmul.f32.gmra.mxu3 %v3742_v35  ;;  %v3750_v35 = vld [vmem:[#allocation13_spill] sm:$0xff] }
 0x246   : > { %v1913_v39 = vpop.f32.mrf.mxu2  ;;  %v2139_v17 = vpop.f32.mrf.mxu0 }
 0x247   : > { %2244 = vst [vmem:[%s3596_s21 + $0x50] sm:$0xff] %v2212_v29  ;;  %v1914_v55 = vadd.f32 %v1913_v39, %v1801_v44  ;;  %v2488_v44 = vld [vmem:[%s2673_s22 + $0x1a1] sm:$0xff] }
 0x248   : > { %v1803_v40 = vpop.f32.mrf.mxu1  ;;  %v2026_v22 = vpop.f32.mrf.mxu3 }
 0x249   : > { %v2027_v30 = vadd.f32 %v2026_v22, %v1914_v55  ;;  %2186 = vmatmul.f32.gmra.mxu0 %v3743_v25  ;;  %v1804_v60 = vadd.f32 %v1803_v40, %v3745_v46  ;;  %v2520_v22 = vld [vmem:[%s2673_s22 + $0x1a2] sm:$0xff] }
 0x24b   : > { %v2140_v34 = vadd.f32 %v2139_v17, %v2027_v30  ;;  %1850 = vmatmul.f32.gmra.mxu1 %v3453_v53  ;;  %1963 = vmatmul.f32.gmra.mxu2 %v3744_v47 }
 0x24d   : > { %v2213_v61 = vmax.f32 %v2140_v34, 0.0  ;;  %2076 = vmatmul.f32.gmra.mxu3 %v3746_v13 }
 0x24e   : > { %v1916_v20 = vpop.f32.mrf.mxu2  ;;  %v2142_v63 = vpop.f32.mrf.mxu0 }
 0x24f   : > { %2245 = vst [vmem:[%s3596_s21 + $0x58] sm:$0xff] %v2213_v61  ;;  %v1917_v37 = vadd.f32 %v1916_v20, %v1804_v60 }
 0x250   : > { %v1806_v12 = vpop.f32.mrf.mxu1  ;;  %v2029_v49 = vpop.f32.mrf.mxu3 }
 0x251   : > { %v2030_v3 = vadd.f32 %v2029_v49, %v1917_v37  ;;  %2189 = vmatmul.f32.gmra.mxu0 %v2517_v16  ;;  %v1807_v50 = vadd.f32 %v1806_v12, %v3748_v27 }
 0x253   : > { %v2143_v53 = vadd.f32 %v2142_v63, %v2030_v3  ;;  %1853 = vmatmul.f32.gmra.mxu1 %v3743_v25  ;;  %1966 = vmatmul.f32.gmra.mxu2 %v3747_v33 }
 0x255   : > { %v2214_v0 = vmax.f32 %v2143_v53, 0.0  ;;  %2079 = vmatmul.f32.gmra.mxu3 %v3484_v8 }
 0x256   : > { %v1919_v41 = vpop.f32.mrf.mxu2  ;;  %v2145_v9 = vpop.f32.mrf.mxu0 }
 0x257   : > { %2246 = vst [vmem:[%s3596_s21 + $0x60] sm:$0xff] %v2214_v0  ;;  %v1920_v42 = vadd.f32 %v1919_v41, %v1807_v50 }
 0x258   : > { %v1809_v43 = vpop.f32.mrf.mxu1  ;;  %v2032_v6 = vpop.f32.mrf.mxu3 }
 0x259   : > { %v2033_v48 = vadd.f32 %v2032_v6, %v1920_v42  ;;  %2192 = vmatmul.f32.gmra.mxu0 %v2518_v57  ;;  %v1810_v8 = vadd.f32 %v1809_v43, %v3749_v19 }
 0x25b   : > { %v2146_v62 = vadd.f32 %v2145_v9, %v2033_v48  ;;  %1856 = vmatmul.f32.gmra.mxu1 %v2517_v16  ;;  %1969 = vmatmul.f32.gmra.mxu2 %v2455_v4 }
 0x25d   : > { %v2215_v21 = vmax.f32 %v2146_v62, 0.0  ;;  %2082 = vmatmul.f32.gmra.mxu3 %v2487_v1 }
 0x25e   : > { %v1922_v58 = vpop.f32.mrf.mxu2  ;;  %v2148_v31 = vpop.f32.mrf.mxu0 }
 0x25f   : > { %2247 = vst [vmem:[%s3596_s21 + $0x68] sm:$0xff] %v2215_v21  ;;  %v1923_v59 = vadd.f32 %v1922_v58, %v1810_v8 }
 0x260   : > { %v1812_v56 = vpop.f32.mrf.mxu1  ;;  %v2035_v18 = vpop.f32.mrf.mxu3 }
 0x261   : > { %v2036_v51 = vadd.f32 %v2035_v18, %v1923_v59  ;;  %2195 = vmatmul.f32.gmra.mxu0 %v2519_v5  ;;  %v1813_v39 = vadd.f32 %v1812_v56, %v3750_v35 }
 0x263   : > { %v2149_v29 = vadd.f32 %v2148_v31, %v2036_v51  ;;  %1859 = vmatmul.f32.gmra.mxu1 %v2518_v57  ;;  %1972 = vmatmul.f32.gmra.mxu2 %v2456_v32 }
 0x265   : > { %v2216_v17 = vmax.f32 %v2149_v29, 0.0  ;;  %2085 = vmatmul.f32.gmra.mxu3 %v2488_v44 }
 0x266   : > { %v1925_v55 = vpop.f32.mrf.mxu2  ;;  %v2151_v40 = vpop.f32.mrf.mxu0 }
 0x267   : > { %2248 = vst [vmem:[%s3596_s21 + $0x70] sm:$0xff] %v2216_v17  ;;  %v1926_v30 = vadd.f32 %v1925_v55, %v1813_v39 }
 0x268   : > { %v1815_v25 = vpop.f32.mrf.mxu1  ;;  %v2038_v34 = vpop.f32.mrf.mxu3 }
 0x269   : > { %v2039_v47 = vadd.f32 %v2038_v34, %v1926_v30  ;;  %2198 = vmatmul.f32.gmra.mxu0 %v2520_v22  ;;  %v1816_v60 = vadd.f32 %v1815_v25, %v3497_v7 }
 0x26b   : > { %v2152_v46 = vadd.f32 %v2151_v40, %v2039_v47 }
 0x26d   : > { %v2217_v61 = vmax.f32 %v2152_v46, 0.0 }
 0x26e   : > { %v1928_v13 = vpop.f32.mrf.mxu2  ;;  %v2154_v20 = vpop.f32.mrf.mxu0 }
 0x26f   : > { %2249 = vst [vmem:[%s3596_s21 + $0x78] sm:$0xff] %v2217_v61  ;;  %v1929_v63 = vadd.f32 %v1928_v13, %v1816_v60 }
 0x270   : > { %v1818_v16 = vpop.f32.mrf.mxu1  ;;  %v2041_v37 = vpop.f32.mrf.mxu3 }
 0x271   : > { %v2042_v12 = vadd.f32 %v2041_v37, %v1929_v63  ;;  %v1819_v3 = vadd.f32 %v1818_v16, %v3503_v54 }
 0x273   : > { %v2155_v49 = vadd.f32 %v2154_v20, %v2042_v12 }
 0x275   : > { %v2218_v53 = vmax.f32 %v2155_v49, 0.0 }
 0x276   : > { %v1931_v33 = vpop.f32.mrf.mxu2  ;;  %v2157_v27 = vpop.f32.mrf.mxu0 }
 0x277   : > { %2250 = vst [vmem:[%s3596_s21 + $0x80] sm:$0xff] %v2218_v53  ;;  %v1932_v50 = vadd.f32 %v1931_v33, %v1819_v3 }
 0x278   : > { %v1821_v0 = vpop.f32.mrf.mxu1  ;;  %v2044_v41 = vpop.f32.mrf.mxu3 }
 0x279   : > { %v2045_v7 = vadd.f32 %v2044_v41, %v1932_v50  ;;  %v1822_v57 = vadd.f32 %v1821_v0, %v3509_v24 }
 0x27b   : > { %v2158_v9 = vadd.f32 %v2157_v27, %v2045_v7 }
 0x27d   : > { %v2219_v42 = vmax.f32 %v2158_v9, 0.0 }
 0x27e   : > { %v1934_v43 = vpop.f32.mrf.mxu2  ;;  %v2160_v6 = vpop.f32.mrf.mxu0 }
 0x27f   : > { %2251 = vst [vmem:[%s3596_s21 + $0x88] sm:$0xff] %v2219_v42  ;;  %v1935_v4 = vadd.f32 %v1934_v43, %v1822_v57 }
 0x280   : > { %v1824_v48 = vpop.f32.mrf.mxu1  ;;  %v2047_v1 = vpop.f32.mrf.mxu3 }
 0x281   : > { %v2048_v54 = vadd.f32 %v2047_v1, %v1935_v4  ;;  %v1825_v19 = vadd.f32 %v1824_v48, %v3515_v14 }
 0x283   : > { %v2161_v62 = vadd.f32 %v2160_v6, %v2048_v54 }
 0x285   : > { %v2220_v8 = vmax.f32 %v2161_v62, 0.0 }
 0x286   : > { %v1937_v21 = vpop.f32.mrf.mxu2  ;;  %v2163_v58 = vpop.f32.mrf.mxu0 }
 0x287   : > { %2252 = vst [vmem:[%s3596_s21 + $0x90] sm:$0xff] %v2220_v8  ;;  %v1938_v31 = vadd.f32 %v1937_v21, %v1825_v19 }
 0x288   : > { %v1827_v5 = vpop.f32.mrf.mxu1  ;;  %v2050_v59 = vpop.f32.mrf.mxu3 }
 0x289   : > { %v2051_v24 = vadd.f32 %v2050_v59, %v1938_v31  ;;  %v1828_v18 = vadd.f32 %v1827_v5, %v3521_v10 }
 0x28b   : > { %v2164_v56 = vadd.f32 %v2163_v58, %v2051_v24 }
 0x28d   : > { %v2221_v32 = vmax.f32 %v2164_v56, 0.0 }
 0x28e   : > { %v1940_v51 = vpop.f32.mrf.mxu2  ;;  %v2166_v44 = vpop.f32.mrf.mxu0 }
 0x28f   : > { %2253 = vst [vmem:[%s3596_s21 + $0x98] sm:$0xff] %v2221_v32  ;;  %v1941_v29 = vadd.f32 %v1940_v51, %v1828_v18 }
 0x290   : > { %v1830_v35 = vpop.f32.mrf.mxu1  ;;  %v2053_v39 = vpop.f32.mrf.mxu3 }
 0x291   : > { %v2054_v14 = vadd.f32 %v2053_v39, %v1941_v29  ;;  %v1831_v55 = vadd.f32 %v1830_v35, %v3527_v26 }
 0x293   : > { %v2167_v17 = vadd.f32 %v2166_v44, %v2054_v14 }
 0x295   : > { %v2222_v40 = vmax.f32 %v2167_v17, 0.0 }
 0x296   : > { %v1943_v22 = vpop.f32.mrf.mxu2  ;;  %v2169_v30 = vpop.f32.mrf.mxu0 }
 0x297   : > { %2254 = vst [vmem:[%s3596_s21 + $0xa0] sm:$0xff] %v2222_v40  ;;  %v1944_v25 = vadd.f32 %v1943_v22, %v1831_v55 }
 0x298   : > { %v1833_v34 = vpop.f32.mrf.mxu1  ;;  %v2056_v47 = vpop.f32.mrf.mxu3 }
 0x299   : > { %v2057_v10 = vadd.f32 %v2056_v47, %v1944_v25  ;;  %v1834_v60 = vadd.f32 %v1833_v34, %v3533_v38 }
 0x29b   : > { %v2170_v46 = vadd.f32 %v2169_v30, %v2057_v10  ;;  %v3751_v30 = vld [vmem:[#allocation14_spill] sm:$0xff] }
 0x29d   : > { %v2223_v61 = vmax.f32 %v2170_v46, 0.0 }
 0x29e   : > { %v1946_v13 = vpop.f32.mrf.mxu2  ;;  %v2172_v20 = vpop.f32.mrf.mxu0 }
 0x29f   : > { %2255 = vst [vmem:[%s3596_s21 + $0xa8] sm:$0xff] %v2223_v61  ;;  %v1947_v63 = vadd.f32 %v1946_v13, %v1834_v60 }
 0x2a0   : > { %v1836_v16 = vpop.f32.mrf.mxu1  ;;  %v2059_v37 = vpop.f32.mrf.mxu3 }
 0x2a1   : > { %v2060_v26 = vadd.f32 %v2059_v37, %v1947_v63  ;;  %v1837_v49 = vadd.f32 %v1836_v16, %v3539_v28 }
 0x2a3   : > { %v2173_v12 = vadd.f32 %v2172_v20, %v2060_v26 }
 0x2a5   : > { %v2224_v3 = vmax.f32 %v2173_v12, 0.0 }
 0x2a6   : > { %v1949_v53 = vpop.f32.mrf.mxu2  ;;  %v2175_v33 = vpop.f32.mrf.mxu0 }
 0x2a7   : > { %2256 = vst [vmem:[%s3596_s21 + $0xb0] sm:$0xff] %v2224_v3  ;;  %v1950_v27 = vadd.f32 %v1949_v53, %v1837_v49 }
 0x2a8   : > { %v1839_v50 = vpop.f32.mrf.mxu1  ;;  %v2062_v0 = vpop.f32.mrf.mxu3 }
 0x2a9   : > { %v2063_v38 = vadd.f32 %v2062_v0, %v1950_v27  ;;  %v1840_v7 = vadd.f32 %v1839_v50, %v3545_v52 }
 0x2ab   : > { %v2176_v41 = vadd.f32 %v2175_v33, %v2063_v38 }
 0x2ad   : > { %v2225_v9 = vmax.f32 %v2176_v41, 0.0 }
 0x2ae   : > { %v1952_v57 = vpop.f32.mrf.mxu2  ;;  %v2178_v42 = vpop.f32.mrf.mxu0 }
 0x2af   : > { %2257 = vst [vmem:[%s3596_s21 + $0xb8] sm:$0xff] %v2225_v9  ;;  %v1953_v43 = vadd.f32 %v1952_v57, %v1840_v7 }
 0x2b0   : > { %v1842_v6 = vpop.f32.mrf.mxu1  ;;  %v2065_v4 = vpop.f32.mrf.mxu3 }
 0x2b1   : > { %v2066_v28 = vadd.f32 %v2065_v4, %v1953_v43  ;;  %v1843_v1 = vadd.f32 %v1842_v6, %v3551_v2 }
 0x2b3   : > { %v2179_v48 = vadd.f32 %v2178_v42, %v2066_v28 }
 0x2b5   : > { %v2226_v54 = vmax.f32 %v2179_v48, 0.0 }
 0x2b6   : > { %v1955_v62 = vpop.f32.mrf.mxu2  ;;  %v2181_v19 = vpop.f32.mrf.mxu0 }
 0x2b7   : > { %2258 = vst [vmem:[%s3596_s21 + $0xc0] sm:$0xff] %v2226_v54  ;;  %v1956_v8 = vadd.f32 %v1955_v62, %v1843_v1 }
 0x2b8   : > { %v1845_v21 = vpop.f32.mrf.mxu1  ;;  %v2068_v58 = vpop.f32.mrf.mxu3 }
 0x2b9   : > { %v2069_v52 = vadd.f32 %v2068_v58, %v1956_v8  ;;  %v1846_v5 = vadd.f32 %v1845_v21, %v3557_v11 }
 0x2bb   : > { %v2182_v31 = vadd.f32 %v2181_v19, %v2069_v52 }
 0x2bd   : > { %v2227_v59 = vmax.f32 %v2182_v31, 0.0 }
 0x2be   : > { %v1958_v24 = vpop.f32.mrf.mxu2  ;;  %v2184_v56 = vpop.f32.mrf.mxu0 }
 0x2bf   : > { %2259 = vst [vmem:[%s3596_s21 + $0xc8] sm:$0xff] %v2227_v59  ;;  %v1959_v18 = vadd.f32 %v1958_v24, %v1846_v5 }
 0x2c0   : > { %v1848_v32 = vpop.f32.mrf.mxu1  ;;  %v2071_v51 = vpop.f32.mrf.mxu3 }
 0x2c1   : > { %v2072_v2 = vadd.f32 %v2071_v51, %v1959_v18  ;;  %v1849_v29 = vadd.f32 %v1848_v32, %v3563_v23 }
 0x2c3   : > { %v2185_v44 = vadd.f32 %v2184_v56, %v2072_v2 }
 0x2c5   : > { %v2228_v35 = vmax.f32 %v2185_v44, 0.0 }
 0x2c6   : > { %v1961_v39 = vpop.f32.mrf.mxu2  ;;  %v2187_v14 = vpop.f32.mrf.mxu0 }
 0x2c7   : > { %2260 = vst [vmem:[%s3596_s21 + $0xd0] sm:$0xff] %v2228_v35  ;;  %v1962_v17 = vadd.f32 %v1961_v39, %v1849_v29 }
 0x2c8   : > { %v1851_v55 = vpop.f32.mrf.mxu1  ;;  %v2074_v40 = vpop.f32.mrf.mxu3 }
 0x2c9   : > { %v2075_v11 = vadd.f32 %v2074_v40, %v1962_v17  ;;  %v1852_v25 = vadd.f32 %v1851_v55, %v3751_v30 }
 0x2cb   : > { %v2188_v22 = vadd.f32 %v2187_v14, %v2075_v11 }
 0x2cd   : > { %v2229_v34 = vmax.f32 %v2188_v22, 0.0 }
 0x2ce   : > { %v1964_v47 = vpop.f32.mrf.mxu2  ;;  %v2190_v10 = vpop.f32.mrf.mxu0 }
 0x2cf   : > { %2261 = vst [vmem:[%s3596_s21 + $0xd8] sm:$0xff] %v2229_v34  ;;  %v1965_v46 = vadd.f32 %v1964_v47, %v1852_v25 }
 0x2d0   : > { %v1854_v60 = vpop.f32.mrf.mxu1  ;;  %v2077_v61 = vpop.f32.mrf.mxu3 }
 0x2d1   : > { %v2078_v23 = vadd.f32 %v2077_v61, %v1965_v46  ;;  %v1855_v20 = vadd.f32 %v1854_v60, %v3575_v45 }
 0x2d3   : > { %v2191_v13 = vadd.f32 %v2190_v10, %v2078_v23 }
 0x2d5   : > { %v2230_v63 = vmax.f32 %v2191_v13, 0.0 }
 0x2d6   : > { %v1967_v16 = vpop.f32.mrf.mxu2  ;;  %v2193_v37 = vpop.f32.mrf.mxu0 }
 0x2d7   : > { %2262 = vst [vmem:[%s3596_s21 + $0xe0] sm:$0xff] %v2230_v63  ;;  %v1968_v26 = vadd.f32 %v1967_v16, %v1855_v20 }
 0x2d8   : > { %v1857_v12 = vpop.f32.mrf.mxu1  ;;  %v2080_v49 = vpop.f32.mrf.mxu3 }
 0x2d9   : > { %v2081_v3 = vadd.f32 %v2080_v49, %v1968_v26  ;;  %v1858_v33 = vadd.f32 %v1857_v12, %v3581_v36 }
 0x2db   : > { %v2194_v53 = vadd.f32 %v2193_v37, %v2081_v3 }
 0x2dd   : > { %v2231_v27 = vmax.f32 %v2194_v53, 0.0 }
 0x2de   : > { %v1970_v50 = vpop.f32.mrf.mxu2  ;;  %v2196_v0 = vpop.f32.mrf.mxu0 }
 0x2df   : > { %2263 = vst [vmem:[%s3596_s21 + $0xe8] sm:$0xff] %v2231_v27  ;;  %v1971_v38 = vadd.f32 %v1970_v50, %v1858_v33 }
 0x2e0   : > { %v2083_v41 = vpop.f32.mrf.mxu3  ;;  %v1860_v7 = vpop.f32.mrf.mxu1 }
 0x2e1   : > { %v2084_v45 = vadd.f32 %v2083_v41, %v1971_v38  ;;  %v1861_v57 = vadd.f32 %v1860_v7, %v3586_v15 }
 0x2e3   : > { %v2197_v9 = vadd.f32 %v2196_v0, %v2084_v45 }
 0x2e5   : > { %v2232_v42 = vmax.f32 %v2197_v9, 0.0 }
 0x2e6   : > { %v1973_v43 = vpop.f32.mrf.mxu2  ;;  %v2199_v28 = vpop.f32.mrf.mxu0 }
 0x2e7   : > { %2264 = vst [vmem:[%s3596_s21 + $0xf0] sm:$0xff] %v2232_v42  ;;  %v1974_v6 = vadd.f32 %v1973_v43, %v1861_v57 }
 0x2e8   : > { %v2086_v4 = vpop.f32.mrf.mxu3 }
 0x2e9   : > { %v2087_v48 = vadd.f32 %v2086_v4, %v1974_v6 }
 0x2eb   : > { %v2200_v36 = vadd.f32 %v2199_v28, %v2087_v48 }
 0x2ed   : > { %v2233_v1 = vmax.f32 %v2200_v36, 0.0 }
 0x2ef   : > { %2265 = vst [vmem:[%s3596_s21 + $0xf8] sm:$0xff] %v2233_v1 }
 0x2f0 PF: > { %s13_s12 = sadd.s32 1, %s2588_s12  }
 0x2f1   : > { %p10_p4 = scmp.ge.s32.totalorder %s13_s12, 4  }
 0x2f3   :  { %12 = sbr.rel (!%p10_p4) target bundleno = 1 (0x1), region = 64 }

// kernel: seq_conv_relu_mp.3
= control target key start
LH: loop header
LB: loop body
LE: loop exit
PB: predicated region body
PF: predicated region fallthrough
CT: control target
= control target key end

     0   :  { %s3053_s15 = smov 0   ;;  %s5315_s0 = inlined_call_operand.vmem [shape: f32[2,18,18,128], index: 0, kind: input, shape index: {}]   ;;  %s5316_s1 = inlined_call_operand.vmem [shape: f32[1152,128], index: 1, kind: input, shape index: {}]   ;;  %s5317_s2 = inlined_call_operand.vmem [shape: f32[1,128], index: 2, kind: input, shape index: {}]   ;;  %s5318_s3 = inlined_call_operand.vmem [shape: f32[4,64,256], index: 3, kind: input, shape index: {}]   ;;  %s5319_s4 = inlined_call_operand.vmem [shape: f32[2,64,128], index: 4, kind: output, shape index: {}]  }
   0x1 LB: > { %s2743_s16 = sadd.s32 4294967295, %s3026_s15   ;;  %p2747_p0 = scmp.ge.s32.totalorder %s3026_s15, 1  ;;  %s3026_s15 = sphi %s3053_s15, %s14_s15  }
   0x2   : > { %p162_p1 = scmp.lt.s32.totalorder %s3026_s15, 3 }
   0x4   : > { %p163_p2 = pnand %p2747_p0, %p162_p1 }
   0x6   : > { %166 = sbr.rel (%p163_p2) target bundleno = 1222 (0x4c6), region = 36 }
   0xb   : > { %v1079_v0 = vld [vmem:[%s5316_s1 + $0x78] sm:$0xff]  ;;  %v1078_v3 = vld [vmem:[%s5316_s1 + $0x70] sm:$0xff]  ;;  %v1077_v6 = vld [vmem:[%s5316_s1 + $0x68] sm:$0xff]  ;;  %p3144_p3 = scmp.lt.s32.totalorder %s2743_s16, 1 }
   0xc   : > { %v1095_v1 = vld [vmem:[%s5316_s1 + $0xf8] sm:$0xff]  ;;  %1212 = vmatpush.msra.mxu0 %v1079_v0  ;;  %2994 = vmatpush.msra.mxu3 %v1079_v0  ;;  %v1094_v4 = vld [vmem:[%s5316_s1 + $0xf0] sm:$0xff]  ;;  %v1093_v7 = vld [vmem:[%s5316_s1 + $0xe8] sm:$0xff] }
   0xd   : > { %v1111_v2 = vld [vmem:[%s5316_s1 + $0x178] sm:$0xff]  ;;  %v1110_v5 = vld [vmem:[%s5316_s1 + $0x170] sm:$0xff]  ;;  %1325 = vmatpush.msra.mxu1 %v1095_v1  ;;  %v1109_v8 = vld [vmem:[%s5316_s1 + $0x168] sm:$0xff]  ;;  %s5558_s16 = smov (!%p3144_p3, %s2743_s16), 1 }
   0xe   : > { %1438 = vmatpush.msra.mxu2 %v1111_v2  ;;  %1213 = vmatpush.msra.mxu0 %v1078_v3  ;;  %v1076_v9 = vld [vmem:[%s5316_s1 + $0x60] sm:$0xff]  ;;  %v1075_v12 = vld [vmem:[%s5316_s1 + $0x58] sm:$0xff]  ;;  %v1074_v15 = vld [vmem:[%s5316_s1 + $0x50] sm:$0xff]  ;;  %s3010_s24 = smul.u32 432, %s5558_s16  ;;  %s2993_s14 = sshll.u32 %s5558_s16, 6 }
   0xf   : > { %2995 = vmatpush.msra.mxu3 %v1078_v3  ;;  %1326 = vmatpush.msra.mxu1 %v1094_v4  ;;  %v1092_v10 = vld [vmem:[%s5316_s1 + $0xe0] sm:$0xff]  ;;  %v1091_v13 = vld [vmem:[%s5316_s1 + $0xd8] sm:$0xff]  ;;  %v1090_v16 = vld [vmem:[%s5316_s1 + $0xd0] sm:$0xff]  ;;  %s5280_s19 = scalar_lea.vmem %s5319_s4, %s2993_s14 }
  0x10   : > { %1439 = vmatpush.msra.mxu2 %v1110_v5  ;;  %1214 = vmatpush.msra.mxu0 %v1077_v6  ;;  %v1108_v11 = vld [vmem:[%s5316_s1 + $0x160] sm:$0xff]  ;;  %v1107_v14 = vld [vmem:[%s5316_s1 + $0x158] sm:$0xff]  ;;  %v1106_v17 = vld [vmem:[%s5316_s1 + $0x150] sm:$0xff]  ;;  %s3212_s13 = scalar_lea.vmem %s5315_s0, %s3010_s24 }
  0x11   : > { %2996 = vmatpush.msra.mxu3 %v1077_v6  ;;  %1327 = vmatpush.msra.mxu1 %v1093_v7  ;;  %v1073_v18 = vld [vmem:[%s5316_s1 + $0x48] sm:$0xff]  ;;  %v1072_v21 = vld [vmem:[%s5316_s1 + $0x40] sm:$0xff]  ;;  %v1071_v24 = vld [vmem:[%s5316_s1 + $0x38] sm:$0xff] }
  0x12   : > { %1440 = vmatpush.msra.mxu2 %v1109_v8  ;;  %1215 = vmatpush.msra.mxu0 %v1076_v9  ;;  %v1089_v19 = vld [vmem:[%s5316_s1 + $0xc8] sm:$0xff]  ;;  %v1088_v22 = vld [vmem:[%s5316_s1 + $0xc0] sm:$0xff]  ;;  %v1087_v25 = vld [vmem:[%s5316_s1 + $0xb8] sm:$0xff] }
  0x13   : > { %2997 = vmatpush.msra.mxu3 %v1076_v9  ;;  %1328 = vmatpush.msra.mxu1 %v1092_v10  ;;  %v1105_v20 = vld [vmem:[%s5316_s1 + $0x148] sm:$0xff]  ;;  %v1104_v23 = vld [vmem:[%s5316_s1 + $0x140] sm:$0xff]  ;;  %v1103_v26 = vld [vmem:[%s5316_s1 + $0x138] sm:$0xff] }
  0x14   : > { %1441 = vmatpush.msra.mxu2 %v1108_v11  ;;  %1216 = vmatpush.msra.mxu0 %v1075_v12  ;;  %v1070_v27 = vld [vmem:[%s5316_s1 + $0x30] sm:$0xff]  ;;  %v1069_v30 = vld [vmem:[%s5316_s1 + $0x28] sm:$0xff]  ;;  %v1068_v33 = vld [vmem:[%s5316_s1 + $0x20] sm:$0xff] }
  0x15   : > { %2998 = vmatpush.msra.mxu3 %v1075_v12  ;;  %1329 = vmatpush.msra.mxu1 %v1091_v13  ;;  %v1086_v28 = vld [vmem:[%s5316_s1 + $0xb0] sm:$0xff]  ;;  %v1085_v31 = vld [vmem:[%s5316_s1 + $0xa8] sm:$0xff]  ;;  %v1084_v34 = vld [vmem:[%s5316_s1 + $0xa0] sm:$0xff] }
  0x16   : > { %1442 = vmatpush.msra.mxu2 %v1107_v14  ;;  %1217 = vmatpush.msra.mxu0 %v1074_v15  ;;  %v1102_v29 = vld [vmem:[%s5316_s1 + $0x130] sm:$0xff]  ;;  %v1101_v32 = vld [vmem:[%s5316_s1 + $0x128] sm:$0xff]  ;;  %v1100_v35 = vld [vmem:[%s5316_s1 + $0x120] sm:$0xff] }
  0x17   : > { %2999 = vmatpush.msra.mxu3 %v1074_v15  ;;  %1330 = vmatpush.msra.mxu1 %v1090_v16  ;;  %v1067_v36 = vld [vmem:[%s5316_s1 + $0x18] sm:$0xff]  ;;  %v1066_v39 = vld [vmem:[%s5316_s1 + $0x10] sm:$0xff]  ;;  %v1065_v42 = vld [vmem:[%s5316_s1 + $0x8] sm:$0xff] }
  0x18   : > { %1443 = vmatpush.msra.mxu2 %v1106_v17  ;;  %1218 = vmatpush.msra.mxu0 %v1073_v18  ;;  %v1083_v37 = vld [vmem:[%s5316_s1 + $0x98] sm:$0xff]  ;;  %v1082_v40 = vld [vmem:[%s5316_s1 + $0x90] sm:$0xff]  ;;  %v1081_v43 = vld [vmem:[%s5316_s1 + $0x88] sm:$0xff] }
  0x19   : > { %3000 = vmatpush.msra.mxu3 %v1073_v18  ;;  %1331 = vmatpush.msra.mxu1 %v1089_v19  ;;  %v1099_v38 = vld [vmem:[%s5316_s1 + $0x118] sm:$0xff]  ;;  %v1098_v41 = vld [vmem:[%s5316_s1 + $0x110] sm:$0xff]  ;;  %v1097_v44 = vld [vmem:[%s5316_s1 + $0x108] sm:$0xff] }
  0x1a   : > { %1444 = vmatpush.msra.mxu2 %v1105_v20  ;;  %1219 = vmatpush.msra.mxu0 %v1072_v21  ;;  %v1064_v45 = vld [vmem:[%s5316_s1] sm:$0xff]  ;;  %v1127_v52 = vld [vmem:[%s5316_s1 + $0x1f8] sm:$0xff]  ;;  %v1126_v53 = vld [vmem:[%s5316_s1 + $0x1f0] sm:$0xff] }
  0x1b   : > { %3001 = vmatpush.msra.mxu3 %v1072_v21  ;;  %1332 = vmatpush.msra.mxu1 %v1088_v22  ;;  %v1080_v46 = vld [vmem:[%s5316_s1 + $0x80] sm:$0xff]  ;;  %v1125_v54 = vld [vmem:[%s5316_s1 + $0x1e8] sm:$0xff]  ;;  %v1123_v60 = vld [vmem:[%s5316_s1 + $0x1d8] sm:$0xff] }
  0x1c   : > { %1445 = vmatpush.msra.mxu2 %v1104_v23  ;;  %1220 = vmatpush.msra.mxu0 %v1071_v24  ;;  %v1096_v47 = vld [vmem:[%s5316_s1 + $0x100] sm:$0xff]  ;;  %v199_v55 = vld [vmem:[%s3212_s13 + $0x8] sm:$0xff]  ;;  %v1122_v61 = vld [vmem:[%s5316_s1 + $0x1d0] sm:$0xff] }
  0x1d   : > { %3002 = vmatpush.msra.mxu3 %v1071_v24  ;;  %1333 = vmatpush.msra.mxu1 %v1087_v25  ;;  %v198_v48 = vld [vmem:[%s3212_s13] sm:$0xff]  ;;  %v3241_v56 = vld [vmem:[%s3212_s13 + $0x128] sm:$0xff]  ;;  %v3256_v62 = vld [vmem:[%s3212_s13 + $0x18] sm:$0xff] }
  0x1e   : > { %1446 = vmatpush.msra.mxu2 %v1103_v26  ;;  %1221 = vmatpush.msra.mxu0 %v1070_v27  ;;  %v3225_v49 = vld [vmem:[%s3212_s13 + $0x120] sm:$0xff]  ;;  %v263_v57 = vld [vmem:[%s3212_s13 + $0x9] sm:$0xff]  ;;  %v3259_v63 = vld [vmem:[%s3212_s13 + $0x138] sm:$0xff] }
  0x1f   : > { %3003 = vmatpush.msra.mxu3 %v1070_v27  ;;  %1334 = vmatpush.msra.mxu1 %v1086_v28  ;;  %v262_v50 = vld [vmem:[%s3212_s13 + $0x1] sm:$0xff]  ;;  %v327_v58 = vld [vmem:[%s3212_s13 + $0xa] sm:$0xff]  ;;  %v3262_v0 = vld [vmem:[%s3212_s13 + $0x19] sm:$0xff] }
  0x20   : > { %1447 = vmatpush.msra.mxu2 %v1102_v29  ;;  %1222 = vmatpush.msra.mxu0 %v1069_v30  ;;  %v326_v51 = vld [vmem:[%s3212_s13 + $0x2] sm:$0xff]  ;;  %v3265_v1 = vld [vmem:[%s3212_s13 + $0x1a] sm:$0xff]  ;;  %v1118_v9 = vld [vmem:[%s5316_s1 + $0x1b0] sm:$0xff] }
  0x21   : > { %3004 = vmatpush.msra.mxu3 %v1069_v30  ;;  %1335 = vmatpush.msra.mxu1 %v1085_v31  ;;  %v1124_v59 = vld [vmem:[%s5316_s1 + $0x1e0] sm:$0xff]  ;;  %v1121_v2 = vld [vmem:[%s5316_s1 + $0x1c8] sm:$0xff]  ;;  %v1119_v4 = vld [vmem:[%s5316_s1 + $0x1b8] sm:$0xff] }
  0x22   : > { %1448 = vmatpush.msra.mxu2 %v1101_v32  ;;  %1223 = vmatpush.msra.mxu0 %v1068_v33  ;;  %v1120_v3 = vld [vmem:[%s5316_s1 + $0x1c0] sm:$0xff]  ;;  %v1117_v10 = vld [vmem:[%s5316_s1 + $0x1a8] sm:$0xff]  ;;  %v3306_v12 = vld [vmem:[%s3212_s13 + $0x30] sm:$0xff] }
  0x23   : > { %3005 = vmatpush.msra.mxu3 %v1068_v33  ;;  %1336 = vmatpush.msra.mxu1 %v1084_v34  ;;  %v3281_v5 = vld [vmem:[%s3212_s13 + $0x20] sm:$0xff]  ;;  %v226_v13 = vld [vmem:[%s3212_s13 + $0x150] sm:$0xff]  ;;  %v1115_v16 = vld [vmem:[%s5316_s1 + $0x198] sm:$0xff] }
  0x24   : > { %1449 = vmatpush.msra.mxu2 %v1100_v35  ;;  %1224 = vmatpush.msra.mxu0 %v1067_v36  ;;  %v3284_v6 = vld [vmem:[%s3212_s13 + $0x140] sm:$0xff]  ;;  %v3310_v14 = vld [vmem:[%s3212_s13 + $0x31] sm:$0xff]  ;;  %v1113_v18 = vld [vmem:[%s5316_s1 + $0x188] sm:$0xff] }
  0x25   : > { %3006 = vmatpush.msra.mxu3 %v1067_v36  ;;  %1337 = vmatpush.msra.mxu1 %v1083_v37  ;;  %v3287_v7 = vld [vmem:[%s3212_s13 + $0x21] sm:$0xff]  ;;  %v330_v15 = vld [vmem:[%s3212_s13 + $0x32] sm:$0xff]  ;;  %v3342_v26 = vld [vmem:[%s3212_s13 + $0x49] sm:$0xff] }
  0x26   : > { %1450 = vmatpush.msra.mxu2 %v1099_v38  ;;  %1225 = vmatpush.msra.mxu0 %v1066_v39  ;;  %v3290_v8 = vld [vmem:[%s3212_s13 + $0x22] sm:$0xff]  ;;  %v1114_v17 = vld [vmem:[%s5316_s1 + $0x190] sm:$0xff]  ;;  %v3325_v19 = vld [vmem:[%s3212_s13 + $0x38] sm:$0xff] }
  0x27   : > { %3007 = vmatpush.msra.mxu3 %v1066_v39  ;;  %1338 = vmatpush.msra.mxu1 %v1082_v40  ;;  %v1116_v11 = vld [vmem:[%s5316_s1 + $0x1a0] sm:$0xff]  ;;  %v227_v20 = vld [vmem:[%s3212_s13 + $0x158] sm:$0xff]  ;;  %v3338_v24 = vld [vmem:[%s3212_s13 + $0x48] sm:$0xff] }
  0x28   : > { %1451 = vmatpush.msra.mxu2 %v1098_v41  ;;  %1226 = vmatpush.msra.mxu0 %v1065_v42  ;;  %v3329_v21 = vld [vmem:[%s3212_s13 + $0x39] sm:$0xff]  ;;  %v228_v25 = vld [vmem:[%s3212_s13 + $0x168] sm:$0xff]  ;;  %v3348_v28 = vld [vmem:[%s3212_s13 + $0x50] sm:$0xff] }
  0x29   : > { %3008 = vmatpush.msra.mxu3 %v1065_v42  ;;  %1339 = vmatpush.msra.mxu1 %v1081_v43  ;;  %v331_v22 = vld [vmem:[%s3212_s13 + $0x3a] sm:$0xff]  ;;  %v332_v27 = vld [vmem:[%s3212_s13 + $0x4a] sm:$0xff]  ;;  %v333_v31 = vld [vmem:[%s3212_s13 + $0x52] sm:$0xff] }
  0x2a   : > { %1452 = vmatpush.msra.mxu2 %v1097_v44  ;;  %1227 = vmatpush.msra.mxu0 %v1064_v45  ;;  %v1112_v23 = vld [vmem:[%s5316_s1 + $0x180] sm:$0xff]  ;;  %v229_v29 = vld [vmem:[%s3212_s13 + $0x170] sm:$0xff]  ;;  %v3368_v35 = vld [vmem:[%s3212_s13 + $0x68] sm:$0xff] }
  0x2b   : > { %3009 = vmatpush.msra.mxu3 %v1064_v45  ;;  %1340 = vmatpush.msra.mxu1 %v1080_v46  ;;  %v3352_v30 = vld [vmem:[%s3212_s13 + $0x51] sm:$0xff]  ;;  %v3358_v32 = vld [vmem:[%s3212_s13 + $0x60] sm:$0xff]  ;;  %5358 = vst [vmem:[#allocation4_spill] sm:$0xff] %v3368_v35  ;;  %v3371_v36 = vld [vmem:[%s3212_s13 + $0x69] sm:$0xff] }
  0x2c   : > { %1453 = vmatpush.msra.mxu2 %v1096_v47  ;;  %1228 = vmatmul.f32.vlgmr.msra.gmra.mxu0 %v198_v48  ;;  %5357 = vst [vmem:[#allocation3_spill] sm:$0xff] %v3358_v32  ;;  %v3361_v33 = vld [vmem:[%s3212_s13 + $0x61] sm:$0xff]  ;;  %v335_v37 = vld [vmem:[%s3212_s13 + $0x6a] sm:$0xff]  ;;  %v208_v38 = vld [vmem:[%s3212_s13 + $0x78] sm:$0xff] }
  0x2d   : > { %1300 = vmatmul.f32.vlgmr.msra.gmra.mxu3 %v3225_v49  ;;  %1341 = vmatmul.f32.vlgmr.msra.gmra.mxu1 %v262_v50  ;;  %v334_v34 = vld [vmem:[%s3212_s13 + $0x62] sm:$0xff]  ;;  %v3379_v39 = vld [vmem:[%s3212_s13 + $0x79] sm:$0xff]  ;;  %v3392_v44 = vld [vmem:[%s3212_s13 + $0x90] sm:$0xff] }
  0x2e   : > { %1454 = vmatmul.f32.vlgmr.msra.gmra.mxu2 %v326_v51  ;;  %1551 = vmatpush.msrb.mxu3 %v1127_v52  ;;  %v336_v40 = vld [vmem:[%s3212_s13 + $0x7a] sm:$0xff]  ;;  %v337_v43 = vld [vmem:[%s3212_s13 + $0x82] sm:$0xff]  ;;  %v3395_v45 = vld [vmem:[%s3212_s13 + $0x91] sm:$0xff] }
  0x2f   : > { %v209_v41 = vld [vmem:[%s3212_s13 + $0x80] sm:$0xff]  ;;  %v338_v46 = vld [vmem:[%s3212_s13 + $0x92] sm:$0xff]  ;;  %v3412_v51 = vld [vmem:[%s3212_s13 + $0xa8] sm:$0xff] }
  0x30   : > { %1552 = vmatpush.msrb.mxu3 %v1126_v53  ;;  %v3386_v42 = vld [vmem:[%s3212_s13 + $0x81] sm:$0xff]  ;;  %v3402_v47 = vld [vmem:[%s3212_s13 + $0x98] sm:$0xff]  ;;  %v3415_v52 = vld [vmem:[%s3212_s13 + $0xa9] sm:$0xff] }
  0x31   : > { %v3405_v48 = vld [vmem:[%s3212_s13 + $0x99] sm:$0xff]  ;;  %v340_v53 = vld [vmem:[%s3212_s13 + $0xaa] sm:$0xff] }
  0x32   : > { %1553 = vmatpush.msrb.mxu3 %v1125_v54  ;;  %v339_v50 = vld [vmem:[%s3212_s13 + $0x9a] sm:$0xff]  ;;  %v3422_v54 = vld [vmem:[%s3212_s13 + $0xb0] sm:$0xff] }
  0x34   : > { %1231 = vmatmul.f32.gmra.mxu0 %v199_v55  ;;  %1554 = vmatpush.msrb.mxu3 %v1124_v59  ;;  %v3425_v55 = vld [vmem:[%s3212_s13 + $0xb1] sm:$0xff]  ;;  %v3434_v59 = vld [vmem:[%s3212_s13 + $0xc0] sm:$0xff] }
  0x35   : > { %1303 = vmatmul.f32.gmra.mxu3 %v3241_v56  ;;  %1344 = vmatmul.f32.gmra.mxu1 %v263_v57  ;;  %5359 = vst [vmem:[#allocation5_spill] sm:$0xff] %v3425_v55  ;;  %v341_v57 = vld [vmem:[%s3212_s13 + $0xb2] sm:$0xff] }
  0x36   : > { %1457 = vmatmul.f32.gmra.mxu2 %v327_v58  ;;  %1555 = vmatpush.msrb.mxu3 %v1123_v60 }
  0x38   : > { %1556 = vmatpush.msrb.mxu3 %v1122_v61  ;;  %v3439_v61 = vld [vmem:[%s3212_s13 + $0xc1] sm:$0xff] }
  0x39   : > { %5360 = vst [vmem:[#allocation6_spill] sm:$0xff] %v3439_v61 }
  0x3a   : > { %1557 = vmatpush.msrb.mxu3 %v1121_v2  ;;  %v1143_v2 = vld [vmem:[%s5316_s1 + $0x278] sm:$0xff] }
  0x3b   : > { %1664 = vmatpush.msrb.mxu0 %v1143_v2  ;;  %v1133_v2 = vld [vmem:[%s5316_s1 + $0x228] sm:$0xff] }
  0x3c   : > { %1234 = vmatmul.f32.gmra.mxu0 %v3256_v62  ;;  %1558 = vmatpush.msrb.mxu3 %v1120_v3 }
  0x3d   : > { %1306 = vmatmul.f32.gmra.mxu3 %v3259_v63  ;;  %1347 = vmatmul.f32.gmra.mxu1 %v3262_v0 }
  0x3e   : > { %1460 = vmatmul.f32.gmra.mxu2 %v3265_v1  ;;  %1559 = vmatpush.msrb.mxu3 %v1119_v4  ;;  %v1142_v4 = vld [vmem:[%s5316_s1 + $0x270] sm:$0xff] }
  0x3f   : > { %1665 = vmatpush.msrb.mxu0 %v1142_v4 }
  0x40   : > { %1560 = vmatpush.msrb.mxu3 %v1118_v9 }
  0x42   : > { %1561 = vmatpush.msrb.mxu3 %v1117_v10  ;;  %v3457_v10 = vld [vmem:[%s3212_s13 + $0xc8] sm:$0xff] }
  0x44   : > { %1237 = vmatmul.f32.gmra.mxu0 %v3281_v5  ;;  %1562 = vmatpush.msrb.mxu3 %v1116_v11  ;;  %v1141_v11 = vld [vmem:[%s5316_s1 + $0x268] sm:$0xff] }
  0x45   : > { %1309 = vmatmul.f32.gmra.mxu3 %v3284_v6  ;;  %1350 = vmatmul.f32.gmra.mxu1 %v3287_v7 }
  0x46   : > { %1463 = vmatmul.f32.gmra.mxu2 %v3290_v8  ;;  %1563 = vmatpush.msrb.mxu3 %v1115_v16  ;;  %v343_v16 = vld [vmem:[%s3212_s13 + $0xca] sm:$0xff] }
  0x47   : > { %1666 = vmatpush.msrb.mxu0 %v1141_v11  ;;  %v1132_v11 = vld [vmem:[%s5316_s1 + $0x220] sm:$0xff] }
  0x48   : > { %1564 = vmatpush.msrb.mxu3 %v1114_v17  ;;  %v1140_v17 = vld [vmem:[%s5316_s1 + $0x260] sm:$0xff] }
  0x49   : > { %1667 = vmatpush.msrb.mxu0 %v1140_v17 }
  0x4a   : > { %1565 = vmatpush.msrb.mxu3 %v1113_v18  ;;  %v1139_v18 = vld [vmem:[%s5316_s1 + $0x258] sm:$0xff] }
  0x4b   : > { %1668 = vmatpush.msrb.mxu0 %v1139_v18 }
  0x4c   : > { %1240 = vmatmul.f32.gmra.mxu0 %v3306_v12  ;;  %1566 = vmatpush.msrb.mxu3 %v1112_v23 }
  0x4d   : > { %1312 = vmatmul.f32.gmra.mxu3 %v226_v13  ;;  %1353 = vmatmul.f32.gmra.mxu1 %v3310_v14 }
  0x4e   : > { %1466 = vmatmul.f32.gmra.mxu2 %v330_v15  ;;  %v3465_v15 = vld [vmem:[%s3212_s13 + $0xc9] sm:$0xff] }
  0x4f   : > { %5362 = vst [vmem:[#allocation8_spill] sm:$0xff] %v3465_v15 }
  0x54   : > { %1243 = vmatmul.f32.gmra.mxu0 %v3325_v19 }
  0x55   : > { %1315 = vmatmul.f32.gmra.mxu3 %v227_v20  ;;  %1356 = vmatmul.f32.gmra.mxu1 %v3329_v21 }
  0x56   : > { %1469 = vmatmul.f32.gmra.mxu2 %v331_v22  ;;  %v1138_v22 = vld [vmem:[%s5316_s1 + $0x250] sm:$0xff] }
  0x57   : > { %1669 = vmatpush.msrb.mxu0 %v1138_v22  ;;  %v3545_v22 = vld [vmem:[%s3212_s13 + $0xf1] sm:$0xff] }
  0x58   : > { %5368 = vst [vmem:[#allocation14_spill] sm:$0xff] %v3545_v22 }
  0x5c   : > { %1246 = vmatmul.f32.gmra.mxu0 %v3338_v24 }
  0x5d   : > { %1318 = vmatmul.f32.gmra.mxu3 %v228_v25  ;;  %1359 = vmatmul.f32.gmra.mxu1 %v3342_v26 }
  0x5e   : > { %1472 = vmatmul.f32.gmra.mxu2 %v332_v27  ;;  %v3486_v27 = vld [vmem:[%s3212_s13 + $0xd8] sm:$0xff] }
  0x64   : > { %1249 = vmatmul.f32.gmra.mxu0 %v3348_v28 }
  0x65   : > { %1321 = vmatmul.f32.gmra.mxu3 %v229_v29  ;;  %1362 = vmatmul.f32.gmra.mxu1 %v3352_v30 }
  0x66   : > { %1475 = vmatmul.f32.gmra.mxu2 %v333_v31  ;;  %v3491_v31 = vld [vmem:[%s3212_s13 + $0xd9] sm:$0xff] }
  0x67   : > { %5364 = vst [vmem:[#allocation10_spill] sm:$0xff] %v3491_v31 }
  0x6c   : > { %1252 = vmatmul.f32.gmra.mxu0 %v3358_v32 }
  0x6d   : > { %1567 = vmatmul.f32.vlgmr.msrb.gmra.mxu3 %v3256_v62  ;;  %1365 = vmatmul.f32.gmra.mxu1 %v3361_v33  ;;  %v342_v62 = vld [vmem:[%s3212_s13 + $0xc2] sm:$0xff] }
  0x6e   : > { %1478 = vmatmul.f32.gmra.mxu2 %v334_v34  ;;  %v344_v34 = vld [vmem:[%s3212_s13 + $0xda] sm:$0xff] }
  0x74   : > { %1255 = vmatmul.f32.gmra.mxu0 %v3368_v35 }
  0x75   : > { %1570 = vmatmul.f32.gmra.mxu3 %v3281_v5  ;;  %1368 = vmatmul.f32.gmra.mxu1 %v3371_v36 }
  0x76   : > { %1481 = vmatmul.f32.gmra.mxu2 %v335_v37  ;;  %v1137_v37 = vld [vmem:[%s5316_s1 + $0x248] sm:$0xff] }
  0x77   : > { %1670 = vmatpush.msrb.mxu0 %v1137_v37  ;;  %v1131_v37 = vld [vmem:[%s5316_s1 + $0x218] sm:$0xff] }
  0x7c   : > { %1258 = vmatmul.f32.gmra.mxu0 %v208_v38 }
  0x7d   : > { %1573 = vmatmul.f32.gmra.mxu3 %v3306_v12  ;;  %1371 = vmatmul.f32.gmra.mxu1 %v3379_v39 }
  0x7e   : > { %1484 = vmatmul.f32.gmra.mxu2 %v336_v40 }
  0x84   : > { %1261 = vmatmul.f32.gmra.mxu0 %v209_v41 }
  0x85   : > { %1576 = vmatmul.f32.gmra.mxu3 %v3325_v19  ;;  %1374 = vmatmul.f32.gmra.mxu1 %v3386_v42 }
  0x86   : > { %1487 = vmatmul.f32.gmra.mxu2 %v337_v43 }
  0x8c   : > { %1264 = vmatmul.f32.gmra.mxu0 %v3392_v44 }
  0x8d   : > { %1579 = vmatmul.f32.gmra.mxu3 %v3338_v24  ;;  %1377 = vmatmul.f32.gmra.mxu1 %v3395_v45 }
  0x8e   : > { %1490 = vmatmul.f32.gmra.mxu2 %v338_v46 }
  0x94   : > { %1267 = vmatmul.f32.gmra.mxu0 %v3402_v47 }
  0x95   : > { %1582 = vmatmul.f32.gmra.mxu3 %v3348_v28  ;;  %1380 = vmatmul.f32.gmra.mxu1 %v3405_v48 }
  0x96   : > { %1493 = vmatmul.f32.gmra.mxu2 %v339_v50 }
  0x9c   : > { %1270 = vmatmul.f32.gmra.mxu0 %v3412_v51 }
  0x9d   : > { %1585 = vmatmul.f32.gmra.mxu3 %v3358_v32  ;;  %1383 = vmatmul.f32.gmra.mxu1 %v3415_v52 }
  0x9e   : > { %1496 = vmatmul.f32.gmra.mxu2 %v340_v53  ;;  %v3518_v53 = vld [vmem:[%s3212_s13 + $0xe1] sm:$0xff] }
  0x9f   : > { %5366 = vst [vmem:[#allocation12_spill] sm:$0xff] %v3518_v53 }
  0xa4   : > { %1273 = vmatmul.f32.gmra.mxu0 %v3422_v54 }
  0xa5   : > { %1588 = vmatmul.f32.gmra.mxu3 %v3368_v35  ;;  %1386 = vmatmul.f32.gmra.mxu1 %v3425_v55  ;;  %v3633_v35 = vld [vmem:[%s3212_s13 + $0x121] sm:$0xff] }
  0xa6   : > { %1499 = vmatmul.f32.gmra.mxu2 %v341_v57  ;;  %v345_v57 = vld [vmem:[%s3212_s13 + $0xe2] sm:$0xff]  ;;  %5375 = vst [vmem:[#allocation21_spill] sm:$0xff] %v3633_v35 }
  0xa7   : > { %v350_v55 = vld [vmem:[%s3212_s13 + $0x122] sm:$0xff] }
  0xa9   : > { %v3431_v58 = vpop.f32.mrf.mxu0 }
  0xaa   : > { %v3436_v60 = vpop.f32.mrf.mxu1 }
  0xac   : > { %1276 = vmatmul.f32.gmra.mxu0 %v3434_v59 }
  0xad   : > { %1591 = vmatmul.f32.gmra.mxu3 %v208_v38  ;;  %1389 = vmatmul.f32.gmra.mxu1 %v3439_v61  ;;  %v1136_v38 = vld [vmem:[%s5316_s1 + $0x240] sm:$0xff] }
  0xae   : > { %1502 = vmatmul.f32.gmra.mxu2 %v342_v62  ;;  %1671 = vmatpush.msrb.mxu0 %v1136_v38  ;;  %v1134_v62 = vld [vmem:[%s5316_s1 + $0x230] sm:$0xff] }
  0xaf   : > { %v1130_v38 = vld [vmem:[%s5316_s1 + $0x210] sm:$0xff] }
  0xb0   : > { %v3447_v3 = vpop.f32.mrf.mxu3 }
  0xb1   : > { %5361 = vst [vmem:[#allocation7_spill] sm:$0xff] %v3447_v3  ;;  %v3452_v5 = vpop.f32.mrf.mxu2  ;;  %v3454_v9 = vpop.f32.mrf.mxu0  ;;  %v3611_v3 = vld [vmem:[%s3212_s13 + $0x111] sm:$0xff] }
  0xb2   : > { %v3462_v13 = vpop.f32.mrf.mxu1 }
  0xb4   : > { %1279 = vmatmul.f32.gmra.mxu0 %v3457_v10 }
  0xb5   : > { %1594 = vmatmul.f32.gmra.mxu3 %v209_v41  ;;  %1392 = vmatmul.f32.gmra.mxu1 %v3465_v15  ;;  %v1135_v41 = vld [vmem:[%s5316_s1 + $0x238] sm:$0xff] }
  0xb6   : > { %1505 = vmatmul.f32.gmra.mxu2 %v343_v16  ;;  %1672 = vmatpush.msrb.mxu0 %v1135_v41 }
  0xb8   : > { %v3476_v20 = vpop.f32.mrf.mxu3  ;;  %1673 = vmatpush.msrb.mxu0 %v1134_v62 }
  0xb9   : > { %5363 = vst [vmem:[#allocation9_spill] sm:$0xff] %v3476_v20  ;;  %v3481_v23 = vpop.f32.mrf.mxu2  ;;  %v3483_v25 = vpop.f32.mrf.mxu0  ;;  %v3593_v20 = vld [vmem:[%s3212_s13 + $0x109] sm:$0xff] }
  0xba   : > { %v3488_v29 = vpop.f32.mrf.mxu1  ;;  %1674 = vmatpush.msrb.mxu0 %v1133_v2  ;;  %5372 = vst [vmem:[#allocation18_spill] sm:$0xff] %v3593_v20 }
  0xbc   : > { %1282 = vmatmul.f32.gmra.mxu0 %v3486_v27 }
  0xbd   : > { %1597 = vmatmul.f32.gmra.mxu3 %v3392_v44  ;;  %1395 = vmatmul.f32.gmra.mxu1 %v3491_v31  ;;  %v3513_v44 = vld [vmem:[%s3212_s13 + $0xe0] sm:$0xff]  ;;  %v349_v31 = vld [vmem:[%s3212_s13 + $0x112] sm:$0xff] }
  0xbe   : > { %1508 = vmatmul.f32.gmra.mxu2 %v344_v34  ;;  %v346_v34 = vld [vmem:[%s3212_s13 + $0xf2] sm:$0xff]  ;;  %1675 = vmatpush.msrb.mxu0 %v1132_v11 }
  0xc0   : > { %v3503_v40 = vpop.f32.mrf.mxu3  ;;  %1676 = vmatpush.msrb.mxu0 %v1131_v37  ;;  %v347_v37 = vld [vmem:[%s3212_s13 + $0xfa] sm:$0xff] }
  0xc1   : > { %5365 = vst [vmem:[#allocation11_spill] sm:$0xff] %v3503_v40  ;;  %v3508_v43 = vpop.f32.mrf.mxu2  ;;  %v3510_v46 = vpop.f32.mrf.mxu0  ;;  %v3588_v40 = vld [vmem:[%s3212_s13 + $0x108] sm:$0xff] }
  0xc2   : > { %v3515_v50 = vpop.f32.mrf.mxu1  ;;  %1677 = vmatpush.msrb.mxu0 %v1130_v38 }
  0xc4   : > { %1285 = vmatmul.f32.gmra.mxu0 %v3513_v44 }
  0xc5   : > { %1600 = vmatmul.f32.gmra.mxu3 %v3402_v47  ;;  %1398 = vmatmul.f32.gmra.mxu1 %v3518_v53  ;;  %v3540_v47 = vld [vmem:[%s3212_s13 + $0xf0] sm:$0xff] }
  0xc6   : > { %1511 = vmatmul.f32.gmra.mxu2 %v345_v57  ;;  %v1129_v57 = vld [vmem:[%s5316_s1 + $0x208] sm:$0xff] }
  0xc7   : > { %1678 = vmatpush.msrb.mxu0 %v1129_v57 }
  0xc8   : > { %v3530_v4 = vpop.f32.mrf.mxu3 }
  0xc9   : > { %5367 = vst [vmem:[#allocation13_spill] sm:$0xff] %v3530_v4  ;;  %v3535_v16 = vpop.f32.mrf.mxu2  ;;  %v3537_v17 = vpop.f32.mrf.mxu0 }
  0xca   : > { %v3542_v18 = vpop.f32.mrf.mxu1 }
  0xcc   : > { %1288 = vmatmul.f32.gmra.mxu0 %v3540_v47 }
  0xcd   : > { %1603 = vmatmul.f32.gmra.mxu3 %v3412_v51  ;;  %1401 = vmatmul.f32.gmra.mxu1 %v3545_v22  ;;  %v3567_v51 = vld [vmem:[%s3212_s13 + $0xf8] sm:$0xff] }
  0xce   : > { %1514 = vmatmul.f32.gmra.mxu2 %v346_v34  ;;  %v3572_v34 = vld [vmem:[%s3212_s13 + $0xf9] sm:$0xff] }
  0xcf   : > { %5370 = vst [vmem:[#allocation16_spill] sm:$0xff] %v3572_v34 }
  0xd0   : > { %v3557_v41 = vpop.f32.mrf.mxu3 }
  0xd1   : > { %5369 = vst [vmem:[#allocation15_spill] sm:$0xff] %v3557_v41  ;;  %v3562_v62 = vpop.f32.mrf.mxu2  ;;  %v3564_v2 = vpop.f32.mrf.mxu0  ;;  %v1128_v41 = vld [vmem:[%s5316_s1 + $0x200] sm:$0xff] }
  0xd2   : > { %v3569_v11 = vpop.f32.mrf.mxu1  ;;  %1679 = vmatpush.msrb.mxu0 %v1128_v41 }
  0xd4   : > { %1291 = vmatmul.f32.gmra.mxu0 %v3567_v51 }
  0xd5   : > { %1606 = vmatmul.f32.gmra.mxu3 %v3422_v54  ;;  %1404 = vmatmul.f32.gmra.mxu1 %v3572_v34  ;;  %v348_v54 = vld [vmem:[%s3212_s13 + $0x10a] sm:$0xff] }
  0xd6   : > { %1517 = vmatmul.f32.gmra.mxu2 %v347_v37  ;;  %v3606_v34 = vld [vmem:[%s3212_s13 + $0x110] sm:$0xff] }
  0xd8   : > { %v3581_v38 = vpop.f32.mrf.mxu3 }
  0xd9   : > { %5371 = vst [vmem:[#allocation17_spill] sm:$0xff] %v3581_v38  ;;  %v3583_v4 = vpop.f32.mrf.mxu2  ;;  %v3585_v57 = vpop.f32.mrf.mxu0 }
  0xda   : > { %v3590_v22 = vpop.f32.mrf.mxu1 }
  0xdc   : > { %1294 = vmatmul.f32.gmra.mxu0 %v3588_v40 }
  0xdd   : > { %1609 = vmatmul.f32.gmra.mxu3 %v3434_v59  ;;  %1407 = vmatmul.f32.gmra.mxu1 %v3593_v20  ;;  %v3617_v59 = vld [vmem:[%s5317_s2] ss:$0 sm:$0xff] }
  0xde   : > { %1520 = vmatmul.f32.gmra.mxu2 %v348_v54 }
  0xe0   : > { %v3599_v41 = vpop.f32.mrf.mxu3 }
  0xe1   : > { %5373 = vst [vmem:[#allocation19_spill] sm:$0xff] %v3599_v41  ;;  %v3601_v37 = vpop.f32.mrf.mxu2  ;;  %v3603_v38 = vpop.f32.mrf.mxu0  ;;  %v1230_v41 = vadd.f32 %v3617_v59, %v3431_v58  ;;  %v1159_v58 = vld [vmem:[%s5316_s1 + $0x2f8] sm:$0xff] }
  0xe2   : > { %v3608_v53 = vpop.f32.mrf.mxu1  ;;  %1777 = vmatpush.msrb.mxu1 %v1159_v58  ;;  %v1173_v58 = vld [vmem:[%s5316_s1 + $0x368] sm:$0xff] }
  0xe3   : > { %v1343_v32 = vadd.f32 %v3436_v60, %v1230_v41 }
  0xe4   : > { %1297 = vmatmul.f32.gmra.mxu0 %v3606_v34 }
  0xe5   : > { %1612 = vmatmul.f32.gmra.mxu3 %v3457_v10  ;;  %1410 = vmatmul.f32.gmra.mxu1 %v3611_v3  ;;  %v1175_v10 = vld [vmem:[%s5316_s1 + $0x378] sm:$0xff] }
  0xe6   : > { %1523 = vmatmul.f32.gmra.mxu2 %v349_v31  ;;  %v1456_v31 = vadd.f32 %v3452_v5, %v1343_v32  ;;  %v1157_v5 = vld [vmem:[%s5316_s1 + $0x2e8] sm:$0xff] }
  0xe7   : > { %1890 = vmatpush.msrb.mxu2 %v1175_v10 }
  0xe8   : > { %v3622_v54 = vpop.f32.mrf.mxu3 }
  0xe9   : > { %5374 = vst [vmem:[#allocation20_spill] sm:$0xff] %v3622_v54  ;;  %v3626_v20 = vpop.f32.mrf.mxu2  ;;  %v3628_v15 = vpop.f32.mrf.mxu0 }
  0xea   : > { %v3630_v61 = vpop.f32.mrf.mxu1 }
  0xec   : > { %1680 = vmatmul.f32.vlgmr.msrb.gmra.mxu0 %v3262_v0  ;;  %v1158_v0 = vld [vmem:[%s5316_s1 + $0x2f0] sm:$0xff] }
  0xed   : > { %1615 = vmatmul.f32.gmra.mxu3 %v3486_v27  ;;  %1413 = vmatmul.f32.gmra.mxu1 %v3633_v35  ;;  %v1233_v27 = vadd.f32 %v3617_v59, %v3454_v9  ;;  %v3670_v35 = vld [vmem:[%s3212_s13 + $0x129] sm:$0xff] }
  0xee   : > { %1526 = vmatmul.f32.gmra.mxu2 %v350_v55  ;;  %v1174_v55 = vld [vmem:[%s5316_s1 + $0x370] sm:$0xff]  ;;  %1778 = vmatpush.msrb.mxu1 %v1158_v0  ;;  %5377 = vst [vmem:[#allocation23_spill] sm:$0xff] %v3670_v35 }
  0xef   : > { %1891 = vmatpush.msrb.mxu2 %v1174_v55  ;;  %v351_v9 = vld [vmem:[%s3212_s13 + $0x12a] sm:$0xff]  ;;  %v1346_v0 = vadd.f32 %v3462_v13, %v1233_v27  ;;  %v1155_v55 = vld [vmem:[%s5316_s1 + $0x2d8] sm:$0xff]  ;;  %v1236_v27 = vadd.f32 %v3617_v59, %v3483_v25 }
  0xf0   : > { %v1568_v60 = vpop.f32.mrf.mxu3  ;;  %1779 = vmatpush.msrb.mxu1 %v1157_v5  ;;  %v1171_v5 = vld [vmem:[%s5316_s1 + $0x358] sm:$0xff]  ;;  %v1169_v25 = vld [vmem:[%s5316_s1 + $0x348] sm:$0xff] }
  0xf1   : > { %v3655_v41 = vpop.f32.mrf.mxu2  ;;  %v3657_v54 = vadd.f32 %v1568_v60, %v1456_v31  ;;  %v3659_v32 = vpop.f32.mrf.mxu0  ;;  %1892 = vmatpush.msrb.mxu2 %v1173_v58  ;;  %v1156_v31 = vld [vmem:[%s5316_s1 + $0x2e0] sm:$0xff]  ;;  %v1459_v58 = vadd.f32 %v3481_v23, %v1346_v0 }
  0xf2   : > { %v3667_v10 = vpop.f32.mrf.mxu1  ;;  %v1172_v60 = vld [vmem:[%s5316_s1 + $0x360] sm:$0xff]  ;;  %1780 = vmatpush.msrb.mxu1 %v1156_v31 }
  0xf3   : > { %5376 = vst [vmem:[#allocation22_spill] sm:$0xff] %v3657_v54  ;;  %1893 = vmatpush.msrb.mxu2 %v1172_v60  ;;  %v3707_v60 = vld [vmem:[%s3212_s13 + $0x139] sm:$0xff] }
  0xf4   : > { %1683 = vmatmul.f32.gmra.mxu0 %v3287_v7  ;;  %v1154_v7 = vld [vmem:[%s5316_s1 + $0x2d0] sm:$0xff]  ;;  %1781 = vmatpush.msrb.mxu1 %v1155_v55  ;;  %v352_v0 = vld [vmem:[%s3212_s13 + $0x13a] sm:$0xff]  ;;  %v1349_v55 = vadd.f32 %v3488_v29, %v1236_v27 }
  0xf5   : > { %1618 = vmatmul.f32.gmra.mxu3 %v3513_v44  ;;  %1416 = vmatmul.f32.gmra.mxu1 %v3670_v35  ;;  %v1170_v44 = vld [vmem:[%s5316_s1 + $0x350] sm:$0xff]  ;;  %v1153_v35 = vld [vmem:[%s5316_s1 + $0x2c8] sm:$0xff] }
  0xf6   : > { %1529 = vmatmul.f32.gmra.mxu2 %v351_v9  ;;  %1782 = vmatpush.msrb.mxu1 %v1154_v7  ;;  %v1239_v7 = vadd.f32 %v3617_v59, %v3510_v46  ;;  %v1166_v46 = vld [vmem:[%s5316_s1 + $0x330] sm:$0xff] }
  0xf7   : > { %1894 = vmatpush.msrb.mxu2 %v1171_v5  ;;  %v1152_v5 = vld [vmem:[%s5316_s1 + $0x2c0] sm:$0xff] }
  0xf8   : > { %v1571_v13 = vpop.f32.mrf.mxu3  ;;  %1783 = vmatpush.msrb.mxu1 %v1153_v35 }
  0xf9   : > { %v3698_v9 = vpop.f32.mrf.mxu2  ;;  %v3700_v54 = vadd.f32 %v1571_v13, %v1459_v58  ;;  %v3702_v23 = vpop.f32.mrf.mxu0  ;;  %1895 = vmatpush.msrb.mxu2 %v1170_v44  ;;  %v1168_v58 = vld [vmem:[%s5316_s1 + $0x340] sm:$0xff]  ;;  %v1462_v13 = vadd.f32 %v3508_v43, %v1349_v55  ;;  %v1150_v55 = vld [vmem:[%s5316_s1 + $0x2b0] sm:$0xff] }
  0xfa   : > { %v3704_v31 = vpop.f32.mrf.mxu1  ;;  %1784 = vmatpush.msrb.mxu1 %v1152_v5  ;;  %v1352_v5 = vadd.f32 %v3515_v50, %v1239_v7 }
  0xfb   : > { %1896 = vmatpush.msrb.mxu2 %v1169_v25  ;;  %v353_v25 = vld [vmem:[%s3212_s13 + $0x142] sm:$0xff] }
  0xfc   : > { %1686 = vmatmul.f32.gmra.mxu0 %v3310_v14  ;;  %v1151_v14 = vld [vmem:[%s5316_s1 + $0x2b8] sm:$0xff] }
  0xfd   : > { %1621 = vmatmul.f32.gmra.mxu3 %v3540_v47  ;;  %1419 = vmatmul.f32.gmra.mxu1 %v3707_v60  ;;  %v1167_v47 = vld [vmem:[%s5316_s1 + $0x338] sm:$0xff] }
  0xfe   : > { %1532 = vmatmul.f32.gmra.mxu2 %v352_v0  ;;  %v3744_v0 = vld [vmem:[%s3212_s13 + $0x141] sm:$0xff]  ;;  %1785 = vmatpush.msrb.mxu1 %v1151_v14  ;;  %v1242_v14 = vadd.f32 %v3617_v59, %v3537_v17  ;;  %v1163_v17 = vld [vmem:[%s5316_s1 + $0x318] sm:$0xff] }
  0xff   : > { %1897 = vmatpush.msrb.mxu2 %v1168_v58  ;;  %v1149_v58 = vld [vmem:[%s5316_s1 + $0x2a8] sm:$0xff] }
 0x100   : > { %v1574_v29 = vpop.f32.mrf.mxu3  ;;  %1786 = vmatpush.msrb.mxu1 %v1150_v55  ;;  %v3781_v55 = vld [vmem:[%s3212_s13 + $0x151] sm:$0xff] }
 0x101   : > { %v3735_v44 = vpop.f32.mrf.mxu2  ;;  %v3737_v27 = vadd.f32 %v1574_v29, %v1462_v13  ;;  %v3739_v35 = vpop.f32.mrf.mxu0  ;;  %1898 = vmatpush.msrb.mxu2 %v1167_v47  ;;  %v1165_v13 = vld [vmem:[%s5316_s1 + $0x328] sm:$0xff]  ;;  %v1465_v29 = vadd.f32 %v3535_v16, %v1352_v5  ;;  %v1147_v5 = vld [vmem:[%s5316_s1 + $0x298] sm:$0xff] }
 0x102   : > { %v3741_v43 = vpop.f32.mrf.mxu1  ;;  %1787 = vmatpush.msrb.mxu1 %v1149_v58  ;;  %v1355_v58 = vadd.f32 %v3542_v18, %v1242_v14  ;;  %v1161_v18 = vld [vmem:[%s5316_s1 + $0x308] sm:$0xff] }
 0x103   : > { %1899 = vmatpush.msrb.mxu2 %v1166_v46  ;;  %v354_v46 = vld [vmem:[%s3212_s13 + $0x152] sm:$0xff] }
 0x104   : > { %1689 = vmatmul.f32.gmra.mxu0 %v3329_v21  ;;  %v1148_v21 = vld [vmem:[%s5316_s1 + $0x2a0] sm:$0xff] }
 0x105   : > { %1624 = vmatmul.f32.gmra.mxu3 %v3567_v51  ;;  %1422 = vmatmul.f32.gmra.mxu1 %v3744_v0  ;;  %v1164_v51 = vld [vmem:[%s5316_s1 + $0x320] sm:$0xff] }
 0x106   : > { %1535 = vmatmul.f32.gmra.mxu2 %v353_v25  ;;  %1788 = vmatpush.msrb.mxu1 %v1148_v21  ;;  %v1245_v21 = vadd.f32 %v3617_v59, %v3564_v2  ;;  %v1160_v2 = vld [vmem:[%s5316_s1 + $0x300] sm:$0xff] }
 0x107   : > { %1900 = vmatpush.msrb.mxu2 %v1165_v13  ;;  %v1146_v13 = vld [vmem:[%s5316_s1 + $0x290] sm:$0xff] }
 0x108   : > { %v1577_v50 = vpop.f32.mrf.mxu3  ;;  %1789 = vmatpush.msrb.mxu1 %v1147_v5  ;;  %v3818_v5 = vld [vmem:[%s3212_s13 + $0x159] sm:$0xff] }
 0x109   : > { %v3772_v47 = vpop.f32.mrf.mxu2  ;;  %v3774_v7 = vadd.f32 %v1577_v50, %v1465_v29  ;;  %v3776_v16 = vpop.f32.mrf.mxu0  ;;  %1901 = vmatpush.msrb.mxu2 %v1164_v51  ;;  %v1162_v29 = vld [vmem:[%s5316_s1 + $0x310] sm:$0xff]  ;;  %v1468_v50 = vadd.f32 %v3562_v62, %v1355_v58  ;;  %v1144_v58 = vld [vmem:[%s5316_s1 + $0x280] sm:$0xff] }
 0x10a   : > { %v3778_v25 = vpop.f32.mrf.mxu1  ;;  %1790 = vmatpush.msrb.mxu1 %v1146_v13  ;;  %v1358_v13 = vadd.f32 %v3569_v11, %v1245_v21  ;;  %v356_v21 = vld [vmem:[%s3212_s13 + $0x16a] sm:$0xff] }
 0x10b   : > { %1902 = vmatpush.msrb.mxu2 %v1163_v17  ;;  %v355_v17 = vld [vmem:[%s3212_s13 + $0x15a] sm:$0xff] }
 0x10c   : > { %1692 = vmatmul.f32.gmra.mxu0 %v3342_v26  ;;  %v1145_v26 = vld [vmem:[%s5316_s1 + $0x288] sm:$0xff] }
 0x10d   : > { %1627 = vmatmul.f32.gmra.mxu3 %v3588_v40  ;;  %1425 = vmatmul.f32.gmra.mxu1 %v3781_v55 }
 0x10e   : > { %1538 = vmatmul.f32.gmra.mxu2 %v354_v46  ;;  %1791 = vmatpush.msrb.mxu1 %v1145_v26 }
 0x10f   : > { %1903 = vmatpush.msrb.mxu2 %v1162_v29  ;;  %v1471_v29 = vadd.f32 %v3583_v4, %v1358_v13 }
 0x110   : > { %v1580_v40 = vpop.f32.mrf.mxu3  ;;  %1792 = vmatpush.msrb.mxu1 %v1144_v58  ;;  %v1251_v58 = vadd.f32 %v3617_v59, %v3603_v38 }
 0x111   : > { %v3809_v51 = vpop.f32.mrf.mxu2  ;;  %v3811_v14 = vadd.f32 %v1580_v40, %v1468_v50  ;;  %v3813_v62 = vpop.f32.mrf.mxu0  ;;  %1904 = vmatpush.msrb.mxu2 %v1161_v18  ;;  %v1248_v40 = vadd.f32 %v3617_v59, %v3585_v57 }
 0x112   : > { %v3815_v46 = vpop.f32.mrf.mxu1 }
 0x113   : > { %1905 = vmatpush.msrb.mxu2 %v1160_v2  ;;  %v1361_v4 = vadd.f32 %v3590_v22, %v1248_v40  ;;  %v1254_v40 = vadd.f32 %v3617_v59, %v3628_v15 }
 0x114   : > { %1695 = vmatmul.f32.gmra.mxu0 %v3352_v30  ;;  %v3843_v30 = vld [vmem:[%s3212_s13 + $0x169] sm:$0xff] }
 0x115   : > { %1630 = vmatmul.f32.gmra.mxu3 %v3606_v34  ;;  %1428 = vmatmul.f32.gmra.mxu1 %v3818_v5  ;;  %v1474_v57 = vadd.f32 %v3601_v37, %v1361_v4 }
 0x116   : > { %1541 = vmatmul.f32.gmra.mxu2 %v355_v17 }
 0x118   : > { %v1583_v50 = vpop.f32.mrf.mxu3 }
 0x119   : > { %v3834_v26 = vpop.f32.mrf.mxu2  ;;  %v3836_v18 = vadd.f32 %v1583_v50, %v1471_v29  ;;  %v3838_v11 = vpop.f32.mrf.mxu0  ;;  %v1364_v50 = vadd.f32 %v3608_v53, %v1251_v58  ;;  %v1188_v58 = vld [vmem:[%s5316_s1 + $0x3e0] sm:$0xff] }
 0x11a   : > { %v3840_v34 = vpop.f32.mrf.mxu1 }
 0x11b   : > { %v1477_v38 = vadd.f32 %v3626_v20, %v1364_v50 }
 0x11c   : > { %1698 = vmatmul.f32.gmra.mxu0 %v3361_v33  ;;  %v357_v33 = vld [vmem:[%s3212_s13 + $0x172] sm:$0xff] }
 0x11d   : > { %1633 = vmatmul.f32.gmra.mxu3 %v3225_v49  ;;  %1431 = vmatmul.f32.gmra.mxu1 %v3843_v30  ;;  %v3862_v49 = vld [vmem:[%s3212_s13 + $0x171] sm:$0xff] }
 0x11e   : > { %1544 = vmatmul.f32.gmra.mxu2 %v356_v21 }
 0x120   : > { %v1586_v17 = vpop.f32.mrf.mxu3 }
 0x121   : > { %v3853_v2 = vpop.f32.mrf.mxu2  ;;  %v3855_v13 = vadd.f32 %v1586_v17, %v1474_v57  ;;  %v3857_v29 = vpop.f32.mrf.mxu0 }
 0x122   : > { %v3859_v22 = vpop.f32.mrf.mxu1 }
 0x124   : > { %1701 = vmatmul.f32.gmra.mxu0 %v3371_v36  ;;  %v1191_v36 = vld [vmem:[%s5316_s1 + $0x3f8] sm:$0xff] }
 0x125   : > { %1636 = vmatmul.f32.gmra.mxu3 %v3241_v56  ;;  %1434 = vmatmul.f32.gmra.mxu1 %v3862_v49  ;;  %v1367_v56 = vadd.f32 %v3630_v61, %v1254_v40  ;;  %v1190_v61 = vld [vmem:[%s5316_s1 + $0x3f0] sm:$0xff] }
 0x126   : > { %1547 = vmatmul.f32.gmra.mxu2 %v357_v33  ;;  %2003 = vmatpush.msra.mxu3 %v1191_v36  ;;  %v1187_v33 = vld [vmem:[%s5316_s1 + $0x3d8] sm:$0xff]  ;;  %v1184_v36 = vld [vmem:[%s5316_s1 + $0x3c0] sm:$0xff] }
 0x127   : > { %v1480_v15 = vadd.f32 %v3655_v41, %v1367_v56  ;;  %v1189_v41 = vld [vmem:[%s5316_s1 + $0x3e8] sm:$0xff] }
 0x128   : > { %v1589_v37 = vpop.f32.mrf.mxu3  ;;  %2004 = vmatpush.msra.mxu3 %v1190_v61  ;;  %v1185_v56 = vld [vmem:[%s5316_s1 + $0x3c8] sm:$0xff]  ;;  %v1263_v61 = vadd.f32 %v3617_v59, %v3739_v35 }
 0x129   : > { %v3872_v21 = vpop.f32.mrf.mxu2  ;;  %v3874_v4 = vadd.f32 %v1589_v37, %v1477_v38  ;;  %v3876_v57 = vpop.f32.mrf.mxu0  ;;  %v3929_v37 = vld [vmem:[%s3212_s13 + $0x150] sm:$0xff] }
 0x12a   : > { %v3878_v53 = vpop.f32.mrf.mxu1  ;;  %2005 = vmatpush.msra.mxu3 %v1189_v41  ;;  %v3960_v41 = vld [vmem:[%s3212_s13 + $0x158] sm:$0xff]  ;;  %v1376_v35 = vadd.f32 %v3741_v43, %v1263_v61  ;;  %v1180_v43 = vld [vmem:[%s5316_s1 + $0x3a0] sm:$0xff] }
 0x12c   : > { %1704 = vmatmul.f32.gmra.mxu0 %v3379_v39  ;;  %2006 = vmatpush.msra.mxu3 %v1188_v58 }
 0x12d   : > { %1639 = vmatmul.f32.gmra.mxu3 %v3259_v63  ;;  %1793 = vmatmul.f32.vlgmr.msrb.gmra.mxu1 %v3265_v1  ;;  %v1257_v63 = vadd.f32 %v3617_v59, %v3659_v32 }
 0x12e   : > { %1906 = vmatmul.f32.vlgmr.msrb.gmra.mxu2 %v3306_v12  ;;  %2007 = vmatpush.msra.mxu3 %v1187_v33  ;;  %v1181_v33 = vld [vmem:[%s5316_s1 + $0x3a8] sm:$0xff] }
 0x12f   : > { %v1370_v32 = vadd.f32 %v3667_v10, %v1257_v63  ;;  %v1186_v10 = vld [vmem:[%s5316_s1 + $0x3d0] sm:$0xff] }
 0x130   : > { %v1592_v20 = vpop.f32.mrf.mxu3  ;;  %2008 = vmatpush.msra.mxu3 %v1186_v10  ;;  %v1266_v10 = vadd.f32 %v3617_v59, %v3776_v16 }
 0x131   : > { %v3894_v39 = vpop.f32.mrf.mxu2  ;;  %v3896_v1 = vadd.f32 %v1592_v20, %v1480_v15  ;;  %v3898_v12 = vpop.f32.mrf.mxu0  ;;  %v1483_v50 = vadd.f32 %v3698_v9, %v1370_v32  ;;  %v3934_v9 = vld [vmem:[%s3212_s13 + $0x32] sm:$0xff] }
 0x132   : > { %v3903_v17 = vpop.f32.mrf.mxu1  ;;  %2009 = vmatpush.msra.mxu3 %v1185_v56  ;;  %v1182_v32 = vld [vmem:[%s5316_s1 + $0x3b0] sm:$0xff]  ;;  %v3991_v56 = vld [vmem:[%s3212_s13 + $0x168] sm:$0xff]  ;;  %v1379_v16 = vadd.f32 %v3778_v25, %v1266_v10 }
 0x133   : > { %5378 = vst [vmem:[#allocation24_spill] sm:$0xff] %v3896_v1  ;;  %v1177_v25 = vld [vmem:[%s5316_s1 + $0x388] sm:$0xff]  ;;  %v5384_v10 = vld [vmem:[#allocation5_spill] sm:$0xff]  ;;  %v5393_v1 = vld [vmem:[#allocation10_spill] sm:$0xff] }
 0x134   : > { %1707 = vmatmul.f32.gmra.mxu0 %v3386_v42  ;;  %2010 = vmatpush.msra.mxu3 %v1184_v36  ;;  %v1179_v36 = vld [vmem:[%s5316_s1 + $0x398] sm:$0xff] }
 0x135   : > { %1642 = vmatmul.f32.gmra.mxu3 %v3284_v6  ;;  %1796 = vmatmul.f32.gmra.mxu1 %v3290_v8  ;;  %v1260_v6 = vadd.f32 %v3617_v59, %v3702_v23 }
 0x136   : > { %1909 = vmatmul.f32.gmra.mxu2 %v3325_v19 }
 0x137   : > { %v1373_v23 = vadd.f32 %v3704_v31, %v1260_v6  ;;  %v1183_v31 = vld [vmem:[%s5316_s1 + $0x3b8] sm:$0xff] }
 0x138   : > { %v1595_v38 = vpop.f32.mrf.mxu3  ;;  %2011 = vmatpush.msra.mxu3 %v1183_v31  ;;  %v1492_v31 = vadd.f32 %v3809_v51, %v1379_v16  ;;  %v4027_v51 = vld [vmem:[%s3212_s13 + $0x52] sm:$0xff] }
 0x139   : > { %v3922_v42 = vpop.f32.mrf.mxu2  ;;  %v3924_v8 = vadd.f32 %v1595_v38, %v1483_v50  ;;  %v3926_v19 = vpop.f32.mrf.mxu0  ;;  %v1486_v15 = vadd.f32 %v3735_v44, %v1373_v23  ;;  %v3965_v44 = vld [vmem:[%s3212_s13 + $0x3a] sm:$0xff]  ;;  %v1489_v50 = vadd.f32 %v3772_v47, %v1376_v35  ;;  %v3996_v47 = vld [vmem:[%s3212_s13 + $0x4a] sm:$0xff] }
 0x13a   : > { %v3931_v40 = vpop.f32.mrf.mxu1  ;;  %2012 = vmatpush.msra.mxu3 %v1182_v32  ;;  %v1269_v32 = vadd.f32 %v3617_v59, %v3813_v62  ;;  %v1176_v62 = vld [vmem:[%s5316_s1 + $0x380] sm:$0xff] }
 0x13b   : > { %5379 = vst [vmem:[#allocation25_spill] sm:$0xff] %v3924_v8 }
 0x13c   : > { %1710 = vmatmul.f32.gmra.mxu0 %v3395_v45  ;;  %2013 = vmatpush.msra.mxu3 %v1181_v33 }
 0x13d   : > { %1645 = vmatmul.f32.gmra.mxu3 %v3929_v37  ;;  %1799 = vmatmul.f32.gmra.mxu1 %v3934_v9 }
 0x13e   : > { %1912 = vmatmul.f32.gmra.mxu2 %v3338_v24  ;;  %2014 = vmatpush.msra.mxu3 %v1180_v43  ;;  %v1382_v43 = vadd.f32 %v3815_v46, %v1269_v32 }
 0x140   : > { %v1598_v20 = vpop.f32.mrf.mxu3  ;;  %2015 = vmatpush.msra.mxu3 %v1179_v36  ;;  %v5385_v36 = vld [vmem:[#allocation4_spill] sm:$0xff]  ;;  %v1495_v16 = vadd.f32 %v3834_v26, %v1382_v43  ;;  %v2853_v26 = vld [vmem:[%s3212_s13 + $0x78] sm:$0xff] }
 0x141   : > { %v3953_v45 = vpop.f32.mrf.mxu2  ;;  %v3955_v63 = vadd.f32 %v1598_v20, %v1486_v15  ;;  %v3957_v24 = vpop.f32.mrf.mxu0  ;;  %v5382_v15 = vld [vmem:[#allocation3_spill] sm:$0xff]  ;;  %v1178_v20 = vld [vmem:[%s5316_s1 + $0x390] sm:$0xff] }
 0x142   : > { %v3962_v58 = vpop.f32.mrf.mxu1  ;;  %2016 = vmatpush.msra.mxu3 %v1178_v20  ;;  %v1272_v20 = vadd.f32 %v3617_v59, %v3838_v11  ;;  %v5387_v11 = vld [vmem:[#allocation6_spill] sm:$0xff] }
 0x143   : > { %5380 = vst [vmem:[#allocation26_spill] sm:$0xff] %v3955_v63 }
 0x144   : > { %1713 = vmatmul.f32.gmra.mxu0 %v3405_v48  ;;  %2017 = vmatpush.msra.mxu3 %v1177_v25  ;;  %v4047_v25 = vld [vmem:[%s3212_s13 + $0x180] sm:$0xff] }
 0x145   : > { %1648 = vmatmul.f32.gmra.mxu3 %v3960_v41  ;;  %1802 = vmatmul.f32.gmra.mxu1 %v3965_v44 }
 0x146   : > { %1915 = vmatmul.f32.gmra.mxu2 %v3348_v28  ;;  %2018 = vmatpush.msra.mxu3 %v1176_v62  ;;  %v1385_v62 = vadd.f32 %v3840_v34, %v1272_v20  ;;  %v4069_v34 = vld [vmem:[%s3212_s13 + $0x188] sm:$0xff] }
 0x147   : > { %5389 = vst [vmem:[#allocation6_spill] sm:$0xff] %v4069_v34 }
 0x148   : > { %v1601_v38 = vpop.f32.mrf.mxu3  ;;  %v1498_v43 = vadd.f32 %v3853_v2, %v1385_v62  ;;  %v2854_v2 = vld [vmem:[%s3212_s13 + $0x80] sm:$0xff] }
 0x149   : > { %v3984_v48 = vpop.f32.mrf.mxu2  ;;  %v3986_v6 = vadd.f32 %v1601_v38, %v1489_v50  ;;  %v3988_v28 = vpop.f32.mrf.mxu0  ;;  %v4022_v50 = vld [vmem:[%s3212_s13 + $0x170] sm:$0xff] }
 0x14a   : > { %v3993_v23 = vpop.f32.mrf.mxu1 }
 0x14b   : > { %5381 = vst [vmem:[#allocation27_spill] sm:$0xff] %v3986_v6 }
 0x14c   : > { %1716 = vmatmul.f32.gmra.mxu0 %v3415_v52 }
 0x14d   : > { %1651 = vmatmul.f32.gmra.mxu3 %v3991_v56  ;;  %1805 = vmatmul.f32.gmra.mxu1 %v3996_v47 }
 0x14e   : > { %1918 = vmatmul.f32.gmra.mxu2 %v5382_v15 }
 0x150   : > { %v1604_v61 = vpop.f32.mrf.mxu3 }
 0x151   : > { %v4015_v52 = vpop.f32.mrf.mxu2  ;;  %v4017_v35 = vadd.f32 %v1604_v61, %v1492_v31  ;;  %v4019_v33 = vpop.f32.mrf.mxu0 }
 0x152   : > { %v4024_v38 = vpop.f32.mrf.mxu1 }
 0x153   : > { %5383 = vst [vmem:[#allocation3_spill] sm:$0xff] %v4017_v35 }
 0x154   : > { %1719 = vmatmul.f32.gmra.mxu0 %v5384_v10  ;;  %v4052_v10 = vld [vmem:[%s3212_s13 + $0x62] sm:$0xff] }
 0x155   : > { %1654 = vmatmul.f32.gmra.mxu3 %v4022_v50  ;;  %1808 = vmatmul.f32.gmra.mxu1 %v4027_v51 }
 0x156   : > { %1921 = vmatmul.f32.gmra.mxu2 %v5385_v36 }
 0x158   : > { %v1607_v15 = vpop.f32.mrf.mxu3 }
 0x159   : > { %v4040_v31 = vpop.f32.mrf.mxu2  ;;  %v4042_v61 = vadd.f32 %v1607_v15, %v1495_v16  ;;  %v4044_v46 = vpop.f32.mrf.mxu0  ;;  %v1275_v16 = vadd.f32 %v3617_v59, %v3857_v29  ;;  %v5391_v29 = vld [vmem:[#allocation8_spill] sm:$0xff] }
 0x15a   : > { %v4049_v32 = vpop.f32.mrf.mxu1 }
 0x15b   : > { %5386 = vst [vmem:[#allocation5_spill] sm:$0xff] %v4042_v61 }
 0x15c   : > { %1722 = vmatmul.f32.gmra.mxu0 %v5387_v11  ;;  %v4074_v11 = vld [vmem:[%s3212_s13 + $0x6a] sm:$0xff] }
 0x15d   : > { %1657 = vmatmul.f32.gmra.mxu3 %v4047_v25  ;;  %1811 = vmatmul.f32.gmra.mxu1 %v4052_v10  ;;  %5390 = vst [vmem:[#allocation28_spill] sm:$0xff] %v4074_v11 }
 0x15e   : > { %1924 = vmatmul.f32.gmra.mxu2 %v2853_v26  ;;  %v1388_v26 = vadd.f32 %v3859_v22, %v1275_v16  ;;  %v2879_v22 = vld [vmem:[%s3212_s13 + $0x31] sm:$0xff] }
 0x160   : > { %v1610_v36 = vpop.f32.mrf.mxu3  ;;  %v1501_v62 = vadd.f32 %v3872_v21, %v1388_v26  ;;  %v5394_v21 = vld [vmem:[#allocation7_spill] sm:$0xff] }
 0x161   : > { %v4062_v15 = vpop.f32.mrf.mxu2  ;;  %v4064_v8 = vadd.f32 %v1610_v36, %v1498_v43  ;;  %v4066_v63 = vpop.f32.mrf.mxu0  ;;  %v1278_v36 = vadd.f32 %v3617_v59, %v3876_v57  ;;  %v1302_v57 = vadd.f32 %v3617_v59, %v5394_v21  ;;  %v4111_v21 = vld [vmem:[%s3212_s13 + $0x82] sm:$0xff] }
 0x162   : > { %v4071_v20 = vpop.f32.mrf.mxu1 }
 0x163   : > { %5388 = vst [vmem:[#allocation4_spill] sm:$0xff] %v4064_v8  ;;  %v4092_v8 = vld [vmem:[%s3212_s13 + $0x7a] sm:$0xff] }
 0x164   : > { %1725 = vmatmul.f32.gmra.mxu0 %v5391_v29  ;;  %v2855_v29 = vld [vmem:[%s3212_s13 + $0x90] sm:$0xff] }
 0x165   : > { %1660 = vmatmul.f32.gmra.mxu3 %v4069_v34  ;;  %1814 = vmatmul.f32.gmra.mxu1 %v4074_v11 }
 0x166   : > { %1927 = vmatmul.f32.gmra.mxu2 %v2854_v2  ;;  %v1391_v2 = vadd.f32 %v3878_v53, %v1278_v36 }
 0x168   : > { %v1613_v43 = vpop.f32.mrf.mxu3  ;;  %v1504_v26 = vadd.f32 %v3894_v39, %v1391_v2 }
 0x169   : > { %v4084_v6 = vpop.f32.mrf.mxu2  ;;  %v4086_v35 = vadd.f32 %v1613_v43, %v1501_v62  ;;  %v4088_v61 = vpop.f32.mrf.mxu0 }
 0x16a   : > { %v1414_v16 = vpop.f32.mrf.mxu1 }
 0x16b   : > { %5392 = vst [vmem:[#allocation8_spill] sm:$0xff] %v4086_v35  ;;  %v1415_v62 = vadd.f32 %v1414_v16, %v1302_v57  ;;  %v1281_v35 = vadd.f32 %v3617_v59, %v3898_v12  ;;  %v5396_v16 = vld [vmem:[#allocation12_spill] sm:$0xff]  ;;  %v5397_v12 = vld [vmem:[#allocation9_spill] sm:$0xff] }
 0x16c   : > { %1728 = vmatmul.f32.gmra.mxu0 %v5393_v1  ;;  %v1305_v2 = vadd.f32 %v3617_v59, %v5397_v12  ;;  %v4130_v12 = vld [vmem:[%s3212_s13 + $0x92] sm:$0xff] }
 0x16d   : > { %2019 = vmatmul.f32.vlgmr.msra.gmra.mxu3 %v2879_v22  ;;  %1817 = vmatmul.f32.gmra.mxu1 %v4092_v8  ;;  %v2880_v22 = vld [vmem:[%s3212_s13 + $0x39] sm:$0xff]  ;;  %v1394_v39 = vadd.f32 %v3903_v17, %v1281_v35 }
 0x16e   : > { %1930 = vmatmul.f32.gmra.mxu2 %v2855_v29  ;;  %v2856_v29 = vld [vmem:[%s3212_s13 + $0x98] sm:$0xff] }
 0x170   : > { %v1616_v43 = vpop.f32.mrf.mxu3 }
 0x171   : > { %v1527_v34 = vpop.f32.mrf.mxu2  ;;  %v4103_v53 = vadd.f32 %v1616_v43, %v1504_v26  ;;  %v4107_v1 = vpop.f32.mrf.mxu0 }
 0x172   : > { %v4105_v36 = vadd.f32 %v1527_v34, %v1415_v62  ;;  %v1417_v11 = vpop.f32.mrf.mxu1  ;;  %v1507_v34 = vadd.f32 %v3922_v42, %v1394_v39  ;;  %v1284_v62 = vadd.f32 %v3617_v59, %v3926_v19  ;;  %v5400_v19 = vld [vmem:[#allocation11_spill] sm:$0xff] }
 0x173   : > { %5395 = vst [vmem:[#allocation10_spill] sm:$0xff] %v4103_v53  ;;  %v1418_v57 = vadd.f32 %v1417_v11, %v1305_v2  ;;  %v5399_v11 = vld [vmem:[#allocation14_spill] sm:$0xff]  ;;  %v1308_v39 = vadd.f32 %v3617_v59, %v5400_v19 }
 0x174   : > { %1731 = vmatmul.f32.gmra.mxu0 %v5396_v16  ;;  %v1397_v42 = vadd.f32 %v3931_v40, %v1284_v62  ;;  %v4149_v19 = vld [vmem:[%s3212_s13 + $0x9a] sm:$0xff] }
 0x175   : > { %2022 = vmatmul.f32.gmra.mxu3 %v2880_v22  ;;  %1820 = vmatmul.f32.gmra.mxu1 %v4111_v21  ;;  %v2881_v22 = vld [vmem:[%s3212_s13 + $0x49] sm:$0xff] }
 0x176   : > { %1933 = vmatmul.f32.gmra.mxu2 %v2856_v29  ;;  %v2857_v29 = vld [vmem:[%s3212_s13 + $0xa8] sm:$0xff]  ;;  %v1510_v2 = vadd.f32 %v3953_v45, %v1397_v42 }
 0x178   : > { %v1619_v26 = vpop.f32.mrf.mxu3 }
 0x179   : > { %v1530_v43 = vpop.f32.mrf.mxu2  ;;  %v4122_v17 = vadd.f32 %v1619_v26, %v1507_v34  ;;  %v4126_v16 = vpop.f32.mrf.mxu0  ;;  %v1287_v26 = vadd.f32 %v3617_v59, %v3957_v24  ;;  %v5403_v24 = vld [vmem:[#allocation13_spill] sm:$0xff] }
 0x17a   : > { %v4124_v35 = vadd.f32 %v1530_v43, %v1418_v57  ;;  %v1420_v53 = vpop.f32.mrf.mxu1  ;;  %v1311_v42 = vadd.f32 %v3617_v59, %v5403_v24  ;;  %v4168_v24 = vld [vmem:[%s3212_s13 + $0xaa] sm:$0xff] }
 0x17b   : > { %5398 = vst [vmem:[#allocation7_spill] sm:$0xff] %v4122_v17  ;;  %v1421_v34 = vadd.f32 %v1420_v53, %v1308_v39  ;;  %v1400_v45 = vadd.f32 %v3962_v58, %v1287_v26  ;;  %v5402_v53 = vld [vmem:[#allocation16_spill] sm:$0xff] }
 0x17c   : > { %1734 = vmatmul.f32.gmra.mxu0 %v5399_v11 }
 0x17d   : > { %2025 = vmatmul.f32.gmra.mxu3 %v2881_v22  ;;  %1823 = vmatmul.f32.gmra.mxu1 %v4130_v12  ;;  %v2882_v22 = vld [vmem:[%s3212_s13 + $0x51] sm:$0xff]  ;;  %v1513_v39 = vadd.f32 %v3984_v48, %v1400_v45 }
 0x17e   : > { %1936 = vmatmul.f32.gmra.mxu2 %v2857_v29  ;;  %v2858_v29 = vld [vmem:[%s3212_s13 + $0xb0] sm:$0xff] }
 0x180   : > { %v1622_v57 = vpop.f32.mrf.mxu3 }
 0x181   : > { %v1533_v43 = vpop.f32.mrf.mxu2  ;;  %v4141_v40 = vadd.f32 %v1622_v57, %v1510_v2  ;;  %v4145_v11 = vpop.f32.mrf.mxu0  ;;  %v1290_v57 = vadd.f32 %v3617_v59, %v3988_v28  ;;  %v5406_v28 = vld [vmem:[#allocation15_spill] sm:$0xff] }
 0x182   : > { %v4143_v62 = vadd.f32 %v1533_v43, %v1421_v34  ;;  %v1423_v17 = vpop.f32.mrf.mxu1  ;;  %v1314_v45 = vadd.f32 %v3617_v59, %v5406_v28  ;;  %v4187_v28 = vld [vmem:[%s3212_s13 + $0xb2] sm:$0xff] }
 0x183   : > { %5401 = vst [vmem:[#allocation12_spill] sm:$0xff] %v4141_v40  ;;  %v1424_v2 = vadd.f32 %v1423_v17, %v1311_v42  ;;  %v1403_v48 = vadd.f32 %v3993_v23, %v1290_v57  ;;  %v5405_v17 = vld [vmem:[#allocation18_spill] sm:$0xff] }
 0x184   : > { %1737 = vmatmul.f32.gmra.mxu0 %v5402_v53 }
 0x185   : > { %2028 = vmatmul.f32.gmra.mxu3 %v2882_v22  ;;  %1826 = vmatmul.f32.gmra.mxu1 %v4149_v19  ;;  %v2883_v22 = vld [vmem:[%s3212_s13 + $0x61] sm:$0xff]  ;;  %v1516_v42 = vadd.f32 %v4015_v52, %v1403_v48 }
 0x186   : > { %1939 = vmatmul.f32.gmra.mxu2 %v2858_v29  ;;  %v2859_v29 = vld [vmem:[%s3212_s13 + $0xc0] sm:$0xff] }
 0x188   : > { %v1625_v34 = vpop.f32.mrf.mxu3 }
 0x189   : > { %v1536_v43 = vpop.f32.mrf.mxu2  ;;  %v4160_v58 = vadd.f32 %v1625_v34, %v1513_v39  ;;  %v4164_v53 = vpop.f32.mrf.mxu0  ;;  %v1293_v34 = vadd.f32 %v3617_v59, %v4019_v33  ;;  %v5408_v33 = vld [vmem:[#allocation17_spill] sm:$0xff] }
 0x18a   : > { %v4162_v26 = vadd.f32 %v1536_v43, %v1424_v2  ;;  %v1426_v40 = vpop.f32.mrf.mxu1 }
 0x18b   : > { %5404 = vst [vmem:[#allocation9_spill] sm:$0xff] %v4160_v58  ;;  %v1427_v39 = vadd.f32 %v1426_v40, %v1314_v45  ;;  %v1406_v52 = vadd.f32 %v4024_v38, %v1293_v34  ;;  %v1317_v40 = vadd.f32 %v3617_v59, %v5408_v33  ;;  %v4206_v33 = vld [vmem:[%s3212_s13 + $0xc2] sm:$0xff] }
 0x18c   : > { %1740 = vmatmul.f32.gmra.mxu0 %v5405_v17 }
 0x18d   : > { %2031 = vmatmul.f32.gmra.mxu3 %v2883_v22  ;;  %1829 = vmatmul.f32.gmra.mxu1 %v4168_v24  ;;  %v2884_v22 = vld [vmem:[%s3212_s13 + $0x69] sm:$0xff]  ;;  %v1519_v48 = vadd.f32 %v4040_v31, %v1406_v52 }
 0x18e   : > { %1942 = vmatmul.f32.gmra.mxu2 %v2859_v29  ;;  %v2860_v29 = vld [vmem:[%s3212_s13 + $0xc8] sm:$0xff] }
 0x190   : > { %v1628_v2 = vpop.f32.mrf.mxu3 }
 0x191   : > { %v1539_v43 = vpop.f32.mrf.mxu2  ;;  %v4179_v23 = vadd.f32 %v1628_v2, %v1516_v42  ;;  %v4183_v17 = vpop.f32.mrf.mxu0 }
 0x192   : > { %v4181_v57 = vadd.f32 %v1539_v43, %v1427_v39  ;;  %v1429_v58 = vpop.f32.mrf.mxu1  ;;  %v1296_v39 = vadd.f32 %v3617_v59, %v4044_v46  ;;  %v2885_v43 = vld [vmem:[%s3212_s13 + $0x79] sm:$0xff] }
 0x193   : > { %5407 = vst [vmem:[#allocation14_spill] sm:$0xff] %v4179_v23  ;;  %v1430_v45 = vadd.f32 %v1429_v58, %v1317_v40  ;;  %v5410_v58 = vld [vmem:[#allocation21_spill] sm:$0xff]  ;;  %v5411_v46 = vld [vmem:[#allocation19_spill] sm:$0xff] }
 0x194   : > { %1743 = vmatmul.f32.gmra.mxu0 %v3611_v3  ;;  %v1409_v31 = vadd.f32 %v4049_v32, %v1296_v39  ;;  %v1320_v52 = vadd.f32 %v3617_v59, %v5411_v46  ;;  %v4225_v46 = vld [vmem:[%s3212_s13 + $0xca] sm:$0xff] }
 0x195   : > { %2034 = vmatmul.f32.gmra.mxu3 %v2884_v22  ;;  %1832 = vmatmul.f32.gmra.mxu1 %v4187_v28  ;;  %v2863_v23 = vld [vmem:[%s3212_s13 + $0xf0] sm:$0xff] }
 0x196   : > { %1945 = vmatmul.f32.gmra.mxu2 %v2860_v29  ;;  %v2861_v29 = vld [vmem:[%s3212_s13 + $0xd8] sm:$0xff]  ;;  %v1522_v40 = vadd.f32 %v4062_v15, %v1409_v31 }
 0x198   : > { %v1631_v42 = vpop.f32.mrf.mxu3 }
 0x199   : > { %v1542_v2 = vpop.f32.mrf.mxu2  ;;  %v4198_v38 = vadd.f32 %v1631_v42, %v1519_v48  ;;  %v4202_v3 = vpop.f32.mrf.mxu0  ;;  %v1299_v42 = vadd.f32 %v3617_v59, %v4066_v63  ;;  %v5414_v63 = vld [vmem:[#allocation20_spill] sm:$0xff] }
 0x19a   : > { %v4200_v34 = vadd.f32 %v1542_v2, %v1430_v45  ;;  %v1432_v22 = vpop.f32.mrf.mxu1  ;;  %v1323_v31 = vadd.f32 %v3617_v59, %v5414_v63  ;;  %v5416_v59 = vld [vmem:[#allocation22_spill] sm:$0xff] }
 0x19b   : > { %5409 = vst [vmem:[#allocation11_spill] sm:$0xff] %v4198_v38  ;;  %v1433_v48 = vadd.f32 %v1432_v22, %v1320_v52  ;;  %v1412_v15 = vadd.f32 %v4071_v20, %v1299_v42  ;;  %v5413_v22 = vld [vmem:[#allocation23_spill] sm:$0xff]  ;;  %v2887_v42 = vld [vmem:[%s3212_s13 + $0x91] sm:$0xff] }
 0x19c   : > { %1746 = vmatmul.f32.gmra.mxu0 %v5410_v58 }
 0x19d   : > { %2037 = vmatmul.f32.gmra.mxu3 %v2885_v43  ;;  %1835 = vmatmul.f32.gmra.mxu1 %v4206_v33  ;;  %v2886_v43 = vld [vmem:[%s3212_s13 + $0x81] sm:$0xff]  ;;  %v1525_v52 = vadd.f32 %v4084_v6, %v1412_v15  ;;  %v1682_v6 = vadd.f32 %v4088_v61, %v5416_v59  ;;  %v1203_v59 = vld [vmem:[%s5316_s1 + $0x458] sm:$0xff] }
 0x19e   : > { %1948 = vmatmul.f32.gmra.mxu2 %v2861_v29  ;;  %v2862_v29 = vld [vmem:[%s3212_s13 + $0xe0] sm:$0xff] }
 0x1a0   : > { %v1634_v45 = vpop.f32.mrf.mxu3 }
 0x1a1   : > { %v1545_v2 = vpop.f32.mrf.mxu2  ;;  %v4217_v32 = vadd.f32 %v1634_v45, %v1522_v40  ;;  %v4221_v58 = vpop.f32.mrf.mxu0 }
 0x1a2   : > { %v4219_v39 = vadd.f32 %v1545_v2, %v1433_v48  ;;  %v1435_v38 = vpop.f32.mrf.mxu1 }
 0x1a3   : > { %5412 = vst [vmem:[#allocation16_spill] sm:$0xff] %v4217_v32  ;;  %v1436_v40 = vadd.f32 %v1435_v38, %v1323_v31  ;;  %v1207_v38 = vld [vmem:[%s5316_s1 + $0x478] sm:$0xff] }
 0x1a4   : > { %1749 = vmatmul.f32.gmra.mxu0 %v5413_v22 }
 0x1a5   : > { %2040 = vmatmul.f32.gmra.mxu3 %v2886_v43  ;;  %1838 = vmatmul.f32.gmra.mxu1 %v4225_v46  ;;  %v4242_v43 = vld [vmem:[%s3212_s13 + $0xda] sm:$0xff] }
 0x1a6   : > { %1951 = vmatmul.f32.gmra.mxu2 %v2862_v29  ;;  %2116 = vmatpush.msra.mxu0 %v1207_v38 }
 0x1a8   : > { %v1637_v48 = vpop.f32.mrf.mxu3 }
 0x1a9   : > { %v1548_v45 = vpop.f32.mrf.mxu2  ;;  %v4234_v2 = vadd.f32 %v1637_v48, %v1525_v52  ;;  %v4238_v20 = vpop.f32.mrf.mxu0 }
 0x1aa   : > { %v4236_v32 = vadd.f32 %v1548_v45, %v1436_v40  ;;  %v1794_v22 = vpop.f32.mrf.mxu1  ;;  %v1205_v40 = vld [vmem:[%s5316_s1 + $0x468] sm:$0xff] }
 0x1ab   : > { %5415 = vst [vmem:[#allocation13_spill] sm:$0xff] %v4234_v2  ;;  %v1795_v29 = vadd.f32 %v1794_v22, %v1682_v6  ;;  %v4267_v45 = vld [vmem:[%s3212_s13 + $0xe2] sm:$0xff]  ;;  %v1685_v22 = vadd.f32 %v4107_v1, %v3700_v54  ;;  %v2904_v2 = vld [vmem:[%s3212_s13 + $0x159] sm:$0xff] }
 0x1ac   : > { %1752 = vmatmul.f32.gmra.mxu0 %v3707_v60  ;;  %v1206_v60 = vld [vmem:[%s5316_s1 + $0x470] sm:$0xff] }
 0x1ad   : > { %2043 = vmatmul.f32.gmra.mxu3 %v2887_v42  ;;  %1841 = vmatmul.f32.gmra.mxu1 %v4242_v43  ;;  %v2864_v42 = vld [vmem:[%s3212_s13 + $0xf8] sm:$0xff] }
 0x1ae   : > { %1954 = vmatmul.f32.gmra.mxu2 %v2863_v23  ;;  %2117 = vmatpush.msra.mxu0 %v1206_v60  ;;  %v2888_v23 = vld [vmem:[%s3212_s13 + $0x99] sm:$0xff]  ;;  %v2889_v60 = vld [vmem:[%s3212_s13 + $0xa9] sm:$0xff] }
 0x1b0   : > { %v1640_v15 = vpop.f32.mrf.mxu3  ;;  %2118 = vmatpush.msra.mxu0 %v1205_v40  ;;  %v2865_v40 = vld [vmem:[%s3212_s13 + $0x108] sm:$0xff] }
 0x1b1   : > { %v4256_v63 = vadd.f32 %v1640_v15, %v4105_v36  ;;  %v1907_v61 = vpop.f32.mrf.mxu2  ;;  %v4260_v52 = vpop.f32.mrf.mxu0  ;;  %v1204_v36 = vld [vmem:[%s5316_s1 + $0x460] sm:$0xff] }
 0x1b2   : > { %v4258_v31 = vadd.f32 %v1907_v61, %v1795_v29  ;;  %v1797_v48 = vpop.f32.mrf.mxu1  ;;  %2119 = vmatpush.msra.mxu0 %v1204_v36 }
 0x1b3   : > { %v1798_v6 = vadd.f32 %v1797_v48, %v1685_v22  ;;  %v1201_v48 = vld [vmem:[%s5316_s1 + $0x448] sm:$0xff] }
 0x1b4   : > { %1755 = vmatmul.f32.gmra.mxu0 %v3744_v0  ;;  %v1202_v0 = vld [vmem:[%s5316_s1 + $0x450] sm:$0xff] }
 0x1b5   : > { %2046 = vmatmul.f32.gmra.mxu3 %v2888_v23  ;;  %1844 = vmatmul.f32.gmra.mxu1 %v4267_v45  ;;  %v4292_v23 = vld [vmem:[%s3212_s13 + $0xf2] sm:$0xff] }
 0x1b6   : > { %1957 = vmatmul.f32.gmra.mxu2 %v2864_v42  ;;  %2120 = vmatpush.msra.mxu0 %v1203_v59  ;;  %v1200_v42 = vld [vmem:[%s5316_s1 + $0x440] sm:$0xff] }
 0x1b8   : > { %v1643_v38 = vpop.f32.mrf.mxu3  ;;  %2121 = vmatpush.msra.mxu0 %v1202_v0 }
 0x1b9   : > { %v4284_v29 = vadd.f32 %v1643_v38, %v4124_v35  ;;  %v1910_v15 = vpop.f32.mrf.mxu2  ;;  %v4288_v1 = vpop.f32.mrf.mxu0  ;;  %v1688_v35 = vadd.f32 %v4126_v16, %v3737_v27  ;;  %v2890_v38 = vld [vmem:[%s3212_s13 + $0xb1] sm:$0xff] }
 0x1ba   : > { %v4286_v54 = vadd.f32 %v1910_v15, %v1798_v6  ;;  %v1800_v61 = vpop.f32.mrf.mxu1  ;;  %2122 = vmatpush.msra.mxu0 %v1201_v48  ;;  %v4317_v15 = vld [vmem:[%s3212_s13 + $0xfa] sm:$0xff] }
 0x1bb   : > { %5417 = vst [vmem:[#allocation18_spill] sm:$0xff] %v4284_v29  ;;  %v1801_v36 = vadd.f32 %v1800_v61, %v1688_v35  ;;  %v1198_v61 = vld [vmem:[%s5316_s1 + $0x430] sm:$0xff] }
 0x1bc   : > { %1758 = vmatmul.f32.gmra.mxu0 %v3781_v55  ;;  %v1199_v55 = vld [vmem:[%s5316_s1 + $0x438] sm:$0xff] }
 0x1bd   : > { %2049 = vmatmul.f32.gmra.mxu3 %v2889_v60  ;;  %1847 = vmatmul.f32.gmra.mxu1 %v4292_v23  ;;  %v2866_v60 = vld [vmem:[%s3212_s13 + $0x110] sm:$0xff] }
 0x1be   : > { %1960 = vmatmul.f32.gmra.mxu2 %v2865_v40  ;;  %2123 = vmatpush.msra.mxu0 %v1200_v42  ;;  %v1197_v40 = vld [vmem:[%s5316_s1 + $0x428] sm:$0xff]  ;;  %v2895_v29 = vld [vmem:[%s3212_s13 + $0xf1] sm:$0xff] }
 0x1c0   : > { %v1646_v22 = vpop.f32.mrf.mxu3  ;;  %2124 = vmatpush.msra.mxu0 %v1199_v55 }
 0x1c1   : > { %v4309_v59 = vadd.f32 %v1646_v22, %v4143_v62  ;;  %v1913_v6 = vpop.f32.mrf.mxu2  ;;  %v4313_v16 = vpop.f32.mrf.mxu0  ;;  %v1691_v62 = vadd.f32 %v4145_v11, %v3774_v7  ;;  %v2891_v22 = vld [vmem:[%s3212_s13 + $0xc1] sm:$0xff] }
 0x1c2   : > { %v4311_v27 = vadd.f32 %v1913_v6, %v1801_v36  ;;  %v1803_v0 = vpop.f32.mrf.mxu1  ;;  %2125 = vmatpush.msra.mxu0 %v1198_v61  ;;  %v4342_v6 = vld [vmem:[%s3212_s13 + $0x10a] sm:$0xff] }
 0x1c3   : > { %5418 = vst [vmem:[#allocation15_spill] sm:$0xff] %v4309_v59  ;;  %v1804_v48 = vadd.f32 %v1803_v0, %v1691_v62  ;;  %v1195_v0 = vld [vmem:[%s5316_s1 + $0x418] sm:$0xff] }
 0x1c4   : > { %1761 = vmatmul.f32.gmra.mxu0 %v3818_v5  ;;  %v1196_v5 = vld [vmem:[%s5316_s1 + $0x420] sm:$0xff] }
 0x1c5   : > { %2052 = vmatmul.f32.gmra.mxu3 %v2890_v38  ;;  %1850 = vmatmul.f32.gmra.mxu1 %v4317_v15  ;;  %v2867_v38 = vld [vmem:[%s3212_s13 + $0x120] sm:$0xff] }
 0x1c6   : > { %1963 = vmatmul.f32.gmra.mxu2 %v2866_v60  ;;  %2126 = vmatpush.msra.mxu0 %v1197_v40  ;;  %v1194_v60 = vld [vmem:[%s5316_s1 + $0x410] sm:$0xff]  ;;  %v2901_v59 = vld [vmem:[%s3212_s13 + $0x139] sm:$0xff] }
 0x1c8   : > { %v1649_v35 = vpop.f32.mrf.mxu3  ;;  %2127 = vmatpush.msra.mxu0 %v1196_v5 }
 0x1c9   : > { %v4334_v42 = vadd.f32 %v1649_v35, %v4162_v26  ;;  %v1916_v36 = vpop.f32.mrf.mxu2  ;;  %v4338_v11 = vpop.f32.mrf.mxu0  ;;  %v1694_v26 = vadd.f32 %v4164_v53, %v3811_v14  ;;  %v2892_v35 = vld [vmem:[%s3212_s13 + $0xc9] sm:$0xff] }
 0x1ca   : > { %v4336_v7 = vadd.f32 %v1916_v36, %v1804_v48  ;;  %v1806_v55 = vpop.f32.mrf.mxu1  ;;  %2128 = vmatpush.msra.mxu0 %v1195_v0  ;;  %v4367_v36 = vld [vmem:[%s3212_s13 + $0x112] sm:$0xff] }
 0x1cb   : > { %5419 = vst [vmem:[#allocation17_spill] sm:$0xff] %v4334_v42  ;;  %v1807_v61 = vadd.f32 %v1806_v55, %v1694_v26  ;;  %v1192_v55 = vld [vmem:[%s5316_s1 + $0x400] sm:$0xff] }
 0x1cc   : > { %1764 = vmatmul.f32.gmra.mxu0 %v3843_v30  ;;  %v1193_v30 = vld [vmem:[%s5316_s1 + $0x408] sm:$0xff] }
 0x1cd   : > { %2055 = vmatmul.f32.gmra.mxu3 %v2891_v22  ;;  %1853 = vmatmul.f32.gmra.mxu1 %v4342_v6  ;;  %v2868_v22 = vld [vmem:[%s3212_s13 + $0x128] sm:$0xff] }
 0x1ce   : > { %1966 = vmatmul.f32.gmra.mxu2 %v2867_v38  ;;  %2129 = vmatpush.msra.mxu0 %v1194_v60  ;;  %v4504_v42 = vld [vmem:[%s3212_s13 + $0x182] sm:$0xff] }
 0x1d0   : > { %v1652_v62 = vpop.f32.mrf.mxu3  ;;  %2130 = vmatpush.msra.mxu0 %v1193_v30  ;;  %v2893_v30 = vld [vmem:[%s3212_s13 + $0xd9] sm:$0xff] }
 0x1d1   : > { %v4359_v40 = vadd.f32 %v1652_v62, %v4181_v57  ;;  %v1919_v48 = vpop.f32.mrf.mxu2  ;;  %v4363_v53 = vpop.f32.mrf.mxu0  ;;  %v1697_v57 = vadd.f32 %v4183_v17, %v3836_v18  ;;  %v4389_v17 = vld [vmem:[%s3212_s13 + $0x122] sm:$0xff] }
 0x1d2   : > { %v4361_v14 = vadd.f32 %v1919_v48, %v1807_v61  ;;  %v1809_v5 = vpop.f32.mrf.mxu1  ;;  %2131 = vmatpush.msra.mxu0 %v1192_v55  ;;  %v2869_v48 = vld [vmem:[%s3212_s13 + $0x138] sm:$0xff] }
 0x1d3   : > { %5420 = vst [vmem:[#allocation21_spill] sm:$0xff] %v4359_v40  ;;  %v1810_v38 = vadd.f32 %v1809_v5, %v1697_v57 }
 0x1d4   : > { %1767 = vmatmul.f32.gmra.mxu0 %v3862_v49  ;;  %v4385_v49 = vld [vmem:[%s3212_s13 + $0x181] sm:$0xff] }
 0x1d5   : > { %2058 = vmatmul.f32.gmra.mxu3 %v2892_v35  ;;  %1856 = vmatmul.f32.gmra.mxu1 %v4367_v36 }
 0x1d6   : > { %1969 = vmatmul.f32.gmra.mxu2 %v2868_v22 }
 0x1d8   : > { %v1655_v0 = vpop.f32.mrf.mxu3 }
 0x1d9   : > { %v4378_v26 = vadd.f32 %v1655_v0, %v4200_v34  ;;  %v1922_v60 = vpop.f32.mrf.mxu2  ;;  %v4382_v62 = vpop.f32.mrf.mxu0  ;;  %v1700_v34 = vadd.f32 %v4202_v3, %v3855_v13  ;;  %v4404_v0 = vld [vmem:[%s3212_s13 + $0x189] sm:$0xff]  ;;  %v2870_v13 = vld [vmem:[%s3212_s13 + $0x140] sm:$0xff] }
 0x1da   : > { %v4380_v61 = vadd.f32 %v1922_v60, %v1810_v38  ;;  %v1812_v18 = vpop.f32.mrf.mxu1  ;;  %v2894_v60 = vld [vmem:[%s3212_s13 + $0xe1] sm:$0xff] }
 0x1db   : > { %5421 = vst [vmem:[#allocation19_spill] sm:$0xff] %v4378_v26  ;;  %v1813_v35 = vadd.f32 %v1812_v18, %v1700_v34  ;;  %v2902_v26 = vld [vmem:[%s3212_s13 + $0x141] sm:$0xff] }
 0x1dc   : > { %1770 = vmatmul.f32.gmra.mxu0 %v4385_v49 }
 0x1dd   : > { %2061 = vmatmul.f32.gmra.mxu3 %v2893_v30  ;;  %1859 = vmatmul.f32.gmra.mxu1 %v4389_v17  ;;  %v4408_v30 = vld [vmem:[%s3212_s13 + $0x12a] sm:$0xff] }
 0x1de   : > { %1972 = vmatmul.f32.gmra.mxu2 %v2869_v48 }
 0x1e0   : > { %v1658_v5 = vpop.f32.mrf.mxu3 }
 0x1e1   : > { %v4397_v22 = vadd.f32 %v1658_v5, %v4219_v39  ;;  %v1925_v55 = vpop.f32.mrf.mxu2  ;;  %v4401_v38 = vpop.f32.mrf.mxu0  ;;  %v1703_v39 = vadd.f32 %v4221_v58, %v3874_v4 }
 0x1e2   : > { %v4399_v57 = vadd.f32 %v1925_v55, %v1813_v35  ;;  %v1815_v3 = vpop.f32.mrf.mxu1 }
 0x1e3   : > { %5422 = vst [vmem:[#allocation23_spill] sm:$0xff] %v4397_v22  ;;  %v1816_v18 = vadd.f32 %v1815_v3, %v1703_v39  ;;  %v4436_v3 = vld [vmem:[%s3212_s13 + $0x142] sm:$0xff]  ;;  %v4448_v39 = vld [vmem:[%s3212_s13 + $0x152] sm:$0xff] }
 0x1e4   : > { %1773 = vmatmul.f32.gmra.mxu0 %v4404_v0 }
 0x1e5   : > { %2064 = vmatmul.f32.gmra.mxu3 %v2894_v60  ;;  %1862 = vmatmul.f32.gmra.mxu1 %v4408_v30  ;;  %v4424_v60 = vld [vmem:[%s3212_s13 + $0x13a] sm:$0xff] }
 0x1e6   : > { %1975 = vmatmul.f32.gmra.mxu2 %v2870_v13  ;;  %v2896_v13 = vld [vmem:[%s3212_s13 + $0xf9] sm:$0xff] }
 0x1e8   : > { %v1661_v48 = vpop.f32.mrf.mxu3 }
 0x1e9   : > { %v4416_v34 = vadd.f32 %v1661_v48, %v4236_v32  ;;  %v1928_v35 = vpop.f32.mrf.mxu2  ;;  %v4420_v55 = vpop.f32.mrf.mxu0  ;;  %v4460_v48 = vld [vmem:[%s3212_s13 + $0x15a] sm:$0xff] }
 0x1ea   : > { %v4418_v5 = vadd.f32 %v1928_v35, %v1816_v18  ;;  %v2898_v18 = vld [vmem:[%s3212_s13 + $0x111] sm:$0xff] }
 0x1eb   : > { %5423 = vst [vmem:[#allocation20_spill] sm:$0xff] %v4416_v34  ;;  %v4520_v34 = vld [vmem:[%s3212_s13 + $0x18a] sm:$0xff] }
 0x1ec   : > { %2132 = vmatmul.f32.vlgmr.msra.gmra.mxu0 %v3934_v9 }
 0x1ed   : > { %2067 = vmatmul.f32.gmra.mxu3 %v2895_v29  ;;  %1865 = vmatmul.f32.gmra.mxu1 %v4424_v60  ;;  %v2897_v29 = vld [vmem:[%s3212_s13 + $0x109] sm:$0xff] }
 0x1ee   : > { %1978 = vmatmul.f32.gmra.mxu2 %v3929_v37 }
 0x1f0   : > { %v2020_v4 = vpop.f32.mrf.mxu3 }
 0x1f1   : > { %v4430_v32 = vadd.f32 %v2020_v4, %v4258_v31  ;;  %v4432_v58 = vpop.f32.mrf.mxu0  ;;  %v2899_v4 = vld [vmem:[%s3212_s13 + $0x121] sm:$0xff] }
 0x1f3   : > { %5424 = vst [vmem:[#allocation22_spill] sm:$0xff] %v4430_v32  ;;  %v2906_v32 = vld [vmem:[%s3212_s13 + $0x171] sm:$0xff] }
 0x1f4   : > { %2135 = vmatmul.f32.gmra.mxu0 %v3965_v44 }
 0x1f5   : > { %2070 = vmatmul.f32.gmra.mxu3 %v2896_v13  ;;  %1868 = vmatmul.f32.gmra.mxu1 %v4436_v3  ;;  %v4474_v13 = vld [vmem:[%s3212_s13 + $0x16a] sm:$0xff] }
 0x1f6   : > { %1981 = vmatmul.f32.gmra.mxu2 %v3960_v41 }
 0x1f8   : > { %v2023_v9 = vpop.f32.mrf.mxu3 }
 0x1f9   : > { %v4442_v37 = vadd.f32 %v2023_v9, %v4286_v54  ;;  %v4444_v31 = vpop.f32.mrf.mxu0  ;;  %v4476_v9 = vpop.f32.mrf.mxu2 }
 0x1fa   : > { %5426 = vst [vmem:[#allocation30_spill] sm:$0xff] %v4444_v31 }
 0x1fb   : > { %5425 = vst [vmem:[#allocation29_spill] sm:$0xff] %v4442_v37 }
 0x1fc   : > { %2138 = vmatmul.f32.gmra.mxu0 %v3996_v47 }
 0x1fd   : > { %2073 = vmatmul.f32.gmra.mxu3 %v2897_v29  ;;  %1871 = vmatmul.f32.gmra.mxu1 %v4448_v39  ;;  %v2900_v29 = vld [vmem:[%s3212_s13 + $0x129] sm:$0xff] }
 0x1fe   : > { %1984 = vmatmul.f32.gmra.mxu2 %v3991_v56 }
 0x200   : > { %v2026_v44 = vpop.f32.mrf.mxu3 }
 0x201   : > { %v4454_v41 = vadd.f32 %v2026_v44, %v4311_v27  ;;  %v4456_v54 = vpop.f32.mrf.mxu0  ;;  %v4468_v27 = vpop.f32.mrf.mxu1  ;;  %v4488_v44 = vld [vmem:[%s3212_s13 + $0x172] sm:$0xff] }
 0x202   : > { %5428 = vst [vmem:[#allocation32_spill] sm:$0xff] %v4456_v54 }
 0x203   : > { %5427 = vst [vmem:[#allocation31_spill] sm:$0xff] %v4454_v41 }
 0x204   : > { %2141 = vmatmul.f32.gmra.mxu0 %v4027_v51 }
 0x205   : > { %2076 = vmatmul.f32.gmra.mxu3 %v2898_v18  ;;  %1874 = vmatmul.f32.gmra.mxu1 %v4460_v48 }
 0x206   : > { %1987 = vmatmul.f32.gmra.mxu2 %v4022_v50 }
 0x208   : > { %v2029_v47 = vpop.f32.mrf.mxu3 }
 0x209   : > { %v4466_v56 = vadd.f32 %v2029_v47, %v4336_v7  ;;  %v4470_v35 = vpop.f32.mrf.mxu0  ;;  %v4490_v18 = vpop.f32.mrf.mxu1 }
 0x20a   : > { %5430 = vst [vmem:[#allocation34_spill] sm:$0xff] %v4470_v35  ;;  %v4493_v47 = vpop.f32.mrf.mxu2 }
 0x20b   : > { %5429 = vst [vmem:[#allocation33_spill] sm:$0xff] %v4466_v56 }
 0x20c   : > { %2144 = vmatmul.f32.gmra.mxu0 %v4052_v10  ;;  %v5433_v10 = vld [vmem:[#allocation28_spill] sm:$0xff] }
 0x20d   : > { %2079 = vmatmul.f32.gmra.mxu3 %v2899_v4  ;;  %1877 = vmatmul.f32.gmra.mxu1 %v4474_v13 }
 0x20e   : > { %1990 = vmatmul.f32.gmra.mxu2 %v4047_v25  ;;  %v5434_v25 = vld [vmem:[#allocation6_spill] sm:$0xff] }
 0x210   : > { %v2032_v50 = vpop.f32.mrf.mxu3 }
 0x211   : > { %v4482_v51 = vadd.f32 %v2032_v50, %v4361_v14  ;;  %v4484_v7 = vpop.f32.mrf.mxu0 }
 0x212   : > { %5432 = vst [vmem:[#allocation36_spill] sm:$0xff] %v4484_v7 }
 0x213   : > { %5431 = vst [vmem:[#allocation35_spill] sm:$0xff] %v4482_v51 }
 0x214   : > { %2147 = vmatmul.f32.gmra.mxu0 %v5433_v10  ;;  %v4508_v10 = vpop.f32.mrf.mxu1 }
 0x215   : > { %2082 = vmatmul.f32.gmra.mxu3 %v2900_v29  ;;  %1880 = vmatmul.f32.gmra.mxu1 %v4488_v44  ;;  %v2877_v29 = vld [vmem:[%s3212_s13 + $0x198] sm:$0xff] }
 0x216   : > { %1993 = vmatmul.f32.gmra.mxu2 %v5434_v25  ;;  %v4511_v25 = vpop.f32.mrf.mxu2 }
 0x218   : > { %v2035_v4 = vpop.f32.mrf.mxu3 }
 0x219   : > { %v4498_v14 = vadd.f32 %v2035_v4, %v4380_v61  ;;  %v4500_v50 = vpop.f32.mrf.mxu0 }
 0x21a   : > { %5436 = vst [vmem:[#allocation6_spill] sm:$0xff] %v4500_v50 }
 0x21b   : > { %5435 = vst [vmem:[#allocation28_spill] sm:$0xff] %v4498_v14 }
 0x21c   : > { %2150 = vmatmul.f32.gmra.mxu0 %v4092_v8  ;;  %v4525_v8 = vpop.f32.mrf.mxu1 }
 0x21d   : > { %2085 = vmatmul.f32.gmra.mxu3 %v2901_v59  ;;  %1883 = vmatmul.f32.gmra.mxu1 %v4504_v42  ;;  %v2878_v59 = vld [vmem:[%s3212_s13 + $0x1a0] sm:$0xff] }
 0x21e   : > { %1996 = vmatmul.f32.gmra.mxu2 %v2877_v29 }
 0x220   : > { %v2038_v61 = vpop.f32.mrf.mxu3 }
 0x221   : > { %v4514_v4 = vadd.f32 %v2038_v61, %v4399_v57  ;;  %v4516_v40 = vpop.f32.mrf.mxu0  ;;  %v4530_v61 = vpop.f32.mrf.mxu2 }
 0x222   : > { %5438 = vst [vmem:[#allocation38_spill] sm:$0xff] %v4516_v40  ;;  %v2903_v40 = vld [vmem:[%s3212_s13 + $0x151] sm:$0xff] }
 0x223   : > { %5437 = vst [vmem:[#allocation37_spill] sm:$0xff] %v4514_v4 }
 0x224   : > { %2153 = vmatmul.f32.gmra.mxu0 %v4111_v21  ;;  %v4538_v21 = vpop.f32.mrf.mxu1 }
 0x225   : > { %2088 = vmatmul.f32.gmra.mxu3 %v2902_v26  ;;  %1886 = vmatmul.f32.gmra.mxu1 %v4520_v34 }
 0x226   : > { %1999 = vmatmul.f32.gmra.mxu2 %v2878_v59 }
 0x228   : > { %v2041_v29 = vpop.f32.mrf.mxu3 }
 0x229   : > { %v4528_v57 = vadd.f32 %v2041_v29, %v4418_v5  ;;  %v4532_v22 = vpop.f32.mrf.mxu0  ;;  %v4543_v50 = vpop.f32.mrf.mxu2 }
 0x22c   : > { %2156 = vmatmul.f32.gmra.mxu0 %v4130_v12  ;;  %v4551_v7 = vpop.f32.mrf.mxu1 }
 0x22d   : > { %2091 = vmatmul.f32.gmra.mxu3 %v2903_v40  ;;  %v2905_v40 = vld [vmem:[%s3212_s13 + $0x169] sm:$0xff] }
 0x230   : > { %v4536_v26 = vpop.f32.mrf.mxu3 }
 0x231   : > { %v4540_v59 = vpop.f32.mrf.mxu0  ;;  %v4554_v12 = vpop.f32.mrf.mxu2 }
 0x232   : > { %5439 = vst [vmem:[#allocation39_spill] sm:$0xff] %v4540_v59 }
 0x234   : > { %2159 = vmatmul.f32.gmra.mxu0 %v4149_v19  ;;  %v4562_v19 = vpop.f32.mrf.mxu1 }
 0x235   : > { %2094 = vmatmul.f32.gmra.mxu3 %v2904_v2 }
 0x238   : > { %v4546_v5 = vpop.f32.mrf.mxu3 }
 0x239   : > { %v4548_v29 = vpop.f32.mrf.mxu0  ;;  %v4564_v2 = vpop.f32.mrf.mxu2 }
 0x23a   : > { %5440 = vst [vmem:[#allocation40_spill] sm:$0xff] %v4548_v29 }
 0x23c   : > { %2162 = vmatmul.f32.gmra.mxu0 %v4168_v24  ;;  %v4572_v24 = vpop.f32.mrf.mxu1 }
 0x23d   : > { %2097 = vmatmul.f32.gmra.mxu3 %v2905_v40 }
 0x240   : > { %v4556_v35 = vpop.f32.mrf.mxu3 }
 0x241   : > { %v4558_v59 = vpop.f32.mrf.mxu0 }
 0x242   : > { %5441 = vst [vmem:[#allocation41_spill] sm:$0xff] %v4558_v59 }
 0x244   : > { %2165 = vmatmul.f32.gmra.mxu0 %v4187_v28 }
 0x245   : > { %2100 = vmatmul.f32.gmra.mxu3 %v2906_v32  ;;  %v4576_v32 = vpop.f32.mrf.mxu2 }
 0x248   : > { %v4566_v29 = vpop.f32.mrf.mxu3 }
 0x249   : > { %v4568_v40 = vpop.f32.mrf.mxu0 }
 0x24a   : > { %5442 = vst [vmem:[#allocation42_spill] sm:$0xff] %v4568_v40  ;;  %v4584_v40 = vpop.f32.mrf.mxu1 }
 0x24c   : > { %2168 = vmatmul.f32.gmra.mxu0 %v4206_v33  ;;  %v2909_v33 = vld [vmem:[%s3212_s13 + $0x199] sm:$0xff] }
 0x24d   : > { %2103 = vmatmul.f32.gmra.mxu3 %v4385_v49  ;;  %v4589_v41 = vpop.f32.mrf.mxu2 }
 0x250   : > { %v4574_v59 = vpop.f32.mrf.mxu3 }
 0x251   : > { %v4578_v28 = vpop.f32.mrf.mxu0 }
 0x252   : > { %5443 = vst [vmem:[#allocation43_spill] sm:$0xff] %v4578_v28  ;;  %v2910_v28 = vld [vmem:[%s3212_s13 + $0x1a1] sm:$0xff] }
 0x254   : > { %2171 = vmatmul.f32.gmra.mxu0 %v4225_v46 }
 0x255   : > { %2106 = vmatmul.f32.gmra.mxu3 %v4404_v0  ;;  %v4597_v0 = vpop.f32.mrf.mxu1  ;;  %v4600_v46 = vpop.f32.mrf.mxu2 }
 0x258   : > { %v4582_v37 = vpop.f32.mrf.mxu3 }
 0x259   : > { %v4586_v49 = vpop.f32.mrf.mxu0 }
 0x25a   : > { %5444 = vst [vmem:[#allocation44_spill] sm:$0xff] %v4586_v49 }
 0x25c   : > { %2174 = vmatmul.f32.gmra.mxu0 %v4242_v43 }
 0x25d   : > { %2109 = vmatmul.f32.gmra.mxu3 %v2909_v33  ;;  %v4607_v33 = vpop.f32.mrf.mxu1  ;;  %v4609_v43 = vpop.f32.mrf.mxu2 }
 0x25e   : > { %5447 = vst [vmem:[#allocation47_spill] sm:$0xff] %v4607_v33 }
 0x25f   : > { %5448 = vst [vmem:[#allocation48_spill] sm:$0xff] %v4609_v43 }
 0x260   : > { %v4592_v54 = vpop.f32.mrf.mxu3 }
 0x261   : > { %v4594_v56 = vpop.f32.mrf.mxu0 }
 0x262   : > { %5445 = vst [vmem:[#allocation45_spill] sm:$0xff] %v4594_v56 }
 0x264   : > { %2177 = vmatmul.f32.gmra.mxu0 %v4267_v45 }
 0x265   : > { %2112 = vmatmul.f32.gmra.mxu3 %v2910_v28  ;;  %v4616_v28 = vpop.f32.mrf.mxu1  ;;  %v4620_v4 = vpop.f32.mrf.mxu2 }
 0x266   : > { %5450 = vst [vmem:[#allocation50_spill] sm:$0xff] %v4616_v28 }
 0x267   : > { %5451 = vst [vmem:[#allocation51_spill] sm:$0xff] %v4620_v4 }
 0x268   : > { %v4602_v51 = vpop.f32.mrf.mxu3 }
 0x269   : > { %v4604_v49 = vpop.f32.mrf.mxu0 }
 0x26a   : > { %5446 = vst [vmem:[#allocation46_spill] sm:$0xff] %v4604_v49 }
 0x26c   : > { %2180 = vmatmul.f32.gmra.mxu0 %v4292_v23 }
 0x26d   : > { %v4627_v49 = vpop.f32.mrf.mxu1  ;;  %v4631_v33 = vpop.f32.mrf.mxu2 }
 0x26e   : > { %5454 = vst [vmem:[#allocation54_spill] sm:$0xff] %v4627_v49 }
 0x26f   : > { %5456 = vst [vmem:[#allocation56_spill] sm:$0xff] %v4631_v33 }
 0x270   : > { %v4611_v14 = vpop.f32.mrf.mxu3 }
 0x271   : > { %v4613_v56 = vpop.f32.mrf.mxu0 }
 0x272   : > { %5449 = vst [vmem:[#allocation49_spill] sm:$0xff] %v4613_v56 }
 0x274   : > { %2183 = vmatmul.f32.gmra.mxu0 %v4317_v15 }
 0x275   : > { %v4638_v28 = vpop.f32.mrf.mxu1  ;;  %v4641_v4 = vpop.f32.mrf.mxu2 }
 0x276   : > { %5459 = vst [vmem:[#allocation59_spill] sm:$0xff] %v4638_v28 }
 0x277   : > { %5460 = vst [vmem:[#allocation60_spill] sm:$0xff] %v4641_v4 }
 0x278   : > { %v4618_v45 = vpop.f32.mrf.mxu3 }
 0x279   : > { %v4622_v31 = vpop.f32.mrf.mxu0 }
 0x27a   : > { %5452 = vst [vmem:[#allocation52_spill] sm:$0xff] %v4622_v31 }
 0x27c   : > { %2186 = vmatmul.f32.gmra.mxu0 %v4342_v6 }
 0x27d   : > { %v4648_v49 = vpop.f32.mrf.mxu1  ;;  %v4650_v33 = vpop.f32.mrf.mxu2 }
 0x27e   : > { %5463 = vst [vmem:[#allocation63_spill] sm:$0xff] %v4648_v49 }
 0x27f   : > { %5464 = vst [vmem:[#allocation64_spill] sm:$0xff] %v4650_v33 }
 0x280   : > { %v4625_v23 = vpop.f32.mrf.mxu3 }
 0x281   : > { %5453 = vst [vmem:[#allocation53_spill] sm:$0xff] %v4625_v23  ;;  %v4629_v43 = vpop.f32.mrf.mxu0 }
 0x282   : > { %5455 = vst [vmem:[#allocation55_spill] sm:$0xff] %v4629_v43  ;;  %v5469_v43 = vld [vmem:[#allocation24_spill] sm:$0xff] }
 0x284   : > { %2189 = vmatmul.f32.gmra.mxu0 %v4367_v36 }
 0x285   : > { %v4657_v28 = vpop.f32.mrf.mxu1  ;;  %v4661_v4 = vpop.f32.mrf.mxu2 }
 0x286   : > { %5466 = vst [vmem:[#allocation66_spill] sm:$0xff] %v4657_v28 }
 0x287   : > { %5468 = vst [vmem:[#allocation68_spill] sm:$0xff] %v4661_v4  ;;  %v1754_v4 = vadd.f32 %v4532_v22, %v4256_v63 }
 0x288   : > { %v4634_v15 = vpop.f32.mrf.mxu3 }
 0x289   : > { %5457 = vst [vmem:[#allocation57_spill] sm:$0xff] %v4634_v15  ;;  %v4636_v56 = vpop.f32.mrf.mxu0 }
 0x28a   : > { %5458 = vst [vmem:[#allocation58_spill] sm:$0xff] %v4636_v56 }
 0x28c   : > { %2192 = vmatmul.f32.gmra.mxu0 %v4389_v17 }
 0x28d   : > { %v1866_v28 = vpop.f32.mrf.mxu1  ;;  %v1979_v56 = vpop.f32.mrf.mxu2 }
 0x290   : > { %v4643_v6 = vpop.f32.mrf.mxu3 }
 0x291   : > { %5461 = vst [vmem:[#allocation61_spill] sm:$0xff] %v4643_v6  ;;  %v4645_v31 = vpop.f32.mrf.mxu0 }
 0x292   : > { %5462 = vst [vmem:[#allocation62_spill] sm:$0xff] %v4645_v31  ;;  %v1867_v31 = vadd.f32 %v1866_v28, %v1754_v4 }
 0x294   : > { %2195 = vmatmul.f32.gmra.mxu0 %v4408_v30  ;;  %v1706_v30 = vadd.f32 %v4238_v20, %v5469_v43  ;;  %v1980_v20 = vadd.f32 %v1979_v56, %v1867_v31  ;;  %v5470_v56 = vld [vmem:[#allocation4_spill] sm:$0xff]  ;;  %v5472_v43 = vld [vmem:[#allocation5_spill] sm:$0xff] }
 0x295   : > { %v1724_v4 = vadd.f32 %v4382_v62, %v5470_v56  ;;  %v2942_v56 = vld [vmem:[%s3212_s13 + $0x1a2] sm:$0xff] }
 0x296   : > { %v1819_v49 = vadd.f32 %v4468_v27, %v1706_v30 }
 0x297   : > { %v1837_v28 = vadd.f32 %v4562_v19, %v1724_v4 }
 0x298   : > { %v4652_v36 = vpop.f32.mrf.mxu3  ;;  %v1932_v33 = vadd.f32 %v4476_v9, %v1819_v49 }
 0x299   : > { %5465 = vst [vmem:[#allocation65_spill] sm:$0xff] %v4652_v36  ;;  %v4654_v15 = vpop.f32.mrf.mxu0  ;;  %v1950_v30 = vadd.f32 %v4564_v2, %v1837_v28 }
 0x29c   : > { %2198 = vmatmul.f32.gmra.mxu0 %v4424_v60  ;;  %v2045_v60 = vadd.f32 %v4536_v26, %v1932_v33  ;;  %v5471_v33 = vld [vmem:[#allocation8_spill] sm:$0xff] }
 0x2a0   : > { %v4659_v17 = vpop.f32.mrf.mxu3 }
 0x2a1   : > { %5467 = vst [vmem:[#allocation67_spill] sm:$0xff] %v4659_v17  ;;  %v4663_v6 = vpop.f32.mrf.mxu0 }
 0x2a4   : > { %2201 = vmatmul.f32.gmra.mxu0 %v4436_v3 }
 0x2a8   : > { %v4670_v36 = vpop.f32.mrf.mxu3 }
 0x2a9   : > { %v2157_v23 = vpop.f32.mrf.mxu0 }
 0x2aa   : > { %v4675_v17 = vadd.f32 %v2157_v23, %v2045_v60  ;;  %v5474_v60 = vld [vmem:[#allocation27_spill] sm:$0xff] }
 0x2ac   : > { %2204 = vmatmul.f32.gmra.mxu0 %v4448_v39  ;;  %v2941_v39 = vld [vmem:[%s3212_s13 + $0x19a] sm:$0xff] }
 0x2b0   : > { %v2092_v3 = vpop.f32.mrf.mxu3 }
 0x2b1   : > { %v4678_v27 = vadd.f32 %v2092_v3, %v1980_v20  ;;  %v4680_v9 = vpop.f32.mrf.mxu0  ;;  %v2063_v20 = vadd.f32 %v4592_v54, %v1950_v30  ;;  %v5475_v3 = vld [vmem:[#allocation26_spill] sm:$0xff]  ;;  %v5483_v30 = vld [vmem:[#allocation37_spill] sm:$0xff] }
 0x2b4   : > { %2207 = vmatmul.f32.gmra.mxu0 %v4460_v48  ;;  %v1727_v48 = vadd.f32 %v4401_v38, %v5471_v33  ;;  %v1715_v38 = vadd.f32 %v4313_v16, %v5474_v60  ;;  %v5477_v33 = vld [vmem:[#allocation25_spill] sm:$0xff]  ;;  %v4770_v60 = vmax.f32 %v4675_v17, 0.0 }
 0x2b5   : > { %v1709_v54 = vadd.f32 %v4260_v52, %v5477_v33  ;;  %v5498_v33 = vld [vmem:[#allocation32_spill] sm:$0xff] }
 0x2b6   : > { %v1828_v2 = vadd.f32 %v4525_v8, %v1715_v38  ;;  %5484 = vst [vmem:[#allocation8_spill] sm:$0xff] %v4770_v60  ;;  %v5486_v38 = vld [vmem:[#allocation28_spill] sm:$0xff] }
 0x2b9   : > { %v2163_v26 = vpop.f32.mrf.mxu0 }
 0x2bc   : > { %2210 = vmatmul.f32.gmra.mxu0 %v4474_v13  ;;  %v1721_v13 = vadd.f32 %v4363_v53, %v5472_v43 }
 0x2be   : > { %v1834_v23 = vadd.f32 %v4551_v7, %v1721_v13 }
 0x2c0   : > { %v1947_v19 = vadd.f32 %v4554_v12, %v1834_v23 }
 0x2c1   : > { %v2166_v49 = vpop.f32.mrf.mxu0 }
 0x2c4   : > { %2213 = vmatmul.f32.gmra.mxu0 %v4488_v44  ;;  %v1840_v44 = vadd.f32 %v4572_v24, %v1727_v48 }
 0x2c6   : > { %v1953_v62 = vadd.f32 %v4576_v32, %v1840_v44 }
 0x2c8   : > { %v2066_v24 = vadd.f32 %v4602_v51, %v1953_v62  ;;  %v2152_v62 = vadd.f32 %v4654_v15, %v5483_v30  ;;  %v5489_v15 = vld [vmem:[#allocation48_spill] sm:$0xff] }
 0x2c9   : > { %v2169_v63 = vpop.f32.mrf.mxu0  ;;  %v5516_v30 = vld [vmem:[#allocation56_spill] sm:$0xff] }
 0x2cc   : > { %2216 = vmatmul.f32.gmra.mxu0 %v4504_v42  ;;  %v5473_v42 = vld [vmem:[#allocation3_spill] sm:$0xff] }
 0x2d1   : > { %v2172_v22 = vpop.f32.mrf.mxu0 }
 0x2d4   : > { %2219 = vmatmul.f32.gmra.mxu0 %v4520_v34  ;;  %v1718_v34 = vadd.f32 %v4338_v11, %v5473_v42  ;;  %v1712_v11 = vadd.f32 %v4288_v1, %v5475_v3  ;;  %v1941_v1 = vadd.f32 %v4530_v61, %v1828_v2  ;;  %v5491_v3 = vld [vmem:[#allocation58_spill] sm:$0xff] }
 0x2d6   : > { %v1831_v53 = vadd.f32 %v4538_v21, %v1718_v34  ;;  %v2060_v21 = vadd.f32 %v4582_v37, %v1947_v19  ;;  %v1825_v51 = vadd.f32 %v4508_v10, %v1712_v11  ;;  %v2054_v52 = vadd.f32 %v4566_v29, %v1941_v1  ;;  %v5481_v34 = vld [vmem:[#allocation12_spill] sm:$0xff] }
 0x2d7   : > { %v5500_v1 = vld [vmem:[#allocation52_spill] sm:$0xff] }
 0x2d8   : > { %v1944_v16 = vadd.f32 %v4543_v50, %v1831_v53  ;;  %v2173_v8 = vadd.f32 %v2172_v22, %v2060_v21  ;;  %v1822_v50 = vadd.f32 %v4490_v18, %v1709_v54  ;;  %v1938_v37 = vadd.f32 %v4511_v25, %v1825_v51  ;;  %v5487_v53 = vld [vmem:[#allocation62_spill] sm:$0xff]  ;;  %v5499_v51 = vld [vmem:[#allocation31_spill] sm:$0xff] }
 0x2d9   : > { %v2175_v31 = vpop.f32.mrf.mxu0  ;;  %v2167_v18 = vadd.f32 %v2166_v49, %v2054_v52  ;;  %v2149_v19 = vadd.f32 %v5487_v53, %v5486_v38  ;;  %v5504_v52 = vld [vmem:[#allocation49_spill] sm:$0xff]  ;;  %v5518_v53 = vld [vmem:[#allocation11_spill] sm:$0xff] }
 0x2da   : > { %v2176_v4 = vadd.f32 %v2175_v31, %v2063_v20  ;;  %v1935_v61 = vadd.f32 %v4493_v47, %v1822_v50  ;;  %v4734_v22 = vmax.f32 %v2173_v8, 0.0  ;;  %v5502_v50 = vld [vmem:[#allocation50_spill] sm:$0xff] }
 0x2db   : > { %v4749_v49 = vmax.f32 %v2167_v18, 0.0  ;;  %v4793_v21 = vmax.f32 %v2149_v19, 0.0  ;;  %v5507_v18 = vld [vmem:[#allocation22_spill] sm:$0xff]  ;;  %v5519_v19 = vld [vmem:[#allocation36_spill] sm:$0xff] }
 0x2dc   : > { %2222 = vmatmul.f32.gmra.mxu0 %v2941_v39  ;;  %v5476_v39 = vld [vmem:[#allocation10_spill] sm:$0xff]  ;;  %v4727_v10 = vmax.f32 %v2176_v4, 0.0 }
 0x2dd   : > { %v1730_v7 = vadd.f32 %v4420_v55, %v5476_v39  ;;  %v2057_v55 = vadd.f32 %v4574_v59, %v1944_v16  ;;  %v2051_v59 = vadd.f32 %v4556_v35, %v1938_v37  ;;  %v4786_v39 = vmax.f32 %v2152_v62, 0.0  ;;  %5496 = vst [vmem:[#allocation27_spill] sm:$0xff] %v4793_v21 }
 0x2df   : > { %v1843_v48 = vadd.f32 %v4584_v40, %v1730_v7  ;;  %v2170_v13 = vadd.f32 %v2169_v63, %v2057_v55  ;;  %v2048_v63 = vadd.f32 %v4546_v5, %v1935_v61  ;;  %v2164_v28 = vadd.f32 %v2163_v26, %v2051_v59  ;;  %5492 = vst [vmem:[#allocation3_spill] sm:$0xff] %v4786_v39  ;;  %v5493_v7 = vld [vmem:[#allocation53_spill] sm:$0xff]  ;;  %v5506_v59 = vld [vmem:[#allocation51_spill] sm:$0xff] }
 0x2e1   : > { %v2178_v32 = vpop.f32.mrf.mxu0  ;;  %v1956_v31 = vadd.f32 %v4589_v41, %v1843_v48  ;;  %v5478_v41 = vld [vmem:[#allocation7_spill] sm:$0xff]  ;;  %v4741_v44 = vmax.f32 %v2170_v13, 0.0  ;;  %v4754_v5 = vmax.f32 %v2164_v28, 0.0  ;;  %v2140_v48 = vadd.f32 %v5500_v1, %v5499_v51  ;;  %v5511_v28 = vld [vmem:[#allocation57_spill] sm:$0xff]  ;;  %v5526_v1 = vld [vmem:[#allocation64_spill] sm:$0xff] }
 0x2e2   : > { %v2179_v12 = vadd.f32 %v2178_v32, %v2066_v24  ;;  %v1733_v25 = vadd.f32 %v4432_v58, %v5478_v41  ;;  %v5490_v24 = vld [vmem:[#allocation35_spill] sm:$0xff]  ;;  %v5494_v32 = vld [vmem:[#allocation33_spill] sm:$0xff]  ;;  %v5508_v41 = vld [vmem:[#allocation46_spill] sm:$0xff] }
 0x2e3   : > { %v2069_v40 = vadd.f32 %v4611_v14, %v1956_v31  ;;  %v2161_v14 = vadd.f32 %v4680_v9, %v2048_v63  ;;  %5479 = vst [vmem:[#allocation24_spill] sm:$0xff] %v4754_v5  ;;  %v2146_v11 = vadd.f32 %v5491_v3, %v5490_v24  ;;  %v5503_v31 = vld [vmem:[#allocation29_spill] sm:$0xff]  ;;  %v5520_v24 = vld [vmem:[#allocation59_spill] sm:$0xff] }
 0x2e4   : > { %v4721_v43 = vmax.f32 %v2179_v12, 0.0  ;;  %2225 = vmatmul.f32.gmra.mxu0 %v2942_v56  ;;  %v1846_v35 = vadd.f32 %v4597_v0, %v1733_v25  ;;  %v2155_v0 = vadd.f32 %v4663_v6, %v4528_v57  ;;  %v5485_v57 = vld [vmem:[#allocation47_spill] sm:$0xff]  ;;  %v5497_v12 = vld [vmem:[#allocation9_spill] sm:$0xff]  ;;  %v2137_v13 = vadd.f32 %v5504_v52, %v5503_v31 }
 0x2e5   : > { %v4761_v9 = vmax.f32 %v2161_v14, 0.0  ;;  %v5495_v56 = vld [vmem:[#allocation55_spill] sm:$0xff]  ;;  %v1739_v54 = vadd.f32 %v5498_v33, %v5497_v12  ;;  %v4801_v55 = vmax.f32 %v2146_v11, 0.0  ;;  %v2134_v25 = vadd.f32 %v5508_v41, %v5507_v18  ;;  %v5521_v11 = vld [vmem:[#allocation60_spill] sm:$0xff]  ;;  %v5528_v52 = vld [vmem:[#allocation13_spill] sm:$0xff] }
 0x2e6   : > { %2277 = vmatpush.msra.mxu1 %v4721_v43  ;;  %2376 = vmatpush.msrb.mxu3 %v4721_v43  ;;  %v1959_v58 = vadd.f32 %v4600_v46, %v1846_v35  ;;  %v5482_v46 = vld [vmem:[#allocation30_spill] sm:$0xff]  ;;  %v4779_v20 = vmax.f32 %v2155_v0, 0.0  ;;  %v2143_v16 = vadd.f32 %v5495_v56, %v5494_v32  ;;  %v4821_v63 = vmax.f32 %v2137_v13, 0.0 }
 0x2e7   : > { %5480 = vst [vmem:[#allocation4_spill] sm:$0xff] %v4761_v9  ;;  %v1736_v23 = vadd.f32 %v5482_v46, %v5481_v34  ;;  %v1852_v37 = vadd.f32 %v5502_v50, %v1739_v54  ;;  %v5515_v46 = vld [vmem:[#allocation54_spill] sm:$0xff]  ;;  %v5525_v54 = vld [vmem:[#allocation63_spill] sm:$0xff] }
 0x2e8   : > { %2278 = vmatpush.msra.mxu1 %v4727_v10  ;;  %2377 = vmatpush.msrb.mxu3 %v4727_v10  ;;  %v2072_v26 = vadd.f32 %v4618_v45, %v1959_v58  ;;  %5488 = vst [vmem:[#allocation5_spill] sm:$0xff] %v4779_v20  ;;  %v4810_v61 = vmax.f32 %v2143_v16, 0.0  ;;  %v5512_v58 = vld [vmem:[#allocation14_spill] sm:$0xff]  ;;  %v5523_v16 = vld [vmem:[#allocation16_spill] sm:$0xff]  ;;  %v5527_v50 = vld [vmem:[#allocation67_spill] sm:$0xff] }
 0x2e9   : > { %v2181_v29 = vpop.f32.mrf.mxu0  ;;  %v1849_v6 = vadd.f32 %v5485_v57, %v1736_v23  ;;  %5501 = vst [vmem:[#allocation26_spill] sm:$0xff] %v4801_v55  ;;  %v5517_v57 = vld [vmem:[#allocation61_spill] sm:$0xff]  ;;  %v5529_v13 = vld [vmem:[#allocation38_spill] sm:$0xff] }
 0x2ea   : > { %v4743_v47 = vadd.f32 %v2181_v29, %v2069_v40  ;;  %2279 = vmatpush.msra.mxu1 %v4734_v22  ;;  %2378 = vmatpush.msrb.mxu3 %v4734_v22  ;;  %5505 = vst [vmem:[#allocation10_spill] sm:$0xff] %v4810_v61  ;;  %v1965_v40 = vadd.f32 %v5506_v59, %v1852_v37  ;;  %v4817_v29 = vmax.f32 %v2140_v48, 0.0  ;;  %v5530_v18 = vld [vmem:[#allocation66_spill] sm:$0xff] }
 0x2eb   : > { %v1962_v17 = vadd.f32 %v5489_v15, %v1849_v6  ;;  %5510 = vst [vmem:[#allocation7_spill] sm:$0xff] %v4821_v63  ;;  %v1745_v15 = vadd.f32 %v5519_v19, %v5518_v53  ;;  %v1751_v59 = vadd.f32 %v5529_v13, %v5528_v52 }
 0x2ec   : > { %2280 = vmatpush.msra.mxu1 %v4741_v44  ;;  %2379 = vmatpush.msrb.mxu3 %v4741_v44  ;;  %5509 = vst [vmem:[#allocation25_spill] sm:$0xff] %v4817_v29  ;;  %v2078_v35 = vadd.f32 %v5511_v28, %v1965_v40  ;;  %v5531_v28 = vld [vmem:[#allocation68_spill] sm:$0xff] }
 0x2ed   : > { %v2075_v2 = vadd.f32 %v5493_v7, %v1962_v17  ;;  %v1858_v3 = vadd.f32 %v5520_v24, %v1745_v15  ;;  %v1864_v41 = vadd.f32 %v5530_v18, %v1751_v59  ;;  %v2263_v15 = vld [vmem:[%s5318_s3 + $0x10] sm:$0xff]  ;;  %v5532_v59 = vld [vmem:[#allocation23_spill] sm:$0xff]  ;;  %v5533_v18 = vld [vmem:[#allocation44_spill] sm:$0xff] }
 0x2ee   : > { %2281 = vmatpush.msra.mxu1 %v4749_v49  ;;  %2380 = vmatpush.msrb.mxu3 %v4749_v49 }
 0x2ef   : > { %v1971_v7 = vadd.f32 %v5521_v11, %v1858_v3  ;;  %v2265_v11 = vld [vmem:[%s5318_s3 + $0x20] sm:$0xff] }
 0x2f0   : > { %2282 = vmatpush.msra.mxu1 %v4754_v5  ;;  %2381 = vmatpush.msrb.mxu3 %v4754_v5 }
 0x2f1   : > { %v2184_v42 = vpop.f32.mrf.mxu0 }
 0x2f2   : > { %v4772_v45 = vadd.f32 %v2184_v42, %v2072_v26  ;;  %2283 = vmatpush.msra.mxu1 %v4761_v9  ;;  %2382 = vmatpush.msrb.mxu3 %v4761_v9  ;;  %v5513_v26 = vld [vmem:[#allocation34_spill] sm:$0xff]  ;;  %v4828_v42 = vmax.f32 %v2134_v25, 0.0  ;;  %v4858_v25 = vpop.f32.mrf.mxu1 }
 0x2f3   : > { %v1742_v0 = vadd.f32 %v5513_v26, %v5512_v58  ;;  %v4864_v26 = vpop.f32.mrf.mxu3 }
 0x2f4   : > { %2284 = vmatpush.msra.mxu1 %v4770_v60  ;;  %2383 = vmatpush.msrb.mxu3 %v4770_v60  ;;  %5514 = vst [vmem:[#allocation12_spill] sm:$0xff] %v4828_v42 }
 0x2f5   : > { %v1855_v23 = vadd.f32 %v5515_v46, %v1742_v0 }
 0x2f6   : > { %2285 = vmatpush.msra.mxu1 %v4779_v20  ;;  %2384 = vmatpush.msrb.mxu3 %v4779_v20 }
 0x2f7   : > { %v1968_v62 = vadd.f32 %v5516_v30, %v1855_v23 }
 0x2f8   : > { %2286 = vmatpush.msra.mxu1 %v4786_v39  ;;  %2385 = vmatpush.msrb.mxu3 %v4786_v39 }
 0x2f9   : > { %v2187_v4 = vpop.f32.mrf.mxu0  ;;  %v2081_v6 = vadd.f32 %v5517_v57, %v1968_v62 }
 0x2fa   : > { %v4803_v8 = vadd.f32 %v2187_v4, %v2075_v2  ;;  %2287 = vmatpush.msra.mxu1 %v4793_v21  ;;  %2386 = vmatpush.msrb.mxu3 %v4793_v21  ;;  %v5522_v2 = vld [vmem:[#allocation65_spill] sm:$0xff]  ;;  %v5524_v4 = vld [vmem:[#allocation6_spill] sm:$0xff]  ;;  %v1872_v23 = vpop.f32.mrf.mxu1 }
 0x2fb   : > { %v2084_v32 = vadd.f32 %v5522_v2, %v1971_v7  ;;  %v1748_v12 = vadd.f32 %v5524_v4, %v5523_v16 }
 0x2fc   : > { %2288 = vmatpush.msra.mxu1 %v4801_v55  ;;  %2387 = vmatpush.msrb.mxu3 %v4801_v55  ;;  %v5540_v55 = vld [vmem:[#allocation17_spill] sm:$0xff] }
 0x2fd   : > { %v1861_v51 = vadd.f32 %v5525_v54, %v1748_v12 }
 0x2fe   : > { %2289 = vmatpush.msra.mxu1 %v4810_v61  ;;  %2388 = vmatpush.msrb.mxu3 %v4810_v61 }
 0x2ff   : > { %v1974_v48 = vadd.f32 %v5526_v1, %v1861_v51  ;;  %v2269_v51 = vld [vmem:[%s5318_s3 + $0x40] sm:$0xff] }
 0x300   : > { %2290 = vmatpush.msra.mxu1 %v4817_v29  ;;  %2389 = vmatpush.msrb.mxu3 %v4817_v29 }
 0x301   : > { %v2190_v14 = vpop.f32.mrf.mxu0  ;;  %v2087_v37 = vadd.f32 %v5527_v50, %v1974_v48 }
 0x302   : > { %v4830_v34 = vadd.f32 %v2190_v14, %v2078_v35  ;;  %2291 = vmatpush.msra.mxu1 %v4821_v63  ;;  %2390 = vmatpush.msrb.mxu3 %v4821_v63  ;;  %v1977_v35 = vadd.f32 %v5531_v28, %v1864_v41  ;;  %v4861_v14 = vpop.f32.mrf.mxu2  ;;  %v1772_v41 = vadd.f32 %v5533_v18, %v5532_v59  ;;  %v5534_v28 = vld [vmem:[#allocation20_spill] sm:$0xff]  ;;  %v5539_v63 = vld [vmem:[#allocation42_spill] sm:$0xff] }
 0x304   : > { %2292 = vmatpush.msra.mxu1 %v4828_v42  ;;  %2391 = vmatpush.msrb.mxu3 %v4828_v42  ;;  %v2090_v58 = vadd.f32 %v4670_v36, %v1977_v35  ;;  %v1875_v36 = vpop.f32.mrf.mxu1  ;;  %v5535_v35 = vld [vmem:[#allocation45_spill] sm:$0xff] }
 0x309   : > { %v2193_v38 = vpop.f32.mrf.mxu0 }
 0x30a   : > { %v4841_v17 = vadd.f32 %v2193_v38, %v2081_v6  ;;  %v4868_v30 = vpop.f32.mrf.mxu2  ;;  %v4873_v6 = vpop.f32.mrf.mxu3  ;;  %v2261_v38 = vld [vmem:[%s5318_s3] sm:$0xff] }
 0x30b   : > { %2293 = vmatmul.f32.vlgmr.msra.gmra.mxu1 %v2261_v38  ;;  %v5537_v38 = vld [vmem:[#allocation43_spill] sm:$0xff] }
 0x311   : > { %v2196_v56 = vpop.f32.mrf.mxu0 }
 0x312   : > { %v4848_v33 = vadd.f32 %v2196_v56, %v2084_v32  ;;  %v1988_v19 = vpop.f32.mrf.mxu2  ;;  %v2101_v24 = vpop.f32.mrf.mxu3  ;;  %v2267_v56 = vld [vmem:[%s5318_s3 + $0x30] sm:$0xff] }
 0x313   : > { %2296 = vmatmul.f32.gmra.mxu1 %v2263_v15 }
 0x319   : > { %v2199_v31 = vpop.f32.mrf.mxu0 }
 0x31a   : > { %v4855_v40 = vadd.f32 %v2199_v31, %v2087_v37  ;;  %v1991_v7 = vpop.f32.mrf.mxu2  ;;  %v2104_v2 = vpop.f32.mrf.mxu3  ;;  %v2271_v31 = vld [vmem:[%s5318_s3 + $0x50] sm:$0xff] }
 0x31b   : > { %2299 = vmatmul.f32.gmra.mxu1 %v2265_v11 }
 0x321   : > { %v2202_v0 = vpop.f32.mrf.mxu0 }
 0x322   : > { %v4866_v46 = vadd.f32 %v2202_v0, %v2090_v58  ;;  %v1994_v4 = vpop.f32.mrf.mxu2  ;;  %v2107_v12 = vpop.f32.mrf.mxu3  ;;  %v1775_v58 = vadd.f32 %v5535_v35, %v5534_v28  ;;  %v5541_v28 = vld [vmem:[#allocation41_spill] sm:$0xff] }
 0x323   : > { %2302 = vmatmul.f32.gmra.mxu1 %v2267_v56  ;;  %v1763_v35 = vadd.f32 %v5541_v28, %v5540_v55  ;;  %v5555_v28 = vld [vmem:[#allocation7_spill] sm:$0xff] }
 0x329   : > { %v2205_v62 = vpop.f32.mrf.mxu0 }
 0x32a   : > { %v4871_v57 = vadd.f32 %v2205_v62, %v4678_v27  ;;  %v1878_v27 = vpop.f32.mrf.mxu1  ;;  %v1997_v48 = vpop.f32.mrf.mxu2  ;;  %v5536_v62 = vld [vmem:[#allocation19_spill] sm:$0xff] }
 0x32b   : > { %2305 = vmatmul.f32.gmra.mxu1 %v2269_v51  ;;  %v2110_v37 = vpop.f32.mrf.mxu3  ;;  %v1769_v15 = vadd.f32 %v5537_v38, %v5536_v62  ;;  %v2273_v51 = vld [vmem:[%s5318_s3 + $0x60] sm:$0xff]  ;;  %v1876_v38 = vadd.f32 %v1875_v36, %v1763_v35  ;;  %v5556_v35 = vld [vmem:[#allocation12_spill] sm:$0xff] }
 0x331   : > { %v4878_v53 = vpop.f32.mrf.mxu0 }
 0x332   : > { %v1881_v16 = vpop.f32.mrf.mxu1  ;;  %v2000_v0 = vpop.f32.mrf.mxu2 }
 0x333   : > { %2308 = vmatmul.f32.gmra.mxu1 %v2271_v31  ;;  %v2113_v42 = vpop.f32.mrf.mxu3  ;;  %v5538_v31 = vld [vmem:[#allocation21_spill] sm:$0xff]  ;;  %v1882_v61 = vadd.f32 %v1881_v16, %v1769_v15  ;;  %v5545_v16 = vld [vmem:[#allocation39_spill] sm:$0xff]  ;;  %v1989_v15 = vadd.f32 %v1988_v19, %v1876_v38  ;;  %v2954_v38 = vld [vmem:[%s5318_s3 + $0xd8] sm:$0xff] }
 0x334   : > { %v1766_v29 = vadd.f32 %v5539_v63, %v5538_v31  ;;  %v5544_v63 = vld [vmem:[#allocation18_spill] sm:$0xff] }
 0x335   : > { %v1995_v39 = vadd.f32 %v1994_v4, %v1882_v61  ;;  %v2275_v61 = vld [vmem:[%s5318_s3 + $0x70] sm:$0xff]  ;;  %v5553_v31 = vld [vmem:[#allocation10_spill] sm:$0xff] }
 0x336   : > { %v1879_v21 = vadd.f32 %v1878_v27, %v1766_v29  ;;  %v4969_v27 = vmax.f32 %v4855_v40, 0.0  ;;  %v4987_v40 = vmax.f32 %v4830_v34, 0.0  ;;  %v5005_v34 = vmax.f32 %v4743_v47, 0.0  ;;  %v2944_v47 = vld [vmem:[%s5318_s3 + $0x88] sm:$0xff]  ;;  %v5549_v4 = vld [vmem:[#allocation5_spill] sm:$0xff] }
 0x338   : > { %v1992_v60 = vadd.f32 %v1991_v7, %v1879_v21  ;;  %v2102_v21 = vadd.f32 %v2101_v24, %v1989_v15  ;;  %v2945_v7 = vld [vmem:[%s5318_s3 + $0x90] sm:$0xff]  ;;  %v2958_v15 = vld [vmem:[%s5318_s3 + $0xf8] sm:$0xff] }
 0x339   : > { %v4883_v3 = vpop.f32.mrf.mxu0 }
 0x33a   : > { %v1884_v1 = vpop.f32.mrf.mxu1 }
 0x33b   : > { %v1885_v11 = vadd.f32 %v1884_v1, %v1772_v41  ;;  %2311 = vmatmul.f32.gmra.mxu1 %v2273_v51  ;;  %v5543_v41 = vld [vmem:[#allocation40_spill] sm:$0xff]  ;;  %v2108_v51 = vadd.f32 %v2107_v12, %v1995_v39 }
 0x33c   : > { %v2948_v12 = vld [vmem:[%s5318_s3 + $0xa8] sm:$0xff] }
 0x33d   : > { %v1998_v59 = vadd.f32 %v1997_v48, %v1885_v11  ;;  %v1757_v48 = vadd.f32 %v5545_v16, %v5544_v63  ;;  %v2105_v11 = vadd.f32 %v2104_v2, %v1992_v60  ;;  %v5547_v2 = vld [vmem:[#allocation4_spill] sm:$0xff]  ;;  %v2955_v63 = vld [vmem:[%s5318_s3 + $0xe0] sm:$0xff] }
 0x33e   : > { %v2956_v16 = vld [vmem:[%s5318_s3 + $0xe8] sm:$0xff] }
 0x33f   : > { %v2111_v62 = vadd.f32 %v2110_v37, %v1998_v59  ;;  %v5552_v37 = vld [vmem:[#allocation26_spill] sm:$0xff] }
 0x340   : > { %v2950_v59 = vld [vmem:[%s5318_s3 + $0xb8] sm:$0xff] }
 0x341   : > { %v2214_v32 = vpop.f32.mrf.mxu0 }
 0x342   : > { %v1887_v52 = vpop.f32.mrf.mxu1 }
 0x343   : > { %v1888_v56 = vadd.f32 %v1887_v52, %v1775_v58  ;;  %v5542_v52 = vld [vmem:[#allocation15_spill] sm:$0xff]  ;;  %2314 = vmatmul.f32.gmra.mxu1 %v2275_v61  ;;  %v2962_v61 = vld [vmem:[%s5318_s3 + $0x118] sm:$0xff] }
 0x344   : > { %v1760_v58 = vadd.f32 %v5543_v41, %v5542_v52  ;;  %v2952_v52 = vld [vmem:[%s5318_s3 + $0xc8] sm:$0xff]  ;;  %v2272_v41 = vld [vmem:[%s5318_s3 + $0x58] sm:$0xff] }
 0x345   : > { %v2001_v18 = vadd.f32 %v2000_v0, %v1888_v56  ;;  %v2949_v56 = vld [vmem:[%s5318_s3 + $0xb0] sm:$0xff] }
 0x346   : > { %v1873_v0 = vadd.f32 %v1872_v23, %v1760_v58  ;;  %v2215_v23 = vadd.f32 %v2214_v32, %v2102_v21  ;;  %v2947_v32 = vld [vmem:[%s5318_s3 + $0xa0] sm:$0xff]  ;;  %v2953_v58 = vld [vmem:[%s5318_s3 + $0xd0] sm:$0xff] }
 0x347   : > { %v2114_v1 = vadd.f32 %v2113_v42, %v2001_v18  ;;  %v1870_v42 = vadd.f32 %v4858_v25, %v1757_v48  ;;  %v5554_v18 = vld [vmem:[#allocation25_spill] sm:$0xff]  ;;  %v2276_v48 = vld [vmem:[%s5318_s3 + $0x78] sm:$0xff] }
 0x348   : > { %v1986_v39 = vadd.f32 %v4868_v30, %v1873_v0  ;;  %v2957_v0 = vld [vmem:[%s5318_s3 + $0xf0] sm:$0xff] }
 0x349   : > { %v2217_v54 = vpop.f32.mrf.mxu0  ;;  %v2965_v21 = vld [vmem:[%s5318_s3 + $0x130] sm:$0xff] }
 0x34a   : > { %v2099_v60 = vadd.f32 %v4873_v6, %v1986_v39  ;;  %v4941_v6 = vmax.f32 %v2215_v23, 0.0  ;;  %v2964_v39 = vld [vmem:[%s5318_s3 + $0x128] sm:$0xff] }
 0x34c   : > { %v2212_v25 = vadd.f32 %v4883_v3, %v2099_v60  ;;  %v4963_v3 = vmax.f32 %v4866_v46, 0.0  ;;  %v4981_v46 = vmax.f32 %v4841_v17, 0.0  ;;  %v4999_v17 = vmax.f32 %v4772_v45, 0.0  ;;  %v2262_v45 = vld [vmem:[%s5318_s3 + $0x8] sm:$0xff] }
 0x34d   : > { %v2968_v60 = vld [vmem:[%s5318_s3 + $0x148] sm:$0xff] }
 0x351   : > { %v2220_v50 = vpop.f32.mrf.mxu0 }
 0x352   : > { %v2221_v55 = vadd.f32 %v2220_v50, %v2108_v51  ;;  %v5551_v50 = vld [vmem:[#allocation27_spill] sm:$0xff]  ;;  %v2274_v51 = vld [vmem:[%s5318_s3 + $0x68] sm:$0xff] }
 0x354   : > { %v4928_v19 = vmax.f32 %v2221_v55, 0.0  ;;  %v2960_v55 = vld [vmem:[%s5318_s3 + $0x108] sm:$0xff] }
 0x359   : > { %v2223_v13 = vpop.f32.mrf.mxu0 }
 0x35a   : > { %v2224_v9 = vadd.f32 %v2223_v13, %v2111_v62  ;;  %v2268_v13 = vld [vmem:[%s5318_s3 + $0x38] sm:$0xff]  ;;  %v2270_v62 = vld [vmem:[%s5318_s3 + $0x48] sm:$0xff] }
 0x35c   : > { %v4921_v36 = vmax.f32 %v2224_v9, 0.0 }
 0x361   : > { %v2226_v20 = vpop.f32.mrf.mxu0 }
 0x362   : > { %v2227_v5 = vadd.f32 %v2226_v20, %v2114_v1  ;;  %v2218_v20 = vadd.f32 %v2217_v54, %v2105_v11  ;;  %v5550_v54 = vld [vmem:[#allocation3_spill] sm:$0xff] }
 0x363   : > { %v2951_v1 = vld [vmem:[%s5318_s3 + $0xc0] sm:$0xff] }
 0x364   : > { %v4914_v29 = vmax.f32 %v2227_v5, 0.0  ;;  %v1983_v5 = vadd.f32 %v4861_v14, %v1870_v42  ;;  %v4935_v30 = vmax.f32 %v2218_v20, 0.0  ;;  %v2959_v11 = vld [vmem:[%s5318_s3 + $0x100] sm:$0xff] }
 0x365   : > { %v2963_v42 = vld [vmem:[%s5318_s3 + $0x120] sm:$0xff] }
 0x366   : > { %2318 = vmatpush.msra.mxu2 %v4914_v29  ;;  %2417 = vmatpush.msrb.mxu1 %v4914_v29  ;;  %v2096_v9 = vadd.f32 %v4864_v26, %v1983_v5  ;;  %v4946_v26 = vmax.f32 %v2212_v25, 0.0  ;;  %v2967_v5 = vld [vmem:[%s5318_s3 + $0x140] sm:$0xff]  ;;  %v2970_v25 = vld [vmem:[%s5318_s3 + $0x158] sm:$0xff] }
 0x367   : > { %2524 = vmatpush.msra.mxu3 %v4914_v29 }
 0x368   : > { %2319 = vmatpush.msra.mxu2 %v4921_v36  ;;  %2418 = vmatpush.msrb.mxu1 %v4921_v36  ;;  %v2209_v14 = vadd.f32 %v4878_v53, %v2096_v9  ;;  %v4957_v53 = vmax.f32 %v4871_v57, 0.0  ;;  %v4975_v57 = vmax.f32 %v4848_v33, 0.0  ;;  %v4993_v33 = vmax.f32 %v4803_v8, 0.0  ;;  %v2943_v8 = vld [vmem:[%s5318_s3 + $0x80] sm:$0xff]  ;;  %v2969_v9 = vld [vmem:[%s5318_s3 + $0x150] sm:$0xff] }
 0x369   : > { %2525 = vmatpush.msra.mxu3 %v4921_v36 }
 0x36a   : > { %2320 = vmatpush.msra.mxu2 %v4928_v19  ;;  %2419 = vmatpush.msrb.mxu1 %v4928_v19  ;;  %v4951_v24 = vmax.f32 %v2209_v14, 0.0  ;;  %v2977_v14 = vld [vmem:[%s5318_s3 + $0x190] sm:$0xff] }
 0x36b   : > { %2526 = vmatpush.msra.mxu3 %v4928_v19 }
 0x36c   : > { %2321 = vmatpush.msra.mxu2 %v4935_v30  ;;  %2420 = vmatpush.msrb.mxu1 %v4935_v30 }
 0x36d   : > { %2527 = vmatpush.msra.mxu3 %v4935_v30 }
 0x36e   : > { %2322 = vmatpush.msra.mxu2 %v4941_v6  ;;  %2421 = vmatpush.msrb.mxu1 %v4941_v6 }
 0x36f   : > { %2528 = vmatpush.msra.mxu3 %v4941_v6 }
 0x370   : > { %2323 = vmatpush.msra.mxu2 %v4946_v26  ;;  %2422 = vmatpush.msrb.mxu1 %v4946_v26 }
 0x371   : > { %2529 = vmatpush.msra.mxu3 %v4946_v26 }
 0x372   : > { %2324 = vmatpush.msra.mxu2 %v4951_v24  ;;  %2423 = vmatpush.msrb.mxu1 %v4951_v24 }
 0x373   : > { %2530 = vmatpush.msra.mxu3 %v4951_v24 }
 0x374   : > { %2325 = vmatpush.msra.mxu2 %v4957_v53  ;;  %2424 = vmatpush.msrb.mxu1 %v4957_v53 }
 0x375   : > { %2531 = vmatpush.msra.mxu3 %v4957_v53 }
 0x376   : > { %2326 = vmatpush.msra.mxu2 %v4963_v3  ;;  %2425 = vmatpush.msrb.mxu1 %v4963_v3 }
 0x377   : > { %2532 = vmatpush.msra.mxu3 %v4963_v3 }
 0x378   : > { %2327 = vmatpush.msra.mxu2 %v4969_v27  ;;  %2426 = vmatpush.msrb.mxu1 %v4969_v27 }
 0x379   : > { %2533 = vmatpush.msra.mxu3 %v4969_v27 }
 0x37a   : > { %2328 = vmatpush.msra.mxu2 %v4975_v57  ;;  %2427 = vmatpush.msrb.mxu1 %v4975_v57 }
 0x37b   : > { %2534 = vmatpush.msra.mxu3 %v4975_v57 }
 0x37c   : > { %2329 = vmatpush.msra.mxu2 %v4981_v46  ;;  %2428 = vmatpush.msrb.mxu1 %v4981_v46 }
 0x37d   : > { %2535 = vmatpush.msra.mxu3 %v4981_v46 }
 0x37e   : > { %2330 = vmatpush.msra.mxu2 %v4987_v40  ;;  %2429 = vmatpush.msrb.mxu1 %v4987_v40 }
 0x37f   : > { %2536 = vmatpush.msra.mxu3 %v4987_v40 }
 0x380   : > { %2331 = vmatpush.msra.mxu2 %v4993_v33  ;;  %2430 = vmatpush.msrb.mxu1 %v4993_v33 }
 0x381   : > { %2537 = vmatpush.msra.mxu3 %v4993_v33 }
 0x382   : > { %2332 = vmatpush.msra.mxu2 %v4999_v17  ;;  %2431 = vmatpush.msrb.mxu1 %v4999_v17 }
 0x383   : > { %2538 = vmatpush.msra.mxu3 %v4999_v17 }
 0x384   : > { %2333 = vmatpush.msra.mxu2 %v5005_v34  ;;  %2432 = vmatpush.msrb.mxu1 %v5005_v34 }
 0x385   : > { %2539 = vmatpush.msra.mxu3 %v5005_v34  ;;  %2334 = vmatmul.f32.vlgmr.msra.gmra.mxu2 %v2262_v45 }
 0x386   : > { %2483 = vmatpush.msrb.mxu2 %v4721_v43  ;;  %2590 = vmatpush.msra.mxu1 %v4721_v43  ;;  %v2264_v43 = vld [vmem:[%s5318_s3 + $0x18] sm:$0xff] }
 0x387   : > { %2392 = vmatmul.f32.vlgmr.msrb.gmra.mxu3 %v2943_v8  ;;  %2433 = vmatmul.f32.vlgmr.msrb.gmra.mxu1 %v2944_v47  ;;  %v2985_v47 = vld [vmem:[%s5318_s3 + $0x1d0] sm:$0xff] }
 0x388   : > { %2484 = vmatpush.msrb.mxu2 %v4727_v10  ;;  %2591 = vmatpush.msra.mxu1 %v4727_v10  ;;  %v2946_v10 = vld [vmem:[%s5318_s3 + $0x98] sm:$0xff]  ;;  %v5154_v20 = vpop.f32.mrf.mxu1 }
 0x38a   : > { %2485 = vmatpush.msrb.mxu2 %v4734_v22  ;;  %2592 = vmatpush.msra.mxu1 %v4734_v22  ;;  %v5546_v22 = vld [vmem:[#allocation24_spill] sm:$0xff] }
 0x38c   : > { %2486 = vmatpush.msrb.mxu2 %v4741_v44  ;;  %2593 = vmatpush.msra.mxu1 %v4741_v44  ;;  %v5548_v44 = vld [vmem:[#allocation8_spill] sm:$0xff] }
 0x38d   : > { %2337 = vmatmul.f32.gmra.mxu2 %v2264_v43  ;;  %v2980_v43 = vld [vmem:[%s5318_s3 + $0x1a8] sm:$0xff] }
 0x38e   : > { %2487 = vmatpush.msrb.mxu2 %v4749_v49  ;;  %2594 = vmatpush.msra.mxu1 %v4749_v49  ;;  %v2266_v49 = vld [vmem:[%s5318_s3 + $0x28] sm:$0xff] }
 0x38f   : > { %2395 = vmatmul.f32.gmra.mxu3 %v2945_v7  ;;  %2436 = vmatmul.f32.gmra.mxu1 %v2946_v10 }
 0x390   : > { %2488 = vmatpush.msrb.mxu2 %v5546_v22  ;;  %2595 = vmatpush.msra.mxu1 %v5546_v22  ;;  %v5165_v23 = vpop.f32.mrf.mxu1  ;;  %v2987_v22 = vld [vmem:[%s5318_s3 + $0x1e0] sm:$0xff] }
 0x392   : > { %2489 = vmatpush.msrb.mxu2 %v5547_v2  ;;  %2596 = vmatpush.msra.mxu1 %v5547_v2  ;;  %v2982_v2 = vld [vmem:[%s5318_s3 + $0x1b8] sm:$0xff] }
 0x394   : > { %2490 = vmatpush.msrb.mxu2 %v5548_v44  ;;  %2597 = vmatpush.msra.mxu1 %v5548_v44 }
 0x395   : > { %2340 = vmatmul.f32.gmra.mxu2 %v2266_v49 }
 0x396   : > { %2491 = vmatpush.msrb.mxu2 %v5549_v4  ;;  %2598 = vmatpush.msra.mxu1 %v5549_v4  ;;  %v2984_v4 = vld [vmem:[%s5318_s3 + $0x1c8] sm:$0xff] }
 0x397   : > { %2398 = vmatmul.f32.gmra.mxu3 %v2947_v32  ;;  %2439 = vmatmul.f32.gmra.mxu1 %v2948_v12  ;;  %v2989_v32 = vld [vmem:[%s5318_s3 + $0x1f0] sm:$0xff] }
 0x398   : > { %2492 = vmatpush.msrb.mxu2 %v5550_v54  ;;  %2599 = vmatpush.msra.mxu1 %v5550_v54 }
 0x39a   : > { %2493 = vmatpush.msrb.mxu2 %v5551_v50  ;;  %2600 = vmatpush.msra.mxu1 %v5551_v50  ;;  %v2986_v50 = vld [vmem:[%s5318_s3 + $0x1d8] sm:$0xff] }
 0x39c   : > { %2494 = vmatpush.msrb.mxu2 %v5552_v37  ;;  %2601 = vmatpush.msra.mxu1 %v5552_v37 }
 0x39d   : > { %2343 = vmatmul.f32.gmra.mxu2 %v2268_v13 }
 0x39e   : > { %2495 = vmatpush.msrb.mxu2 %v5553_v31  ;;  %2602 = vmatpush.msra.mxu1 %v5553_v31  ;;  %v2988_v31 = vld [vmem:[%s5318_s3 + $0x1e8] sm:$0xff] }
 0x39f   : > { %2401 = vmatmul.f32.gmra.mxu3 %v2949_v56  ;;  %2442 = vmatmul.f32.gmra.mxu1 %v2950_v59 }
 0x3a0   : > { %2496 = vmatpush.msrb.mxu2 %v5554_v18  ;;  %2603 = vmatpush.msra.mxu1 %v5554_v18 }
 0x3a2   : > { %2497 = vmatpush.msrb.mxu2 %v5555_v28  ;;  %2604 = vmatpush.msra.mxu1 %v5555_v28 }
 0x3a4   : > { %2498 = vmatpush.msrb.mxu2 %v5556_v35  ;;  %2605 = vmatpush.msra.mxu1 %v5556_v35  ;;  %v2990_v35 = vld [vmem:[%s5318_s3 + $0x1f8] sm:$0xff] }
 0x3a5   : > { %2346 = vmatmul.f32.gmra.mxu2 %v2270_v62 }
 0x3a6   : > { %2631 = vmatpush.msra.mxu2 %v4914_v29  ;;  %v2961_v29 = vld [vmem:[%s5318_s3 + $0x110] sm:$0xff] }
 0x3a7   : > { %2404 = vmatmul.f32.gmra.mxu3 %v2951_v1  ;;  %2445 = vmatmul.f32.gmra.mxu1 %v2952_v52 }
 0x3a8   : > { %2632 = vmatpush.msra.mxu2 %v4921_v36  ;;  %v2966_v36 = vld [vmem:[%s5318_s3 + $0x138] sm:$0xff] }
 0x3aa   : > { %2633 = vmatpush.msra.mxu2 %v4928_v19  ;;  %v2975_v19 = vld [vmem:[%s5318_s3 + $0x180] sm:$0xff] }
 0x3ac   : > { %2634 = vmatpush.msra.mxu2 %v4935_v30  ;;  %v5176_v30 = vpop.f32.mrf.mxu1 }
 0x3ad   : > { %2349 = vmatmul.f32.gmra.mxu2 %v2272_v41 }
 0x3ae   : > { %2635 = vmatpush.msra.mxu2 %v4941_v6  ;;  %v2971_v6 = vld [vmem:[%s5318_s3 + $0x160] sm:$0xff] }
 0x3af   : > { %2407 = vmatmul.f32.gmra.mxu3 %v2953_v58  ;;  %2448 = vmatmul.f32.gmra.mxu1 %v2954_v38 }
 0x3b0   : > { %2636 = vmatpush.msra.mxu2 %v4946_v26  ;;  %v2972_v26 = vld [vmem:[%s5318_s3 + $0x168] sm:$0xff] }
 0x3b2   : > { %2637 = vmatpush.msra.mxu2 %v4951_v24  ;;  %v2979_v24 = vld [vmem:[%s5318_s3 + $0x1a0] sm:$0xff] }
 0x3b4   : > { %2638 = vmatpush.msra.mxu2 %v4957_v53  ;;  %v5190_v53 = vpop.f32.mrf.mxu1 }
 0x3b5   : > { %2352 = vmatmul.f32.gmra.mxu2 %v2274_v51 }
 0x3b6   : > { %2639 = vmatpush.msra.mxu2 %v4963_v3  ;;  %v2973_v3 = vld [vmem:[%s5318_s3 + $0x170] sm:$0xff] }
 0x3b7   : > { %2410 = vmatmul.f32.gmra.mxu3 %v2955_v63  ;;  %2451 = vmatmul.f32.gmra.mxu1 %v2956_v16 }
 0x3b8   : > { %2640 = vmatpush.msra.mxu2 %v4969_v27  ;;  %v2974_v27 = vld [vmem:[%s5318_s3 + $0x178] sm:$0xff] }
 0x3ba   : > { %2641 = vmatpush.msra.mxu2 %v4975_v57  ;;  %v2981_v57 = vld [vmem:[%s5318_s3 + $0x1b0] sm:$0xff] }
 0x3bc   : > { %2642 = vmatpush.msra.mxu2 %v4981_v46  ;;  %v2976_v46 = vld [vmem:[%s5318_s3 + $0x188] sm:$0xff] }
 0x3bd   : > { %2355 = vmatmul.f32.gmra.mxu2 %v2276_v48 }
 0x3be   : > { %2643 = vmatpush.msra.mxu2 %v4987_v40  ;;  %v5204_v40 = vpop.f32.mrf.mxu1 }
 0x3bf   : > { %2413 = vmatmul.f32.gmra.mxu3 %v2957_v0  ;;  %2454 = vmatmul.f32.gmra.mxu1 %v2958_v15 }
 0x3c0   : > { %2644 = vmatpush.msra.mxu2 %v4993_v33 }
 0x3c2   : > { %2645 = vmatpush.msra.mxu2 %v4999_v17  ;;  %v2983_v17 = vld [vmem:[%s5318_s3 + $0x1c0] sm:$0xff] }
 0x3c4   : > { %2646 = vmatpush.msra.mxu2 %v5005_v34  ;;  %v2978_v34 = vld [vmem:[%s5318_s3 + $0x198] sm:$0xff] }
 0x3c5   : > { %2499 = vmatmul.f32.vlgmr.msrb.gmra.mxu2 %v2959_v11 }
 0x3c6   : > { %v5212_v45 = vpop.f32.mrf.mxu1 }
 0x3c7   : > { %2540 = vmatmul.f32.vlgmr.msra.gmra.mxu3 %v2960_v55  ;;  %2606 = vmatmul.f32.vlgmr.msra.gmra.mxu1 %v2975_v19 }
 0x3cd   : > { %2502 = vmatmul.f32.gmra.mxu2 %v2961_v29 }
 0x3ce   : > { %v5222_v7 = vpop.f32.mrf.mxu1 }
 0x3cf   : > { %2543 = vmatmul.f32.gmra.mxu3 %v2962_v61  ;;  %2609 = vmatmul.f32.gmra.mxu1 %v2977_v14 }
 0x3d5   : > { %2505 = vmatmul.f32.gmra.mxu2 %v2963_v42 }
 0x3d6   : > { %v2315_v49 = vpop.f32.mrf.mxu1 }
 0x3d7   : > { %2546 = vmatmul.f32.gmra.mxu3 %v2964_v39  ;;  %2612 = vmatmul.f32.gmra.mxu1 %v2979_v24 }
 0x3dd   : > { %2508 = vmatmul.f32.gmra.mxu2 %v2965_v21 }
 0x3df   : > { %2549 = vmatmul.f32.gmra.mxu3 %v2966_v36  ;;  %2615 = vmatmul.f32.gmra.mxu1 %v2981_v57 }
 0x3e5   : > { %2511 = vmatmul.f32.gmra.mxu2 %v2967_v5 }
 0x3e7   : > { %2552 = vmatmul.f32.gmra.mxu3 %v2968_v60  ;;  %2618 = vmatmul.f32.gmra.mxu1 %v2983_v17 }
 0x3ed   : > { %2514 = vmatmul.f32.gmra.mxu2 %v2969_v9 }
 0x3ef   : > { %2555 = vmatmul.f32.gmra.mxu3 %v2970_v25  ;;  %2621 = vmatmul.f32.gmra.mxu1 %v2985_v47 }
 0x3f5   : > { %2517 = vmatmul.f32.gmra.mxu2 %v2971_v6 }
 0x3f7   : > { %2558 = vmatmul.f32.gmra.mxu3 %v2972_v26  ;;  %2624 = vmatmul.f32.gmra.mxu1 %v2987_v22 }
 0x3fd   : > { %2520 = vmatmul.f32.gmra.mxu2 %v2973_v3 }
 0x3ff   : > { %2561 = vmatmul.f32.gmra.mxu3 %v2974_v27  ;;  %2627 = vmatmul.f32.gmra.mxu1 %v2989_v32 }
 0x404   : > { %v2434_v37 = vpop.f32.mrf.mxu1 }
 0x405   : > { %2647 = vmatmul.f32.vlgmr.msra.gmra.mxu2 %v2976_v46 }
 0x408   : > { %v2335_v33 = vpop.f32.mrf.mxu2 }
 0x409   : > { %v2336_v14 = vadd.f32 %v2335_v33, %v5154_v20 }
 0x40a   : > { %v2393_v12 = vpop.f32.mrf.mxu3 }
 0x40b   : > { %v2435_v6 = vadd.f32 %v2434_v37, %v2393_v12 }
 0x40c   : > { %v2437_v59 = vpop.f32.mrf.mxu1 }
 0x40d   : > { %2650 = vmatmul.f32.gmra.mxu2 %v2978_v34  ;;  %v2458_v24 = vmax.f32 %v2336_v14, %v2435_v6 }
 0x410   : > { %v5214_v8 = vpop.f32.mrf.mxu2 }
 0x411   : > { %v2339_v17 = vadd.f32 %v5214_v8, %v5165_v23 }
 0x412   : > { %v2396_v13 = vpop.f32.mrf.mxu3 }
 0x413   : > { %v2438_v34 = vadd.f32 %v2437_v59, %v2396_v13 }
 0x414   : > { %v2440_v62 = vpop.f32.mrf.mxu1 }
 0x415   : > { %2653 = vmatmul.f32.gmra.mxu2 %v2980_v43  ;;  %v2459_v43 = vmax.f32 %v2339_v17, %v2438_v34 }
 0x418   : > { %v5224_v10 = vpop.f32.mrf.mxu2 }
 0x41a   : > { %v2399_v28 = vpop.f32.mrf.mxu3 }
 0x41b   : > { %v2441_v12 = vadd.f32 %v2440_v62, %v2399_v28 }
 0x41c   : > { %v2443_v38 = vpop.f32.mrf.mxu1 }
 0x41d   : > { %2656 = vmatmul.f32.gmra.mxu2 %v2982_v2 }
 0x420   : > { %v5232_v44 = vpop.f32.mrf.mxu2 }
 0x422   : > { %v2402_v41 = vpop.f32.mrf.mxu3 }
 0x424   : > { %v2446_v16 = vpop.f32.mrf.mxu1 }
 0x425   : > { %2659 = vmatmul.f32.gmra.mxu2 %v2984_v4  ;;  %v2342_v4 = vadd.f32 %v5224_v10, %v5176_v30 }
 0x427   : > { %v2460_v23 = vmax.f32 %v2342_v4, %v2441_v12 }
 0x428   : > { %v5240_v54 = vpop.f32.mrf.mxu2 }
 0x42a   : > { %v2405_v51 = vpop.f32.mrf.mxu3 }
 0x42c   : > { %v5259_v15 = vpop.f32.mrf.mxu1 }
 0x42d   : > { %2662 = vmatmul.f32.gmra.mxu2 %v2986_v50 }
 0x430   : > { %v5245_v56 = vpop.f32.mrf.mxu2 }
 0x432   : > { %v5257_v48 = vpop.f32.mrf.mxu3 }
 0x434   : > { %v5263_v29 = vpop.f32.mrf.mxu1 }
 0x435   : > { %2665 = vmatmul.f32.gmra.mxu2 %v2988_v31 }
 0x438   : > { %v5250_v18 = vpop.f32.mrf.mxu2 }
 0x43a   : > { %v5261_v55 = vpop.f32.mrf.mxu3 }
 0x43c   : > { %v5269_v21 = vpop.f32.mrf.mxu1 }
 0x43d   : > { %2668 = vmatmul.f32.gmra.mxu2 %v2990_v35  ;;  %v2345_v35 = vadd.f32 %v5232_v44, %v5190_v53 }
 0x440   : > { %v2356_v1 = vpop.f32.mrf.mxu2 }
 0x441   : > { %v5255_v52 = vadd.f32 %v2356_v1, %v2315_v49  ;;  %v2444_v1 = vadd.f32 %v2443_v38, %v2402_v41 }
 0x442   : > { %v5265_v42 = vpop.f32.mrf.mxu3 }
 0x444   : > { %v2607_v60 = vpop.f32.mrf.mxu1 }
 0x448   : > { %v2500_v58 = vpop.f32.mrf.mxu2 }
 0x44a   : > { %v2541_v36 = vpop.f32.mrf.mxu3 }
 0x44b   : > { %v2542_v26 = vadd.f32 %v2541_v36, %v2500_v58 }
 0x44c   : > { %v2610_v25 = vpop.f32.mrf.mxu1 }
 0x44d   : > { %v2565_v57 = vmax.f32 %v2458_v24, %v2542_v26  ;;  %v2351_v26 = vadd.f32 %v5245_v56, %v5212_v45  ;;  %v2450_v24 = vadd.f32 %v5259_v15, %v5257_v48 }
 0x450   : > { %v2503_v63 = vpop.f32.mrf.mxu2 }
 0x452   : > { %v2544_v19 = vpop.f32.mrf.mxu3 }
 0x453   : > { %v2545_v47 = vadd.f32 %v2544_v19, %v2503_v63  ;;  %v2447_v19 = vadd.f32 %v2446_v16, %v2405_v51 }
 0x454   : > { %v2613_v33 = vpop.f32.mrf.mxu1 }
 0x455   : > { %v2566_v2 = vmax.f32 %v2459_v43, %v2545_v47 }
 0x458   : > { %v2506_v0 = vpop.f32.mrf.mxu2 }
 0x45a   : > { %v2547_v27 = vpop.f32.mrf.mxu3 }
 0x45b   : > { %v2548_v37 = vadd.f32 %v2547_v27, %v2506_v0  ;;  %v2348_v0 = vadd.f32 %v5240_v54, %v5204_v40  ;;  %v2463_v54 = vmax.f32 %v2351_v26, %v2450_v24 }
 0x45c   : > { %v2616_v31 = vpop.f32.mrf.mxu1 }
 0x45d   : > { %v2567_v13 = vmax.f32 %v2460_v23, %v2548_v37  ;;  %v2462_v53 = vmax.f32 %v2348_v0, %v2447_v19 }
 0x460   : > { %v2509_v11 = vpop.f32.mrf.mxu2 }
 0x462   : > { %v2550_v32 = vpop.f32.mrf.mxu3 }
 0x463   : > { %v2551_v36 = vadd.f32 %v2550_v32, %v2509_v11 }
 0x464   : > { %v2619_v10 = vpop.f32.mrf.mxu1 }
 0x468   : > { %v2512_v61 = vpop.f32.mrf.mxu2 }
 0x46a   : > { %v2553_v63 = vpop.f32.mrf.mxu3 }
 0x46b   : > { %v2554_v14 = vadd.f32 %v2553_v63, %v2512_v61 }
 0x46c   : > { %v2622_v11 = vpop.f32.mrf.mxu1 }
 0x46d   : > { %v2569_v41 = vmax.f32 %v2462_v53, %v2554_v14 }
 0x470   : > { %v5267_v39 = vpop.f32.mrf.mxu2 }
 0x472   : > { %v2556_v6 = vpop.f32.mrf.mxu3 }
 0x473   : > { %v2557_v40 = vadd.f32 %v2556_v6, %v5267_v39 }
 0x474   : > { %v2625_v56 = vpop.f32.mrf.mxu1 }
 0x475   : > { %v2570_v61 = vmax.f32 %v2463_v54, %v2557_v40 }
 0x478   : > { %v5271_v5 = vpop.f32.mrf.mxu2 }
 0x47a   : > { %v2559_v16 = vpop.f32.mrf.mxu3 }
 0x47b   : > { %v2560_v48 = vadd.f32 %v2559_v16, %v5271_v5 }
 0x480   : > { %v5273_v9 = vpop.f32.mrf.mxu2 }
 0x488   : > { %v2648_v3 = vpop.f32.mrf.mxu2 }
 0x489   : > { %v2649_v46 = vadd.f32 %v2648_v3, %v2607_v60  ;;  %v2461_v60 = vmax.f32 %v2345_v35, %v2444_v1 }
 0x48b   : > { %v2672_v20 = vmax.f32 %v2565_v57, %v2649_v46  ;;  %v2568_v28 = vmax.f32 %v2461_v60, %v2551_v36  ;;  %v2354_v57 = vadd.f32 %v5250_v18, %v5222_v7  ;;  %v2453_v46 = vadd.f32 %v5263_v29, %v5261_v55  ;;  %v2628_v18 = vpop.f32.mrf.mxu1 }
 0x48d   : > { %2680 = vst [vmem:[%s5280_s19] sm:$0xff] %v2672_v20  ;;  %v2464_v15 = vmax.f32 %v2354_v57, %v2453_v46  ;;  %v2562_v20 = vpop.f32.mrf.mxu3 }
 0x48e   : > { %v2563_v7 = vadd.f32 %v2562_v20, %v5273_v9 }
 0x48f   : > { %v2571_v17 = vmax.f32 %v2464_v15, %v2560_v48 }
 0x490   : > { %v2651_v22 = vpop.f32.mrf.mxu2 }
 0x491   : > { %v2652_v49 = vadd.f32 %v2651_v22, %v2610_v25 }
 0x493   : > { %v2673_v50 = vmax.f32 %v2566_v2, %v2652_v49 }
 0x495   : > { %2681 = vst [vmem:[%s5280_s19 + $0x8] sm:$0xff] %v2673_v50 }
 0x498   : > { %v2654_v8 = vpop.f32.mrf.mxu2 }
 0x499   : > { %v2655_v59 = vadd.f32 %v2654_v8, %v2613_v33  ;;  %v2456_v33 = vadd.f32 %v5269_v21, %v5265_v42 }
 0x49b   : > { %v2674_v58 = vmax.f32 %v2567_v13, %v2655_v59  ;;  %v2465_v55 = vmax.f32 %v5255_v52, %v2456_v33 }
 0x49d   : > { %2682 = vst [vmem:[%s5280_s19 + $0x10] sm:$0xff] %v2674_v58  ;;  %v2572_v43 = vmax.f32 %v2465_v55, %v2563_v7 }
 0x4a0   : > { %v2657_v30 = vpop.f32.mrf.mxu2 }
 0x4a1   : > { %v2658_v62 = vadd.f32 %v2657_v30, %v2616_v31 }
 0x4a3   : > { %v2675_v25 = vmax.f32 %v2568_v28, %v2658_v62 }
 0x4a5   : > { %2683 = vst [vmem:[%s5280_s19 + $0x18] sm:$0xff] %v2675_v25 }
 0x4a8   : > { %v2660_v44 = vpop.f32.mrf.mxu2 }
 0x4a9   : > { %v2661_v38 = vadd.f32 %v2660_v44, %v2619_v10 }
 0x4ab   : > { %v2676_v3 = vmax.f32 %v2569_v41, %v2661_v38 }
 0x4ad   : > { %2684 = vst [vmem:[%s5280_s19 + $0x20] sm:$0xff] %v2676_v3 }
 0x4b0   : > { %v2663_v51 = vpop.f32.mrf.mxu2 }
 0x4b1   : > { %v2664_v27 = vadd.f32 %v2663_v51, %v2622_v11 }
 0x4b3   : > { %v2677_v45 = vmax.f32 %v2570_v61, %v2664_v27 }
 0x4b5   : > { %2685 = vst [vmem:[%s5280_s19 + $0x28] sm:$0xff] %v2677_v45 }
 0x4b8   : > { %v2666_v39 = vpop.f32.mrf.mxu2 }
 0x4b9   : > { %v2667_v34 = vadd.f32 %v2666_v39, %v2625_v56 }
 0x4bb   : > { %v2678_v47 = vmax.f32 %v2571_v17, %v2667_v34 }
 0x4bd   : > { %2686 = vst [vmem:[%s5280_s19 + $0x30] sm:$0xff] %v2678_v47 }
 0x4c0   : > { %v2669_v29 = vpop.f32.mrf.mxu2 }
 0x4c1   : > { %v2670_v22 = vadd.f32 %v2669_v29, %v2628_v18 }
 0x4c3   : > { %v2679_v5 = vmax.f32 %v2572_v43, %v2670_v22 }
 0x4c5   : > { %2687 = vst [vmem:[%s5280_s19 + $0x38] sm:$0xff] %v2679_v5 }
 0x4c6 PF: > { %s14_s15 = sadd.s32 1, %s3026_s15  }
 0x4c7   : > { %p11_p4 = scmp.ge.s32.totalorder %s14_s15, 4  }
 0x4c9   :  { %13 = sbr.rel (!%p11_p4) target bundleno = 1 (0x1), region = 71 }

</bundles_post_ra>
